<compile_context>
chip_gen: v5e
topology: v5e:2x2
jax: 0.10.0
libtpu: 0.0.40
codegen_flags: <defaults>
</compile_context>

<pallas_src>
import functools

import jax
import jax.numpy as jnp
from jax import lax
from jax.experimental import pallas as pl
from jax.experimental.pallas import tpu as pltpu


def _round_up(n, m):
    return ((n + m - 1) // m) * m


# ---------------------------------------------------------------------------
# One-time parameter packing (hoisted out of the forward path)
# ---------------------------------------------------------------------------
def pack_params(params, obs_shape, kernel_size=3):
    """Pack PyTorch-layout params into kernel-ready, lane-padded matrices."""
    w_conv, b_conv, w1, b1, w2, b2 = params
    Cout, Cin, K, _ = w_conv.shape
    assert K == kernel_size
    _, H, W = obs_shape
    Ho, Wo = H - K + 1, W - K + 1
    Hd = w1.shape[0]
    f32 = jnp.float32

    # Banded "window-Toeplitz" conv matrix: rows (kh, w, ci), cols (wo, co).
    #   sel[kw, w, wo] = 1 iff w == wo + kw
    sel = (jnp.arange(W)[None, :, None] ==
           (jnp.arange(Wo)[None, None, :] +
            jnp.arange(K)[:, None, None])).astype(f32)                 # (K, W, Wo)
    m6 = jnp.einsum('oikl,lwz->kwizo', w_conv.astype(f32), sel)        # (K,W,Cin,Wo,Cout)
    m = m6.reshape(K * W * Cin, Wo * Cout) * (1.0 / 255.0)             # fold inputs/255

    # Lane-pad the per-row output chunk (Wo*Cout) up to a multiple of 128.
    cw = _round_up(Wo * Cout, 128)
    pad_c = cw - Wo * Cout
    m = jnp.pad(m, ((0, 0), (0, pad_c)))                               # (K*W*Cin, cw)

    # Conv bias, one (wo, co)-ordered chunk (same for every output row ho).
    bc = jnp.concatenate([jnp.tile(b_conv.astype(f32), Wo),
                          jnp.zeros((pad_c,), f32)]).reshape(1, cw)    # (1, cw)

    # Hidden width padded to 128 lanes so h1 / output stores are lane-dense.
    Hp = _round_up(Hd, 128)
    pad_h = Hp - Hd

    # Linear-1 weight: PyTorch flatten order (co, ho, wo) -> ours (ho, wo, co),
    # zero rows at the lane-padding positions, zero cols for the Hd padding.
    w1r = w1.astype(f32).reshape(Hd, Cout, Ho, Wo).transpose(0, 2, 3, 1)
    w1r = w1r.reshape(Hd, Ho, Wo * Cout)
    w1r = jnp.pad(w1r, ((0, pad_h), (0, 0), (0, pad_c)))               # (Hp, Ho, cw)
    w1p = w1r.reshape(Hp, Ho * cw).T                                   # (Ho*cw, Hp)

    b1r = jnp.pad(b1.astype(f32), (0, pad_h)).reshape(1, Hp)
    w2t = jnp.pad(w2.astype(f32).T, ((0, pad_h), (0, pad_h)))          # (Hp, Hp)
    b2r = jnp.pad(b2.astype(f32), (0, pad_h)).reshape(1, Hp)

    return (m, bc, w1p, b1r, w2t, b2r)


# ---------------------------------------------------------------------------
# Fused forward (single pallas_call)
# ---------------------------------------------------------------------------
@functools.partial(jax.jit, static_argnums=(2,))
def cnn_base_forward(x, packed, hidden_dim):
    """x: (B, Cin, H, W) float32 (NCHW, as in PyTorch). Returns (B, hidden)."""
    m, bc, w1p, b1r, w2t, b2r = packed
    B, Cin, H, W = x.shape
    row_len = W * Cin                      # one image row, NHWC-flattened
    win_len = m.shape[0]                   # K * W * Cin (one K-row conv window)
    cw = m.shape[1]                        # lane-padded Wo*Cout chunk width
    Fp = w1p.shape[0]                      # padded flatten length = Ho*cw
    Ho = Fp // cw
    Hp = w1p.shape[1]                      # lane-padded hidden width
    in_len = H * row_len

    # The only XLA glue on the forward path: NCHW -> NHWC -> (B, H*W*Cin).
    x2 = x.transpose(0, 2, 3, 1).reshape(B, in_len)

    # Batch tiles: multiple of 8 rows, capped at 128 (per-step VMEM < 4 MB).
    tb = min(128, _round_up(B, 8))
    Bp = _round_up(B, tb)
    if Bp != B:
        x2 = jnp.pad(x2, ((0, Bp - B), (0, 0)))

    def kernel(x_ref, m_ref, bc_ref, w1_ref, b1_ref, w2_ref, b2_ref, o_ref):
        mw = m_ref[...]                                    # (win_len, cw)
        bcv = bc_ref[...]                                  # (1, cw)
        acc = jnp.zeros((tb, Hp), jnp.float32)
        # Conv row -> tanh -> partial Linear-1 contraction, fully in VMEM.
        for ho in range(Ho):
            win = x_ref[:, ho * row_len: ho * row_len + win_len]
            c = jnp.tanh(
                jnp.dot(win, mw, preferred_element_type=jnp.float32) + bcv)
            acc = acc + jnp.dot(c, w1_ref[ho * cw:(ho + 1) * cw, :],
                                preferred_element_type=jnp.float32)
        h1 = jnp.tanh(acc + b1_ref[...])
        o_ref[...] = jnp.tanh(
            jnp.dot(h1, w2_ref[...], preferred_element_type=jnp.float32)
            + b2_ref[...])

    flops = Bp * (Ho * 2 * win_len * cw + Ho * 2 * cw * Hp + 2 * Hp * Hp)
    transcendentals = Bp * (Ho * cw + 2 * Hp)
    bytes_accessed = 4 * (Bp * in_len + m.size + bc.size + w1p.size
                          + b1r.size + w2t.size + b2r.size + Bp * Hp)

    out = pl.pallas_call(
        kernel,
        out_shape=jax.ShapeDtypeStruct((Bp, Hp), jnp.float32),
        grid=(Bp // tb,),
        in_specs=[
            pl.BlockSpec((tb, in_len), lambda i: (i, 0)),   # streamed input rows
            pl.BlockSpec(m.shape, lambda i: (0, 0)),        # VMEM-resident weights
            pl.BlockSpec(bc.shape, lambda i: (0, 0)),
            pl.BlockSpec(w1p.shape, lambda i: (0, 0)),
            pl.BlockSpec(b1r.shape, lambda i: (0, 0)),
            pl.BlockSpec(w2t.shape, lambda i: (0, 0)),
            pl.BlockSpec(b2r.shape, lambda i: (0, 0)),
        ],
        out_specs=pl.BlockSpec((tb, Hp), lambda i: (i, 0)),
        compiler_params=pltpu.CompilerParams(
            dimension_semantics=("parallel",),              # v7x: both TCs
            vmem_limit_bytes=32 * 1024 * 1024,
        ),
        cost_estimate=pl.CostEstimate(
            flops=int(flops),
            transcendentals=int(transcendentals),
            bytes_accessed=int(bytes_accessed),
        ),
    )(x2, m, bc, w1p, b1r, w2t, b2r)

    return out[:B, :hidden_dim]


# ---------------------------------------------------------------------------
# Deterministic parameter init (synthetic; mirrors __init__ shapes)
# ---------------------------------------------------------------------------
def init_params(key, obs_shape, hidden_dim, kernel_size=3, stride=1):
    in_channel, width, height = obs_shape
    Cout = hidden_dim // 2
    Ho = width - kernel_size + stride
    Wo = height - kernel_size + stride
    F = Cout * Ho * Wo
    gain = jnp.sqrt(2.0)  # calculate_gain('relu')

    def xavier_uniform(k, shape, fan_in, fan_out, g):
        bound = g * jnp.sqrt(6.0 / (fan_in + fan_out))
        return jax.random.uniform(k, shape, jnp.float32, -bound, bound)

    k1, k2, k3, k4 = jax.random.split(key, 4)
    # Conv2d keeps PyTorch's default init (init_weight only touches Linears).
    fan_in_c = in_channel * kernel_size * kernel_size
    bound_c = 1.0 / jnp.sqrt(fan_in_c)
    w_conv = jax.random.uniform(k1, (Cout, in_channel, kernel_size, kernel_size),
                                jnp.float32, -bound_c, bound_c)
    b_conv = jax.random.uniform(k2, (Cout,), jnp.float32, -bound_c, bound_c)
    # Linears: xavier_uniform(gain=relu), bias = 0  (as in init_weight)
    w1 = xavier_uniform(k3, (hidden_dim, F), F, hidden_dim, gain)
    b1 = jnp.zeros((hidden_dim,), jnp.float32)
    w2 = xavier_uniform(k4, (hidden_dim, hidden_dim), hidden_dim, hidden_dim, gain)
    b2 = jnp.zeros((hidden_dim,), jnp.float32)
    return (w_conv, b_conv, w1, b1, w2, b2)


# ---------------------------------------------------------------------------
# Pure-JAX reference (PyTorch semantics) for validation
# ---------------------------------------------------------------------------
def reference_forward(x, params):
    w_conv, b_conv, w1, b1, w2, b2 = params
    xs = x / 255.0
    conv = lax.conv_general_dilated(
        xs, w_conv, window_strides=(1, 1), padding="VALID",
        dimension_numbers=("NCHW", "OIHW", "NCHW"))
    conv = jnp.tanh(conv + b_conv[None, :, None, None])
    flat = conv.reshape(conv.shape[0], -1)               # PyTorch view: C-major
    h1 = jnp.tanh(flat @ w1.T + b1)
    return jnp.tanh(h1 @ w2.T + b2)


if __name__ == "__main__":
    B, Cin, H, W = 2, 4, 16, 16
    hidden_dim, kernel_size = 32, 3
    obs_shape = (Cin, H, W)  # (in_channel, width, height)

    key = jax.random.PRNGKey(0)
    kx, kp = jax.random.split(key)
    x = jax.random.uniform(kx, (B, Cin, H, W), jnp.float32, 0.0, 255.0)
    params = init_params(kp, obs_shape, hidden_dim, kernel_size)
    packed = pack_params(params, obs_shape, kernel_size)   # one-time packing

    out = cnn_base_forward(x, packed, hidden_dim)
    out = jax.block_until_ready(out)

    ref = reference_forward(x, params)
    assert out.shape == (B, hidden_dim), out.shape
    err = float(jnp.max(jnp.abs(out - ref)))
    assert jnp.allclose(out, ref, atol=1e-4, rtol=1e-4), err

    print("KERNEL_OK")
</pallas_src>

<mosaic_0001>
module attributes {stable_mosaic.version = 11 : i64} {
  func.func @kernel(%arg0: i32, %arg1: memref<8x1024xf32, #tpu.memory_space<vmem>>, %arg2: memref<192x256xf32, #tpu.memory_space<vmem>>, %arg3: memref<1x256xf32, #tpu.memory_space<vmem>>, %arg4: memref<3584x128xf32, #tpu.memory_space<vmem>>, %arg5: memref<1x128xf32, #tpu.memory_space<vmem>>, %arg6: memref<128x128xf32, #tpu.memory_space<vmem>>, %arg7: memref<1x128xf32, #tpu.memory_space<vmem>>, %arg8: memref<8x128xf32, #tpu.memory_space<vmem>>) attributes {dimension_semantics = [#tpu.dimension_semantics<parallel>], iteration_bounds = array<i64: 1>, scalar_prefetch = 0 : i64, scratch_operands = 0 : i64, tpu.core_type = #tpu.core_type<tc>, window_params = [{transform_indices = @transform_0, window_bounds = array<i64: 8, 1024>}, {pipeline_mode = #tpu.pipeline_mode<synchronous>, transform_indices = @transform_1, window_bounds = array<i64: 192, 256>}, {pipeline_mode = #tpu.pipeline_mode<synchronous>, transform_indices = @transform_2, window_bounds = array<i64: 1, 256>}, {pipeline_mode = #tpu.pipeline_mode<synchronous>, transform_indices = @transform_3, window_bounds = array<i64: 3584, 128>}, {pipeline_mode = #tpu.pipeline_mode<synchronous>, transform_indices = @transform_4, window_bounds = array<i64: 1, 128>}, {pipeline_mode = #tpu.pipeline_mode<synchronous>, transform_indices = @transform_5, window_bounds = array<i64: 128, 128>}, {pipeline_mode = #tpu.pipeline_mode<synchronous>, transform_indices = @transform_6, window_bounds = array<i64: 1, 128>}, {transform_indices = @transform_7, window_bounds = array<i64: 8, 128>}]} {
    %c0 = arith.constant 0 : index
    %c0_0 = arith.constant 0 : index
    %0 = vector.load %arg2[%c0, %c0_0] : memref<192x256xf32, #tpu.memory_space<vmem>>, vector<192x256xf32>
    %c0_1 = arith.constant 0 : index
    %c0_2 = arith.constant 0 : index
    %1 = vector.load %arg3[%c0_1, %c0_2] : memref<1x256xf32, #tpu.memory_space<vmem>>, vector<1x256xf32>
    %cst = arith.constant 0.000000e+00 : f32
    %2 = vector.broadcast %cst : f32 to vector<8x128xf32>
    %c0_3 = arith.constant 0 : index
    %c0_4 = arith.constant 0 : index
    %3 = vector.load %arg1[%c0_3, %c0_4] : memref<8x1024xf32, #tpu.memory_space<vmem>>, vector<8x192xf32>
    %cst_5 = arith.constant dense<0.000000e+00> : vector<8x256xf32>
    %4 = tpu.matmul %3, %0, %cst_5 {dimension_numbers = #tpu.dot_dimension_numbers<[1], [0], [0], [1], [0, 0, 1, 1], [], []>} : vector<8x192xf32>, vector<192x256xf32>, vector<8x256xf32> -> vector<8x256xf32>
    %5 = vector.broadcast %1 : vector<1x256xf32> to vector<8x256xf32>
    %6 = arith.addf %4, %5 : vector<8x256xf32>
    %7 = math.tanh %6 : vector<8x256xf32>
    %c0_6 = arith.constant 0 : index
    %c0_7 = arith.constant 0 : index
    %8 = vector.load %arg4[%c0_6, %c0_7] : memref<3584x128xf32, #tpu.memory_space<vmem>>, vector<256x128xf32>
    %cst_8 = arith.constant dense<0.000000e+00> : vector<8x128xf32>
    %9 = tpu.matmul %7, %8, %cst_8 {dimension_numbers = #tpu.dot_dimension_numbers<[1], [0], [0], [1], [0, 0, 1, 1], [], []>} : vector<8x256xf32>, vector<256x128xf32>, vector<8x128xf32> -> vector<8x128xf32>
    %10 = arith.addf %2, %9 : vector<8x128xf32>
    %c0_9 = arith.constant 0 : index
    %c64 = arith.constant 64 : index
    %11 = vector.load %arg1[%c0_9, %c64] : memref<8x1024xf32, #tpu.memory_space<vmem>>, vector<8x192xf32>
    %cst_10 = arith.constant dense<0.000000e+00> : vector<8x256xf32>
    %12 = tpu.matmul %11, %0, %cst_10 {dimension_numbers = #tpu.dot_dimension_numbers<[1], [0], [0], [1], [0, 0, 1, 1], [], []>} : vector<8x192xf32>, vector<192x256xf32>, vector<8x256xf32> -> vector<8x256xf32>
    %13 = vector.broadcast %1 : vector<1x256xf32> to vector<8x256xf32>
    %14 = arith.addf %12, %13 : vector<8x256xf32>
    %15 = math.tanh %14 : vector<8x256xf32>
    %c256 = arith.constant 256 : index
    %c0_11 = arith.constant 0 : index
    %16 = vector.load %arg4[%c256, %c0_11] : memref<3584x128xf32, #tpu.memory_space<vmem>>, vector<256x128xf32>
    %cst_12 = arith.constant dense<0.000000e+00> : vector<8x128xf32>
    %17 = tpu.matmul %15, %16, %cst_12 {dimension_numbers = #tpu.dot_dimension_numbers<[1], [0], [0], [1], [0, 0, 1, 1], [], []>} : vector<8x256xf32>, vector<256x128xf32>, vector<8x128xf32> -> vector<8x128xf32>
    %18 = arith.addf %10, %17 : vector<8x128xf32>
    %c0_13 = arith.constant 0 : index
    %c128 = arith.constant 128 : index
    %19 = vector.load %arg1[%c0_13, %c128] : memref<8x1024xf32, #tpu.memory_space<vmem>>, vector<8x192xf32>
    %cst_14 = arith.constant dense<0.000000e+00> : vector<8x256xf32>
    %20 = tpu.matmul %19, %0, %cst_14 {dimension_numbers = #tpu.dot_dimension_numbers<[1], [0], [0], [1], [0, 0, 1, 1], [], []>} : vector<8x192xf32>, vector<192x256xf32>, vector<8x256xf32> -> vector<8x256xf32>
    %21 = vector.broadcast %1 : vector<1x256xf32> to vector<8x256xf32>
    %22 = arith.addf %20, %21 : vector<8x256xf32>
    %23 = math.tanh %22 : vector<8x256xf32>
    %c512 = arith.constant 512 : index
    %c0_15 = arith.constant 0 : index
    %24 = vector.load %arg4[%c512, %c0_15] : memref<3584x128xf32, #tpu.memory_space<vmem>>, vector<256x128xf32>
    %cst_16 = arith.constant dense<0.000000e+00> : vector<8x128xf32>
    %25 = tpu.matmul %23, %24, %cst_16 {dimension_numbers = #tpu.dot_dimension_numbers<[1], [0], [0], [1], [0, 0, 1, 1], [], []>} : vector<8x256xf32>, vector<256x128xf32>, vector<8x128xf32> -> vector<8x128xf32>
    %26 = arith.addf %18, %25 : vector<8x128xf32>
    %c0_17 = arith.constant 0 : index
    %c192 = arith.constant 192 : index
    %27 = vector.load %arg1[%c0_17, %c192] : memref<8x1024xf32, #tpu.memory_space<vmem>>, vector<8x192xf32>
    %cst_18 = arith.constant dense<0.000000e+00> : vector<8x256xf32>
    %28 = tpu.matmul %27, %0, %cst_18 {dimension_numbers = #tpu.dot_dimension_numbers<[1], [0], [0], [1], [0, 0, 1, 1], [], []>} : vector<8x192xf32>, vector<192x256xf32>, vector<8x256xf32> -> vector<8x256xf32>
    %29 = vector.broadcast %1 : vector<1x256xf32> to vector<8x256xf32>
    %30 = arith.addf %28, %29 : vector<8x256xf32>
    %31 = math.tanh %30 : vector<8x256xf32>
    %c768 = arith.constant 768 : index
    %c0_19 = arith.constant 0 : index
    %32 = vector.load %arg4[%c768, %c0_19] : memref<3584x128xf32, #tpu.memory_space<vmem>>, vector<256x128xf32>
    %cst_20 = arith.constant dense<0.000000e+00> : vector<8x128xf32>
    %33 = tpu.matmul %31, %32, %cst_20 {dimension_numbers = #tpu.dot_dimension_numbers<[1], [0], [0], [1], [0, 0, 1, 1], [], []>} : vector<8x256xf32>, vector<256x128xf32>, vector<8x128xf32> -> vector<8x128xf32>
    %34 = arith.addf %26, %33 : vector<8x128xf32>
    %c0_21 = arith.constant 0 : index
    %c256_22 = arith.constant 256 : index
    %35 = vector.load %arg1[%c0_21, %c256_22] : memref<8x1024xf32, #tpu.memory_space<vmem>>, vector<8x192xf32>
    %cst_23 = arith.constant dense<0.000000e+00> : vector<8x256xf32>
    %36 = tpu.matmul %35, %0, %cst_23 {dimension_numbers = #tpu.dot_dimension_numbers<[1], [0], [0], [1], [0, 0, 1, 1], [], []>} : vector<8x192xf32>, vector<192x256xf32>, vector<8x256xf32> -> vector<8x256xf32>
    %37 = vector.broadcast %1 : vector<1x256xf32> to vector<8x256xf32>
    %38 = arith.addf %36, %37 : vector<8x256xf32>
    %39 = math.tanh %38 : vector<8x256xf32>
    %c1024 = arith.constant 1024 : index
    %c0_24 = arith.constant 0 : index
    %40 = vector.load %arg4[%c1024, %c0_24] : memref<3584x128xf32, #tpu.memory_space<vmem>>, vector<256x128xf32>
    %cst_25 = arith.constant dense<0.000000e+00> : vector<8x128xf32>
    %41 = tpu.matmul %39, %40, %cst_25 {dimension_numbers = #tpu.dot_dimension_numbers<[1], [0], [0], [1], [0, 0, 1, 1], [], []>} : vector<8x256xf32>, vector<256x128xf32>, vector<8x128xf32> -> vector<8x128xf32>
    %42 = arith.addf %34, %41 : vector<8x128xf32>
    %c0_26 = arith.constant 0 : index
    %c320 = arith.constant 320 : index
    %43 = vector.load %arg1[%c0_26, %c320] : memref<8x1024xf32, #tpu.memory_space<vmem>>, vector<8x192xf32>
    %cst_27 = arith.constant dense<0.000000e+00> : vector<8x256xf32>
    %44 = tpu.matmul %43, %0, %cst_27 {dimension_numbers = #tpu.dot_dimension_numbers<[1], [0], [0], [1], [0, 0, 1, 1], [], []>} : vector<8x192xf32>, vector<192x256xf32>, vector<8x256xf32> -> vector<8x256xf32>
    %45 = vector.broadcast %1 : vector<1x256xf32> to vector<8x256xf32>
    %46 = arith.addf %44, %45 : vector<8x256xf32>
    %47 = math.tanh %46 : vector<8x256xf32>
    %c1280 = arith.constant 1280 : index
    %c0_28 = arith.constant 0 : index
    %48 = vector.load %arg4[%c1280, %c0_28] : memref<3584x128xf32, #tpu.memory_space<vmem>>, vector<256x128xf32>
    %cst_29 = arith.constant dense<0.000000e+00> : vector<8x128xf32>
    %49 = tpu.matmul %47, %48, %cst_29 {dimension_numbers = #tpu.dot_dimension_numbers<[1], [0], [0], [1], [0, 0, 1, 1], [], []>} : vector<8x256xf32>, vector<256x128xf32>, vector<8x128xf32> -> vector<8x128xf32>
    %50 = arith.addf %42, %49 : vector<8x128xf32>
    %c0_30 = arith.constant 0 : index
    %c384 = arith.constant 384 : index
    %51 = vector.load %arg1[%c0_30, %c384] : memref<8x1024xf32, #tpu.memory_space<vmem>>, vector<8x192xf32>
    %cst_31 = arith.constant dense<0.000000e+00> : vector<8x256xf32>
    %52 = tpu.matmul %51, %0, %cst_31 {dimension_numbers = #tpu.dot_dimension_numbers<[1], [0], [0], [1], [0, 0, 1, 1], [], []>} : vector<8x192xf32>, vector<192x256xf32>, vector<8x256xf32> -> vector<8x256xf32>
    %53 = vector.broadcast %1 : vector<1x256xf32> to vector<8x256xf32>
    %54 = arith.addf %52, %53 : vector<8x256xf32>
    %55 = math.tanh %54 : vector<8x256xf32>
    %c1536 = arith.constant 1536 : index
    %c0_32 = arith.constant 0 : index
    %56 = vector.load %arg4[%c1536, %c0_32] : memref<3584x128xf32, #tpu.memory_space<vmem>>, vector<256x128xf32>
    %cst_33 = arith.constant dense<0.000000e+00> : vector<8x128xf32>
    %57 = tpu.matmul %55, %56, %cst_33 {dimension_numbers = #tpu.dot_dimension_numbers<[1], [0], [0], [1], [0, 0, 1, 1], [], []>} : vector<8x256xf32>, vector<256x128xf32>, vector<8x128xf32> -> vector<8x128xf32>
    %58 = arith.addf %50, %57 : vector<8x128xf32>
    %c0_34 = arith.constant 0 : index
    %c448 = arith.constant 448 : index
    %59 = vector.load %arg1[%c0_34, %c448] : memref<8x1024xf32, #tpu.memory_space<vmem>>, vector<8x192xf32>
    %cst_35 = arith.constant dense<0.000000e+00> : vector<8x256xf32>
    %60 = tpu.matmul %59, %0, %cst_35 {dimension_numbers = #tpu.dot_dimension_numbers<[1], [0], [0], [1], [0, 0, 1, 1], [], []>} : vector<8x192xf32>, vector<192x256xf32>, vector<8x256xf32> -> vector<8x256xf32>
    %61 = vector.broadcast %1 : vector<1x256xf32> to vector<8x256xf32>
    %62 = arith.addf %60, %61 : vector<8x256xf32>
    %63 = math.tanh %62 : vector<8x256xf32>
    %c1792 = arith.constant 1792 : index
    %c0_36 = arith.constant 0 : index
    %64 = vector.load %arg4[%c1792, %c0_36] : memref<3584x128xf32, #tpu.memory_space<vmem>>, vector<256x128xf32>
    %cst_37 = arith.constant dense<0.000000e+00> : vector<8x128xf32>
    %65 = tpu.matmul %63, %64, %cst_37 {dimension_numbers = #tpu.dot_dimension_numbers<[1], [0], [0], [1], [0, 0, 1, 1], [], []>} : vector<8x256xf32>, vector<256x128xf32>, vector<8x128xf32> -> vector<8x128xf32>
    %66 = arith.addf %58, %65 : vector<8x128xf32>
    %c0_38 = arith.constant 0 : index
    %c512_39 = arith.constant 512 : index
    %67 = vector.load %arg1[%c0_38, %c512_39] : memref<8x1024xf32, #tpu.memory_space<vmem>>, vector<8x192xf32>
    %cst_40 = arith.constant dense<0.000000e+00> : vector<8x256xf32>
    %68 = tpu.matmul %67, %0, %cst_40 {dimension_numbers = #tpu.dot_dimension_numbers<[1], [0], [0], [1], [0, 0, 1, 1], [], []>} : vector<8x192xf32>, vector<192x256xf32>, vector<8x256xf32> -> vector<8x256xf32>
    %69 = vector.broadcast %1 : vector<1x256xf32> to vector<8x256xf32>
    %70 = arith.addf %68, %69 : vector<8x256xf32>
    %71 = math.tanh %70 : vector<8x256xf32>
    %c2048 = arith.constant 2048 : index
    %c0_41 = arith.constant 0 : index
    %72 = vector.load %arg4[%c2048, %c0_41] : memref<3584x128xf32, #tpu.memory_space<vmem>>, vector<256x128xf32>
    %cst_42 = arith.constant dense<0.000000e+00> : vector<8x128xf32>
    %73 = tpu.matmul %71, %72, %cst_42 {dimension_numbers = #tpu.dot_dimension_numbers<[1], [0], [0], [1], [0, 0, 1, 1], [], []>} : vector<8x256xf32>, vector<256x128xf32>, vector<8x128xf32> -> vector<8x128xf32>
    %74 = arith.addf %66, %73 : vector<8x128xf32>
    %c0_43 = arith.constant 0 : index
    %c576 = arith.constant 576 : index
    %75 = vector.load %arg1[%c0_43, %c576] : memref<8x1024xf32, #tpu.memory_space<vmem>>, vector<8x192xf32>
    %cst_44 = arith.constant dense<0.000000e+00> : vector<8x256xf32>
    %76 = tpu.matmul %75, %0, %cst_44 {dimension_numbers = #tpu.dot_dimension_numbers<[1], [0], [0], [1], [0, 0, 1, 1], [], []>} : vector<8x192xf32>, vector<192x256xf32>, vector<8x256xf32> -> vector<8x256xf32>
    %77 = vector.broadcast %1 : vector<1x256xf32> to vector<8x256xf32>
    %78 = arith.addf %76, %77 : vector<8x256xf32>
    %79 = math.tanh %78 : vector<8x256xf32>
    %c2304 = arith.constant 2304 : index
    %c0_45 = arith.constant 0 : index
    %80 = vector.load %arg4[%c2304, %c0_45] : memref<3584x128xf32, #tpu.memory_space<vmem>>, vector<256x128xf32>
    %cst_46 = arith.constant dense<0.000000e+00> : vector<8x128xf32>
    %81 = tpu.matmul %79, %80, %cst_46 {dimension_numbers = #tpu.dot_dimension_numbers<[1], [0], [0], [1], [0, 0, 1, 1], [], []>} : vector<8x256xf32>, vector<256x128xf32>, vector<8x128xf32> -> vector<8x128xf32>
    %82 = arith.addf %74, %81 : vector<8x128xf32>
    %c0_47 = arith.constant 0 : index
    %c640 = arith.constant 640 : index
    %83 = vector.load %arg1[%c0_47, %c640] : memref<8x1024xf32, #tpu.memory_space<vmem>>, vector<8x192xf32>
    %cst_48 = arith.constant dense<0.000000e+00> : vector<8x256xf32>
    %84 = tpu.matmul %83, %0, %cst_48 {dimension_numbers = #tpu.dot_dimension_numbers<[1], [0], [0], [1], [0, 0, 1, 1], [], []>} : vector<8x192xf32>, vector<192x256xf32>, vector<8x256xf32> -> vector<8x256xf32>
    %85 = vector.broadcast %1 : vector<1x256xf32> to vector<8x256xf32>
    %86 = arith.addf %84, %85 : vector<8x256xf32>
    %87 = math.tanh %86 : vector<8x256xf32>
    %c2560 = arith.constant 2560 : index
    %c0_49 = arith.constant 0 : index
    %88 = vector.load %arg4[%c2560, %c0_49] : memref<3584x128xf32, #tpu.memory_space<vmem>>, vector<256x128xf32>
    %cst_50 = arith.constant dense<0.000000e+00> : vector<8x128xf32>
    %89 = tpu.matmul %87, %88, %cst_50 {dimension_numbers = #tpu.dot_dimension_numbers<[1], [0], [0], [1], [0, 0, 1, 1], [], []>} : vector<8x256xf32>, vector<256x128xf32>, vector<8x128xf32> -> vector<8x128xf32>
    %90 = arith.addf %82, %89 : vector<8x128xf32>
    %c0_51 = arith.constant 0 : index
    %c704 = arith.constant 704 : index
    %91 = vector.load %arg1[%c0_51, %c704] : memref<8x1024xf32, #tpu.memory_space<vmem>>, vector<8x192xf32>
    %cst_52 = arith.constant dense<0.000000e+00> : vector<8x256xf32>
    %92 = tpu.matmul %91, %0, %cst_52 {dimension_numbers = #tpu.dot_dimension_numbers<[1], [0], [0], [1], [0, 0, 1, 1], [], []>} : vector<8x192xf32>, vector<192x256xf32>, vector<8x256xf32> -> vector<8x256xf32>
    %93 = vector.broadcast %1 : vector<1x256xf32> to vector<8x256xf32>
    %94 = arith.addf %92, %93 : vector<8x256xf32>
    %95 = math.tanh %94 : vector<8x256xf32>
    %c2816 = arith.constant 2816 : index
    %c0_53 = arith.constant 0 : index
    %96 = vector.load %arg4[%c2816, %c0_53] : memref<3584x128xf32, #tpu.memory_space<vmem>>, vector<256x128xf32>
    %cst_54 = arith.constant dense<0.000000e+00> : vector<8x128xf32>
    %97 = tpu.matmul %95, %96, %cst_54 {dimension_numbers = #tpu.dot_dimension_numbers<[1], [0], [0], [1], [0, 0, 1, 1], [], []>} : vector<8x256xf32>, vector<256x128xf32>, vector<8x128xf32> -> vector<8x128xf32>
    %98 = arith.addf %90, %97 : vector<8x128xf32>
    %c0_55 = arith.constant 0 : index
    %c768_56 = arith.constant 768 : index
    %99 = vector.load %arg1[%c0_55, %c768_56] : memref<8x1024xf32, #tpu.memory_space<vmem>>, vector<8x192xf32>
    %cst_57 = arith.constant dense<0.000000e+00> : vector<8x256xf32>
    %100 = tpu.matmul %99, %0, %cst_57 {dimension_numbers = #tpu.dot_dimension_numbers<[1], [0], [0], [1], [0, 0, 1, 1], [], []>} : vector<8x192xf32>, vector<192x256xf32>, vector<8x256xf32> -> vector<8x256xf32>
    %101 = vector.broadcast %1 : vector<1x256xf32> to vector<8x256xf32>
    %102 = arith.addf %100, %101 : vector<8x256xf32>
    %103 = math.tanh %102 : vector<8x256xf32>
    %c3072 = arith.constant 3072 : index
    %c0_58 = arith.constant 0 : index
    %104 = vector.load %arg4[%c3072, %c0_58] : memref<3584x128xf32, #tpu.memory_space<vmem>>, vector<256x128xf32>
    %cst_59 = arith.constant dense<0.000000e+00> : vector<8x128xf32>
    %105 = tpu.matmul %103, %104, %cst_59 {dimension_numbers = #tpu.dot_dimension_numbers<[1], [0], [0], [1], [0, 0, 1, 1], [], []>} : vector<8x256xf32>, vector<256x128xf32>, vector<8x128xf32> -> vector<8x128xf32>
    %106 = arith.addf %98, %105 : vector<8x128xf32>
    %c0_60 = arith.constant 0 : index
    %c832 = arith.constant 832 : index
    %107 = vector.load %arg1[%c0_60, %c832] : memref<8x1024xf32, #tpu.memory_space<vmem>>, vector<8x192xf32>
    %cst_61 = arith.constant dense<0.000000e+00> : vector<8x256xf32>
    %108 = tpu.matmul %107, %0, %cst_61 {dimension_numbers = #tpu.dot_dimension_numbers<[1], [0], [0], [1], [0, 0, 1, 1], [], []>} : vector<8x192xf32>, vector<192x256xf32>, vector<8x256xf32> -> vector<8x256xf32>
    %109 = vector.broadcast %1 : vector<1x256xf32> to vector<8x256xf32>
    %110 = arith.addf %108, %109 : vector<8x256xf32>
    %111 = math.tanh %110 : vector<8x256xf32>
    %c3328 = arith.constant 3328 : index
    %c0_62 = arith.constant 0 : index
    %112 = vector.load %arg4[%c3328, %c0_62] : memref<3584x128xf32, #tpu.memory_space<vmem>>, vector<256x128xf32>
    %cst_63 = arith.constant dense<0.000000e+00> : vector<8x128xf32>
    %113 = tpu.matmul %111, %112, %cst_63 {dimension_numbers = #tpu.dot_dimension_numbers<[1], [0], [0], [1], [0, 0, 1, 1], [], []>} : vector<8x256xf32>, vector<256x128xf32>, vector<8x128xf32> -> vector<8x128xf32>
    %114 = arith.addf %106, %113 : vector<8x128xf32>
    %c0_64 = arith.constant 0 : index
    %c0_65 = arith.constant 0 : index
    %115 = vector.load %arg5[%c0_64, %c0_65] : memref<1x128xf32, #tpu.memory_space<vmem>>, vector<1x128xf32>
    %116 = vector.broadcast %115 : vector<1x128xf32> to vector<8x128xf32>
    %117 = arith.addf %114, %116 : vector<8x128xf32>
    %118 = math.tanh %117 : vector<8x128xf32>
    %c0_66 = arith.constant 0 : index
    %c0_67 = arith.constant 0 : index
    %119 = vector.load %arg6[%c0_66, %c0_67] : memref<128x128xf32, #tpu.memory_space<vmem>>, vector<128x128xf32>
    %cst_68 = arith.constant dense<0.000000e+00> : vector<8x128xf32>
    %120 = tpu.matmul %118, %119, %cst_68 {dimension_numbers = #tpu.dot_dimension_numbers<[1], [0], [0], [1], [0, 0, 1, 1], [], []>} : vector<8x128xf32>, vector<128x128xf32>, vector<8x128xf32> -> vector<8x128xf32>
    %c0_69 = arith.constant 0 : index
    %c0_70 = arith.constant 0 : index
    %121 = vector.load %arg7[%c0_69, %c0_70] : memref<1x128xf32, #tpu.memory_space<vmem>>, vector<1x128xf32>
    %122 = vector.broadcast %121 : vector<1x128xf32> to vector<8x128xf32>
    %123 = arith.addf %120, %122 : vector<8x128xf32>
    %124 = math.tanh %123 : vector<8x128xf32>
    %c0_71 = arith.constant 0 : index
    %c0_72 = arith.constant 0 : index
    %125 = vector.load %arg8[%c0_71, %c0_72] : memref<8x128xf32, #tpu.memory_space<vmem>>, vector<8x128xf32>
    tpu.vector_store %arg8[%c0_71, %c0_72], %124 {strides = array<i32>} : memref<8x128xf32, #tpu.memory_space<vmem>>, vector<8x128xf32>,
    return
  }
  func.func @transform_0(%arg0: i32) -> (i32, i32) {
    %c0_i32 = arith.constant 0 : i32
    %c0_i32_0 = arith.constant 0 : i32
    return %arg0, %c0_i32 : i32, i32
  }
  func.func @transform_1(%arg0: i32) -> (i32, i32) {
    %c0_i32 = arith.constant 0 : i32
    %c0_i32_0 = arith.constant 0 : i32
    %c0_i32_1 = arith.constant 0 : i32
    return %c0_i32, %c0_i32_0 : i32, i32
  }
  func.func @transform_2(%arg0: i32) -> (i32, i32) {
    %c0_i32 = arith.constant 0 : i32
    %c0_i32_0 = arith.constant 0 : i32
    %c0_i32_1 = arith.constant 0 : i32
    return %c0_i32, %c0_i32_0 : i32, i32
  }
  func.func @transform_3(%arg0: i32) -> (i32, i32) {
    %c0_i32 = arith.constant 0 : i32
    %c0_i32_0 = arith.constant 0 : i32
    %c0_i32_1 = arith.constant 0 : i32
    return %c0_i32, %c0_i32_0 : i32, i32
  }
  func.func @transform_4(%arg0: i32) -> (i32, i32) {
    %c0_i32 = arith.constant 0 : i32
    %c0_i32_0 = arith.constant 0 : i32
    %c0_i32_1 = arith.constant 0 : i32
    return %c0_i32, %c0_i32_0 : i32, i32
  }
  func.func @transform_5(%arg0: i32) -> (i32, i32) {
    %c0_i32 = arith.constant 0 : i32
    %c0_i32_0 = arith.constant 0 : i32
    %c0_i32_1 = arith.constant 0 : i32
    return %c0_i32, %c0_i32_0 : i32, i32
  }
  func.func @transform_6(%arg0: i32) -> (i32, i32) {
    %c0_i32 = arith.constant 0 : i32
    %c0_i32_0 = arith.constant 0 : i32
    %c0_i32_1 = arith.constant 0 : i32
    return %c0_i32, %c0_i32_0 : i32, i32
  }
  func.func @transform_7(%arg0: i32) -> (i32, i32) {
    %c0_i32 = arith.constant 0 : i32
    %c0_i32_0 = arith.constant 0 : i32
    return %arg0, %c0_i32 : i32, i32
  }
}

</mosaic_0001>

<bundles_post_ra>
// kernel: cnn_base_forward.1
= control target key start
LH: loop header
LB: loop body
LE: loop exit
PB: predicated region body
PF: predicated region fallthrough
CT: control target
= control target key end

     0   :  { %12 = vsyncpa [#allocation3], 0  ;;  %s4155_s0 = inlined_call_operand.vmem [shape: f32[8,1024], index: 0, kind: input, shape index: {}]   ;;  %s4156_s1 = inlined_call_operand.hbm [shape: f32[192,256], index: 1, kind: input, shape index: {}]   ;;  %s4157_s2 = inlined_call_operand.hbm [shape: f32[1,256], index: 2, kind: input, shape index: {}]   ;;  %s4158_s3 = inlined_call_operand.hbm [shape: f32[3584,128], index: 3, kind: input, shape index: {}]   ;;  %s4159_s4 = inlined_call_operand.hbm [shape: f32[1,128], index: 4, kind: input, shape index: {}]   ;;  %s4160_s5 = inlined_call_operand.hbm [shape: f32[128,128], index: 5, kind: input, shape index: {}]   ;;  %s4161_s6 = inlined_call_operand.hbm [shape: f32[1,128], index: 6, kind: input, shape index: {}]   ;;  %s4162_s7 = inlined_call_operand.vmem [shape: f32[8,128], index: 7, kind: output, shape index: {}]  }
   0x1   :  { %13 = vsyncpa [#allocation5], 0 }
   0x2   :  { %14 = vsyncpa [#allocation8], 0  ;;  %s36_s26 = sshll.u32 %s4157_s2, 4  ;;  %s37_s26 = int_to_ptr.hbm [resolvable:$true] %s36_s26 }
   0x3   :  { %15 = vsyncpa [#allocation11], 0  ;;  %s2888_s27 = smov [#allocation4]   ;;  %s60_s8 = sshll.u32 %s4159_s4, 4  ;;  %s61_s8 = int_to_ptr.hbm [resolvable:$true] %s60_s8 }
   0x4   :  { %s38_s28 = sshll.u32 %s2888_s27, 4  ;;  %s2889_s9 = smov [#allocation7]   ;;  %s39_s28 = int_to_ptr.vmem [resolvable:$true] %s38_s28 }
   0x5   :  { %41 = dma.hbm_to_vmem [thread:$0]  %s37_s26, 32, %s39_s28, [#allocation5]  }
   0x6   :  { %s62_s10 = sshll.u32 %s2889_s9, 4  ;;  %s22_s13 = sshll.u32 %s4156_s1, 4  ;;  %s63_s10 = int_to_ptr.vmem [resolvable:$true] %s62_s10  ;;  %s23_s13 = int_to_ptr.hbm [resolvable:$true] %s22_s13 }
   0x7   :  { %65 = dma.hbm_to_vmem [thread:$0]  %s61_s8, 16, %s63_s10, [#allocation8]  }
   0x8   :  { %s2890_s2 = smov [#allocation2]   ;;  %s46_s17 = sshll.u32 %s4158_s3, 4  ;;  %s47_s17 = int_to_ptr.hbm [resolvable:$true] %s46_s17 }
   0x9   :  { %s24_s14 = sshll.u32 %s2890_s2, 4  ;;  %s2891_s18 = smov 256   ;;  %s25_s14 = int_to_ptr.vmem [resolvable:$true] %s24_s14 }
   0xa   :  { %s2892_s4 = smov 16   ;;  %s2893_s19 = smov [#allocation6]  }
   0xb   :  { %30 = dma.hbm_to_vmem [thread:$0]  %s23_s13, 6144, %s25_s14, [#allocation3], %s2891_s18, %s2891_s18, %s2892_s4  }
   0xc   :  { %s48_s20 = sshll.u32 %s2893_s19, 4  ;;  %s2894_s21 = smov 128   ;;  %s49_s20 = int_to_ptr.vmem [resolvable:$true] %s48_s20 }
   0xd   :  { %s2895_s22 = smov 8   ;;  %s70_s24 = sshll.u32 %s4160_s5, 4  ;;  %s71_s24 = int_to_ptr.hbm [resolvable:$true] %s70_s24 }
   0xe   :  { %54 = dma.hbm_to_vmem [thread:$0]  %s47_s17, 57344, %s49_s20, [#allocation5], %s2894_s21, %s2894_s21, %s2895_s22  }
   0xf   :  { %s2896_s25 = smov [#allocation9]   ;;  %s84_s28 = sshll.u32 %s4161_s6, 4  ;;  %s85_s28 = int_to_ptr.hbm [resolvable:$true] %s84_s28 }
  0x10   :  { %s72_s26 = sshll.u32 %s2896_s25, 4  ;;  %s2897_s29 = smov [#allocation10]   ;;  %s73_s26 = int_to_ptr.vmem [resolvable:$true] %s72_s26 }
  0x11   :  { %78 = dma.hbm_to_vmem [thread:$0]  %s71_s24, 2048, %s73_s26, [#allocation8], %s2894_s21, %s2894_s21, %s2895_s22  }
  0x12   :  { %s86_s30 = sshll.u32 %s2897_s29, 4  ;;  %s87_s30 = int_to_ptr.vmem [resolvable:$true] %s86_s30 }
  0x13   :  { %89 = dma.hbm_to_vmem [thread:$0]  %s85_s28, 16, %s87_s30, [#allocation11]  }
  0x14   :  { %2880 = dma.done.wait [#allocation3], 6144  }
  0x15   :  { %2881 = vsyncadd [#allocation3], 4294961152 }
  0x16   :  { %2882 = dma.done.wait [#allocation5], 57376  }
  0x17   :  { %2883 = vsyncadd [#allocation5], 4294909920 }
  0x18   :  { %2884 = dma.done.wait [#allocation8], 2064  }
  0x19   :  { %2885 = vsyncadd [#allocation8], 4294965232 }
  0x1a   :  { %2886 = dma.done.wait [#allocation11], 16  }
  0x1b   :  { %2887 = vsyncadd [#allocation11], 4294967280  ;;  %v2960_v0 = vld [vmem:[%s4155_s0 + $0x8] sm:$0xff]  ;;  %v2962_v1 = vld [vmem:[#allocation2 + $0xf0] sm:$0xff]  ;;  %s2898_s6 = smov 64   ;;  %vm170_vm0 = vcmask 523264  }
  0x1c   :  { %291 = vrot.lane.b32.xlu0 %v2960_v0, %s2898_s6  ;;  %174 = vmatpush.msra.mxu0 %v2962_v1  ;;  %v2967_v2 = vld [vmem:[#allocation2 + $0xe0] sm:$0xff]  ;;  %v2969_v3 = vld [vmem:[#allocation2 + $0xd0] sm:$0xff]  ;;  %v2971_v4 = vld [vmem:[#allocation2 + $0xf8] sm:$0xff] }
  0x1d   :  { %v2973_v5 = vld [vmem:[#allocation2 + $0xe8] sm:$0xff]  ;;  %214 = vmatpush.msra.mxu2 %v2971_v4  ;;  %v2977_v6 = vld [vmem:[#allocation2 + $0xc0] sm:$0xff]  ;;  %v2979_v7 = vld [vmem:[#allocation2 + $0xd8] sm:$0xff] }
  0x1e   :  { %175 = vmatpush.msra.mxu0 %v2967_v2  ;;  %v2983_v8 = vld [vmem:[#allocation2 + $0x170] sm:$0xff]  ;;  %v2988_v9 = vld [vmem:[%s4155_s0] sm:$0xff]  ;;  %v2997_v12 = vld [vmem:[#allocation2 + $0xc8] sm:$0xff] }
  0x1f   :  { %215 = vmatpush.msra.mxu2 %v2973_v5  ;;  %v2990_v10 = vld [vmem:[#allocation2 + $0xb0] sm:$0xff]  ;;  %202 = vmatpush.msra.mxu1 %v2983_v8  ;;  %v2993_v11 = vld [vmem:[#allocation2 + $0x160] sm:$0xff]  ;;  %v3007_v15 = vld [vmem:[#allocation2 + $0xb8] sm:$0xff] }
  0x20   :  { %176 = vmatpush.msra.mxu0 %v2969_v3  ;;  %v2999_v13 = vld [vmem:[#allocation2 + $0x150] sm:$0xff]  ;;  %v3001_v14 = vld [vmem:[#allocation2 + $0xa0] sm:$0xff]  ;;  %v3011_v17 = vld [vmem:[#allocation2 + $0x178] sm:$0xff] }
  0x21   :  { %216 = vmatpush.msra.mxu2 %v2979_v7  ;;  %203 = vmatpush.msra.mxu1 %v2993_v11  ;;  %v3009_v16 = vld [vmem:[#allocation2 + $0x140] sm:$0xff]  ;;  %v3013_v18 = vld [vmem:[#allocation2 + $0x90] sm:$0xff]  ;;  %v3017_v19 = vld [vmem:[#allocation2 + $0x168] sm:$0xff] }
  0x22   :  { %177 = vmatpush.msra.mxu0 %v2977_v6  ;;  %v3020_v20 = vld [vmem:[#allocation2 + $0xa8] sm:$0xff]  ;;  %242 = vmatpush.msra.mxu3 %v3011_v17  ;;  %v3023_v21 = vld [vmem:[#allocation2 + $0x130] sm:$0xff]  ;;  %v3025_v22 = vld [vmem:[#allocation2 + $0x80] sm:$0xff] }
  0x23   :  { %217 = vmatpush.msra.mxu2 %v2997_v12  ;;  %204 = vmatpush.msra.mxu1 %v2999_v13  ;;  %v3029_v23 = vld [vmem:[#allocation2 + $0x158] sm:$0xff]  ;;  %v3035_v25 = vld [vmem:[#allocation2 + $0x120] sm:$0xff]  ;;  %v3037_v26 = vld [vmem:[#allocation2 + $0x70] sm:$0xff] }
  0x24   :  { %289 = vrot.lane.b32.xlu0 %v2988_v9, %s2898_s6  ;;  %178 = vmatpush.msra.mxu0 %v2990_v10  ;;  %v3032_v24 = vld [vmem:[#allocation2 + $0x98] sm:$0xff]  ;;  %v3041_v27 = vld [vmem:[#allocation2 + $0x148] sm:$0xff]  ;;  %v3047_v29 = vld [vmem:[#allocation2 + $0x110] sm:$0xff] }
  0x25   :  { %218 = vmatpush.msra.mxu2 %v3007_v15  ;;  %205 = vmatpush.msra.mxu1 %v3009_v16  ;;  %v3044_v28 = vld [vmem:[#allocation2 + $0x88] sm:$0xff]  ;;  %v3049_v30 = vld [vmem:[#allocation2 + $0x60] sm:$0xff]  ;;  %v3053_v31 = vld [vmem:[#allocation2 + $0x138] sm:$0xff] }
  0x26   :  { %179 = vmatpush.msra.mxu0 %v3001_v14  ;;  %243 = vmatpush.msra.mxu3 %v3017_v19  ;;  %v3056_v32 = vld [vmem:[#allocation2 + $0x78] sm:$0xff]  ;;  %v3059_v33 = vld [vmem:[#allocation2 + $0x100] sm:$0xff]  ;;  %v3061_v34 = vld [vmem:[#allocation2 + $0x50] sm:$0xff] }
  0x27   :  { %219 = vmatpush.msra.mxu2 %v3020_v20  ;;  %206 = vmatpush.msra.mxu1 %v3023_v21  ;;  %v3066_v35 = vld [vmem:[#allocation2 + $0x68] sm:$0xff]  ;;  %v3071_v37 = vld [vmem:[#allocation2 + $0x40] sm:$0xff]  ;;  %v3076_v38 = vld [vmem:[#allocation2 + $0x58] sm:$0xff] }
  0x28   :  { %180 = vmatpush.msra.mxu0 %v3013_v18  ;;  %244 = vmatpush.msra.mxu3 %v3029_v23  ;;  %v3069_v36 = vld [vmem:[#allocation2 + $0x128] sm:$0xff]  ;;  %v3079_v39 = vld [vmem:[#allocation2 + $0x118] sm:$0xff]  ;;  %v3081_v40 = vld [vmem:[#allocation2 + $0x30] sm:$0xff] }
  0x29   :  { %220 = vmatpush.msra.mxu2 %v3032_v24  ;;  %207 = vmatpush.msra.mxu1 %v3035_v25  ;;  %v3086_v41 = vld [vmem:[#allocation2 + $0x48] sm:$0xff]  ;;  %v3091_v43 = vld [vmem:[#allocation2 + $0x20] sm:$0xff]  ;;  %v3096_v44 = vld [vmem:[#allocation2 + $0x38] sm:$0xff] }
  0x2a   :  { %181 = vmatpush.msra.mxu0 %v3025_v22  ;;  %245 = vmatpush.msra.mxu3 %v3041_v27  ;;  %v3089_v42 = vld [vmem:[#allocation2 + $0x108] sm:$0xff]  ;;  %v3099_v45 = vld [vmem:[#allocation2 + $0x10] sm:$0xff]  ;;  %v3107_v47 = vld [vmem:[#allocation2] sm:$0xff] }
  0x2b   :  { %221 = vmatpush.msra.mxu2 %v3044_v28  ;;  %208 = vmatpush.msra.mxu1 %v3047_v29  ;;  %4187 = vst [vmem:[#allocation16_spill] sm:$0xff] %v3089_v42  ;;  %v3104_v46 = vld [vmem:[#allocation2 + $0x28] sm:$0xff]  ;;  %v3112_v48 = vld [vmem:[#allocation2 + $0x18] sm:$0xff] }
  0x2c   :  { %182 = vmatpush.msra.mxu0 %v3037_v26  ;;  %246 = vmatpush.msra.mxu3 %v3053_v31  ;;  %v3118_v49 = vld [vmem:[#allocation2 + $0x8] sm:$0xff]  ;;  %v271_v50 = vld [vmem:[#allocation6 + $0x78] sm:$0xff]  ;;  %v270_v51 = vld [vmem:[#allocation6 + $0x70] sm:$0xff] }
  0x2d   :  { %222 = vmatpush.msra.mxu2 %v3056_v32  ;;  %209 = vmatpush.msra.mxu1 %v3059_v33  ;;  %v394_v52 = vld [vmem:[#allocation6 + $0x178] sm:$0xff]  ;;  %v393_v53 = vld [vmem:[#allocation6 + $0x170] sm:$0xff]  ;;  %v269_v54 = vld [vmem:[#allocation6 + $0x68] sm:$0xff] }
  0x2e   :  { %183 = vmatpush.msra.mxu0 %v3049_v30  ;;  %247 = vmatpush.msra.mxu3 %v3069_v36  ;;  %v392_v55 = vld [vmem:[#allocation6 + $0x168] sm:$0xff]  ;;  %v268_v56 = vld [vmem:[#allocation6 + $0x60] sm:$0xff]  ;;  %v267_v58 = vld [vmem:[#allocation6 + $0x58] sm:$0xff] }
  0x2f   :  { %297 = vmatpush.msrb.mxu1 %v2962_v1  ;;  %223 = vmatpush.msra.mxu2 %v3066_v35  ;;  %v391_v57 = vld [vmem:[#allocation6 + $0x160] sm:$0xff]  ;;  %v287_v59 = vld [vmem:[#allocation6 + $0xf8] sm:$0xff]  ;;  %v286_v61 = vld [vmem:[#allocation6 + $0xf0] sm:$0xff] }
  0x30   :  { %184 = vmatpush.msra.mxu0 %v3061_v34  ;;  %248 = vmatpush.msra.mxu3 %v3079_v39  ;;  %v390_v60 = vld [vmem:[#allocation6 + $0x158] sm:$0xff]  ;;  %v266_v62 = vld [vmem:[#allocation6 + $0x50] sm:$0xff]  ;;  %v285_v63 = vld [vmem:[#allocation6 + $0xe8] sm:$0xff] }
  0x31   :  { %298 = vmatpush.msrb.mxu1 %v2967_v2  ;;  %224 = vmatpush.msra.mxu2 %v3076_v38 }
  0x32   :  { %185 = vmatpush.msra.mxu0 %v3071_v37  ;;  %249 = vmatpush.msra.mxu3 %v3089_v42 }
  0x33   :  { %299 = vmatpush.msrb.mxu1 %v2969_v3  ;;  %225 = vmatpush.msra.mxu2 %v3086_v41 }
  0x34   :  { %186 = vmatpush.msra.mxu0 %v3081_v40  ;;  %325 = vmatpush.msrb.mxu3 %v2983_v8 }
  0x35   :  { %300 = vmatpush.msrb.mxu1 %v2977_v6  ;;  %226 = vmatpush.msra.mxu2 %v3096_v44 }
  0x36   :  { %187 = vmatpush.msra.mxu0 %v3091_v43  ;;  %326 = vmatpush.msrb.mxu3 %v2993_v11 }
  0x37   :  { %301 = vmatpush.msrb.mxu1 %v2990_v10  ;;  %227 = vmatpush.msra.mxu2 %v3104_v46 }
  0x38   :  { %188 = vmatpush.msra.mxu0 %v3099_v45  ;;  %327 = vmatpush.msrb.mxu3 %v2999_v13 }
  0x39   :  { %302 = vmatpush.msrb.mxu1 %v3001_v14  ;;  %228 = vmatpush.msra.mxu2 %v3112_v48 }
  0x3a   :  { %189 = vmatpush.msra.mxu0 %v3107_v47  ;;  %328 = vmatpush.msrb.mxu3 %v3009_v16 }
  0x3b   :  { %303 = vmatpush.msrb.mxu1 %v3013_v18  ;;  %229 = vmatpush.msra.mxu2 %v3118_v49 }
  0x3c   :  { %337 = vmatpush.msrb.mxu0 %v2971_v4  ;;  %230 = vmatmul.f32.vlgmr.msra.gmra.mxu2 %v2988_v9 }
  0x3d   :  { %365 = vmatpush.msrb.mxu2 %v3011_v17  ;;  %2492 = vmatmul.msk.f32.vlgmr.msra.gmra.mxu3 %vm170_vm0, %v2960_v0 }
  0x3e   :  { %338 = vmatpush.msrb.mxu0 %v2973_v5  ;;  %304 = vmatpush.msrb.mxu1 %v3025_v22 }
  0x3f   :  { %366 = vmatpush.msrb.mxu2 %v3017_v19  ;;  %329 = vmatpush.msrb.mxu3 %v3023_v21 }
  0x40   :  { %339 = vmatpush.msrb.mxu0 %v2979_v7  ;;  %305 = vmatpush.msrb.mxu1 %v3037_v26 }
  0x41   :  { %367 = vmatpush.msrb.mxu2 %v3029_v23  ;;  %330 = vmatpush.msrb.mxu3 %v3035_v25 }
  0x42   :  { %340 = vmatpush.msrb.mxu0 %v2997_v12  ;;  %306 = vmatpush.msrb.mxu1 %v3049_v30 }
  0x43   :  { %368 = vmatpush.msrb.mxu2 %v3041_v27  ;;  %331 = vmatpush.msrb.mxu3 %v3047_v29 }
  0x44   :  { %341 = vmatpush.msrb.mxu0 %v3007_v15  ;;  %307 = vmatpush.msrb.mxu1 %v3061_v34 }
  0x45   :  { %369 = vmatpush.msrb.mxu2 %v3053_v31  ;;  %190 = vmatmul.f32.vlgmr.msra.gmra.mxu0 %v2988_v9  ;;  %v389_v9 = vld [vmem:[#allocation6 + $0x150] sm:$0xff] }
  0x46   :  { %342 = vmatpush.msrb.mxu0 %v3020_v20  ;;  %332 = vmatpush.msrb.mxu3 %v3059_v33 }
  0x47   :  { %370 = vmatpush.msrb.mxu2 %v3069_v36  ;;  %308 = vmatpush.msrb.mxu1 %v3071_v37 }
  0x48   :  { %343 = vmatpush.msrb.mxu0 %v3032_v24  ;;  %2491 = vmatmul.msk.f32.vlgmr.msra.gmra.mxu1 %vm170_vm0, %v2960_v0 }
  0x49   :  { %371 = vmatpush.msrb.mxu2 %v3079_v39  ;;  %309 = vmatpush.msrb.mxu1 %v3081_v40 }
  0x4a   :  { %344 = vmatpush.msrb.mxu0 %v3044_v28  ;;  %411 = vmatpush.msra.mxu3 %v394_v52  ;;  %v410_v52 = vld [vmem:[#allocation6 + $0x1f8] sm:$0xff] }
  0x4b   :  { %372 = vmatpush.msrb.mxu2 %v3089_v42  ;;  %310 = vmatpush.msrb.mxu1 %v3091_v43  ;;  %v263_v42 = vld [vmem:[#allocation6 + $0x38] sm:$0xff] }
  0x4c   :  { %345 = vmatpush.msrb.mxu0 %v3056_v32  ;;  %412 = vmatpush.msra.mxu3 %v393_v53  ;;  %v388_v53 = vld [vmem:[#allocation6 + $0x148] sm:$0xff] }
  0x4d   :  { %311 = vmatpush.msrb.mxu1 %v3099_v45  ;;  %451 = vmatpush.msra.mxu2 %v271_v50  ;;  %v265_v50 = vld [vmem:[#allocation6 + $0x48] sm:$0xff] }
  0x4e   :  { %346 = vmatpush.msrb.mxu0 %v3066_v35  ;;  %413 = vmatpush.msra.mxu3 %v392_v55  ;;  %v264_v55 = vld [vmem:[#allocation6 + $0x40] sm:$0xff] }
  0x4f   :  { %312 = vmatpush.msrb.mxu1 %v3107_v47  ;;  %452 = vmatpush.msra.mxu2 %v270_v51  ;;  %v284_v51 = vld [vmem:[#allocation6 + $0xe0] sm:$0xff] }
  0x50   :  { %347 = vmatpush.msrb.mxu0 %v3076_v38  ;;  %414 = vmatpush.msra.mxu3 %v391_v57  ;;  %v408_v57 = vld [vmem:[#allocation6 + $0x1e8] sm:$0xff] }
  0x51   :  { %453 = vmatpush.msra.mxu2 %v269_v54  ;;  %v409_v54 = vld [vmem:[#allocation6 + $0x1f0] sm:$0xff]  ;;  %431 = vmatpush.msra.mxu1 %v410_v52  ;;  %v261_v52 = vld [vmem:[#allocation6 + $0x28] sm:$0xff] }
  0x52   :  { %348 = vmatpush.msrb.mxu0 %v3086_v41  ;;  %415 = vmatpush.msra.mxu3 %v390_v60  ;;  %v386_v60 = vld [vmem:[#allocation6 + $0x138] sm:$0xff] }
  0x53   :  { %454 = vmatpush.msra.mxu2 %v268_v56  ;;  %v283_v56 = vld [vmem:[#allocation6 + $0xd8] sm:$0xff]  ;;  %432 = vmatpush.msra.mxu1 %v409_v54  ;;  %v383_v54 = vld [vmem:[#allocation6 + $0x120] sm:$0xff] }
  0x54   :  { %349 = vmatpush.msrb.mxu0 %v3096_v44  ;;  %416 = vmatpush.msra.mxu3 %v389_v9  ;;  %v385_v9 = vld [vmem:[#allocation6 + $0x130] sm:$0xff] }
  0x55   :  { %455 = vmatpush.msra.mxu2 %v267_v58  ;;  %v282_v58 = vld [vmem:[#allocation6 + $0xd0] sm:$0xff]  ;;  %433 = vmatpush.msra.mxu1 %v408_v57 }
  0x56   :  { %350 = vmatpush.msrb.mxu0 %v3104_v46  ;;  %417 = vmatpush.msra.mxu3 %v388_v53  ;;  %v260_v53 = vld [vmem:[#allocation6 + $0x20] sm:$0xff]  ;;  %v381_v57 = vld [vmem:[#allocation6 + $0x110] sm:$0xff] }
  0x57   :  { %456 = vmatpush.msra.mxu2 %v266_v62  ;;  %v262_v62 = vld [vmem:[#allocation6 + $0x30] sm:$0xff] }
  0x58   :  { %351 = vmatpush.msrb.mxu0 %v3112_v48 }
  0x59   :  { %457 = vmatpush.msra.mxu2 %v265_v50  ;;  %v280_v50 = vld [vmem:[#allocation6 + $0xc0] sm:$0xff] }
  0x5a   :  { %352 = vmatpush.msrb.mxu0 %v3118_v49 }
  0x5b   :  { %458 = vmatpush.msra.mxu2 %v264_v55 }
  0x5c   :  { %471 = vmatpush.msra.mxu0 %v287_v59  ;;  %v387_v59 = vld [vmem:[#allocation6 + $0x140] sm:$0xff] }
  0x5d   :  { %418 = vmatpush.msra.mxu3 %v387_v59  ;;  %459 = vmatpush.msra.mxu2 %v263_v42  ;;  %v259_v42 = vld [vmem:[#allocation6 + $0x18] sm:$0xff]  ;;  %v258_v59 = vld [vmem:[#allocation6 + $0x10] sm:$0xff] }
  0x5e   :  { %472 = vmatpush.msra.mxu0 %v286_v61  ;;  %v407_v61 = vld [vmem:[#allocation6 + $0x1e0] sm:$0xff] }
  0x5f   :  { %419 = vmatpush.msra.mxu3 %v386_v60  ;;  %434 = vmatpush.msra.mxu1 %v407_v61  ;;  %v380_v60 = vld [vmem:[#allocation6 + $0x108] sm:$0xff] }
  0x60   :  { %473 = vmatpush.msra.mxu0 %v285_v63  ;;  %v281_v63 = vld [vmem:[#allocation6 + $0xc8] sm:$0xff]  ;;  %460 = vmatpush.msra.mxu2 %v262_v62  ;;  %v256_v62 = vld [vmem:[#allocation6] sm:$0xff] }
  0x61   :  { %420 = vmatpush.msra.mxu3 %v385_v9 }
  0x62   :  { %474 = vmatpush.msra.mxu0 %v284_v51  ;;  %v384_v51 = vld [vmem:[#allocation6 + $0x128] sm:$0xff]  ;;  %461 = vmatpush.msra.mxu2 %v261_v52  ;;  %v406_v52 = vld [vmem:[#allocation6 + $0x1d8] sm:$0xff] }
  0x63   :  { %421 = vmatpush.msra.mxu3 %v384_v51  ;;  %v405_v51 = vld [vmem:[#allocation6 + $0x1d0] sm:$0xff]  ;;  %435 = vmatpush.msra.mxu1 %v406_v52 }
  0x64   :  { %475 = vmatpush.msra.mxu0 %v283_v56  ;;  %v382_v56 = vld [vmem:[#allocation6 + $0x118] sm:$0xff]  ;;  %462 = vmatpush.msra.mxu2 %v260_v53  ;;  %v278_v53 = vld [vmem:[#allocation6 + $0xb0] sm:$0xff] }
  0x65   :  { %422 = vmatpush.msra.mxu3 %v383_v54  ;;  %436 = vmatpush.msra.mxu1 %v405_v51  ;;  %v404_v54 = vld [vmem:[#allocation6 + $0x1c8] sm:$0xff] }
  0x66   :  { %476 = vmatpush.msra.mxu0 %v282_v58  ;;  %463 = vmatpush.msra.mxu2 %v259_v42  ;;  %v257_v58 = vld [vmem:[#allocation6 + $0x8] sm:$0xff]  ;;  %v403_v42 = vld [vmem:[#allocation6 + $0x1c0] sm:$0xff] }
  0x67   :  { %423 = vmatpush.msra.mxu3 %v382_v56  ;;  %437 = vmatpush.msra.mxu1 %v404_v54  ;;  %v276_v56 = vld [vmem:[#allocation6 + $0xa0] sm:$0xff] }
  0x68   :  { %477 = vmatpush.msra.mxu0 %v281_v63  ;;  %464 = vmatpush.msra.mxu2 %v258_v59  ;;  %v379_v63 = vld [vmem:[#allocation6 + $0x100] sm:$0xff]  ;;  %v162_v59 = vld [vmem:[#allocation4] sm:$0x3] }
  0x69   :  { %424 = vmatpush.msra.mxu3 %v381_v57  ;;  %438 = vmatpush.msra.mxu1 %v403_v42  ;;  %v3204_v57 = vperm.slane %v162_v59, 0  ;;  %v4188_v54 = vld [vmem:[#allocation16_spill] sm:$0xff]  ;;  %v275_v42 = vld [vmem:[#allocation6 + $0x98] sm:$0xff] }
  0x6a   :  { %478 = vmatpush.msra.mxu0 %v280_v50  ;;  %465 = vmatpush.msra.mxu2 %v257_v58  ;;  %v279_v50 = vld [vmem:[#allocation6 + $0xb8] sm:$0xff] }
  0x6b   :  { %425 = vmatpush.msra.mxu3 %v380_v60 }
  0x6c   :  { %466 = vmatpush.msra.mxu2 %v256_v62  ;;  %479 = vmatpush.msra.mxu0 %v279_v50 }
  0x6d   :  { %426 = vmatpush.msra.mxu3 %v379_v63 }
  0x6e   :  { %480 = vmatpush.msra.mxu0 %v278_v53 }
  0x8e   :  { %v292_v55 = vpop.permute.xlu0 %291 }
  0x8f   :  { %2493 = vmatmul.msk.f32.vlgmr.msrb.gmra.mxu3 %vm170_vm0, %v292_v55  ;;  %2494 = vmatmul.msk.f32.vlgmr.msrb.gmra.mxu2 %vm170_vm0, %v292_v55 }
  0x90   :  { %536 = vmatpush.msrb.mxu2 %v2971_v4  ;;  %496 = vmatpush.msrb.mxu3 %v2962_v1 }
  0x92   :  { %537 = vmatpush.msrb.mxu2 %v2973_v5  ;;  %497 = vmatpush.msrb.mxu3 %v2967_v2 }
  0x94   :  { %538 = vmatpush.msrb.mxu2 %v2979_v7  ;;  %498 = vmatpush.msrb.mxu3 %v2969_v3 }
  0x96   :  { %v290_v61 = vpop.permute.xlu0 %289  ;;  %539 = vmatpush.msrb.mxu2 %v2997_v12  ;;  %499 = vmatpush.msrb.mxu3 %v2977_v6 }
  0x97   :  { %v293_v9 = vsel %vm170_vm0, %v290_v61, %v292_v55  ;;  %v277_v55 = vld [vmem:[#allocation6 + $0xa8] sm:$0xff] }
  0x98   :  { %313 = vmatmul.f32.vlgmr.msrb.gmra.mxu1 %v293_v9  ;;  %353 = vmatmul.f32.vlgmr.msrb.gmra.mxu0 %v293_v9  ;;  %v3218_v9 = vperm.slane %v162_v59, 1  ;;  %v274_v59 = vld [vmem:[#allocation6 + $0x90] sm:$0xff] }
  0x99   :  { %540 = vmatpush.msrb.mxu2 %v3007_v15  ;;  %500 = vmatpush.msrb.mxu3 %v2990_v10 }
  0x9a   :  { %481 = vmatpush.msra.mxu0 %v277_v55  ;;  %v402_v55 = vld [vmem:[#allocation6 + $0x1b8] sm:$0xff] }
  0x9b   :  { %541 = vmatpush.msrb.mxu2 %v3020_v20  ;;  %501 = vmatpush.msrb.mxu3 %v3001_v14 }
  0x9c   :  { %482 = vmatpush.msra.mxu0 %v276_v56  ;;  %439 = vmatpush.msra.mxu1 %v402_v55  ;;  %v401_v56 = vld [vmem:[#allocation6 + $0x1b0] sm:$0xff]  ;;  %v590_v55 = vld [vmem:[#allocation6 + $0x260] sm:$0xff] }
  0x9d   :  { %542 = vmatpush.msrb.mxu2 %v3032_v24  ;;  %502 = vmatpush.msrb.mxu3 %v3013_v18 }
  0x9e   :  { %483 = vmatpush.msra.mxu0 %v275_v42  ;;  %440 = vmatpush.msra.mxu1 %v401_v56  ;;  %v589_v42 = vld [vmem:[#allocation6 + $0x258] sm:$0xff]  ;;  %v588_v56 = vld [vmem:[#allocation6 + $0x250] sm:$0xff] }
  0x9f   :  { %543 = vmatpush.msrb.mxu2 %v3044_v28  ;;  %503 = vmatpush.msrb.mxu3 %v3025_v22 }
  0xa0   :  { %484 = vmatpush.msra.mxu0 %v274_v59  ;;  %v587_v59 = vld [vmem:[#allocation6 + $0x248] sm:$0xff] }
  0xa1   :  { %544 = vmatpush.msrb.mxu2 %v3056_v32  ;;  %504 = vmatpush.msrb.mxu3 %v3037_v26 }
  0xa3   :  { %545 = vmatpush.msrb.mxu2 %v3066_v35  ;;  %505 = vmatpush.msrb.mxu3 %v3049_v30 }
  0xa5   :  { %546 = vmatpush.msrb.mxu2 %v3076_v38  ;;  %506 = vmatpush.msrb.mxu3 %v3061_v34 }
  0xa7   :  { %547 = vmatpush.msrb.mxu2 %v3086_v41  ;;  %507 = vmatpush.msrb.mxu3 %v3071_v37 }
  0xa9   :  { %548 = vmatpush.msrb.mxu2 %v3096_v44  ;;  %508 = vmatpush.msrb.mxu3 %v3081_v40 }
  0xab   :  { %549 = vmatpush.msrb.mxu2 %v3104_v46  ;;  %509 = vmatpush.msrb.mxu3 %v3091_v43 }
  0xad   :  { %550 = vmatpush.msrb.mxu2 %v3112_v48  ;;  %510 = vmatpush.msrb.mxu3 %v3099_v45 }
  0xaf   :  { %551 = vmatpush.msrb.mxu2 %v3118_v49  ;;  %511 = vmatpush.msrb.mxu3 %v3107_v47 }
  0xbf   :  { %v231_v52 = vpop.f32.mrf.mxu2 }
  0xc0   :  { %v232_v50 = vadd.f32 %v231_v52, %v3218_v9  ;;  %v251_v51 = vpop.f32.mrf.mxu3  ;;  %v398_v52 = vld [vmem:[#allocation6 + $0x198] sm:$0xff] }
  0xc2   :  { %v191_v58 = vpop.f32.mrf.mxu0  ;;  %v252_v53 = vadd.f32 %v251_v51, %v232_v50  ;;  %v397_v50 = vld [vmem:[#allocation6 + $0x190] sm:$0xff]  ;;  %v396_v51 = vld [vmem:[#allocation6 + $0x188] sm:$0xff] }
  0xc3   :  { %v192_v60 = vadd.f32 %v191_v58, %v3204_v57  ;;  %v400_v58 = vld [vmem:[#allocation6 + $0x1a8] sm:$0xff] }
  0xc4   :  { %441 = vmatpush.msra.mxu1 %v400_v58  ;;  %v586_v58 = vld [vmem:[#allocation6 + $0x240] sm:$0xff] }
  0xc5   :  { %v211_v61 = vpop.f32.mrf.mxu1 }
  0xc6   :  { %v212_v62 = vadd.f32 %v211_v61, %v192_v60  ;;  %v273_v60 = vld [vmem:[#allocation6 + $0x88] sm:$0xff] }
  0xc7   :  { %485 = vmatpush.msra.mxu0 %v273_v60  ;;  %v585_v60 = vld [vmem:[#allocation6 + $0x238] sm:$0xff] }
  0xc8   :  { %2532 = vtanh.f32 %v212_v62  ;;  %v399_v62 = vld [vmem:[#allocation6 + $0x1a0] sm:$0xff] }
  0xc9   :  { %2534 = vtanh.f32 %v252_v53  ;;  %442 = vmatpush.msra.mxu1 %v399_v62  ;;  %v395_v53 = vld [vmem:[#allocation6 + $0x180] sm:$0xff]  ;;  %v583_v62 = vld [vmem:[#allocation6 + $0x228] sm:$0xff] }
  0xcb   :  { %443 = vmatpush.msra.mxu1 %v398_v52  ;;  %v606_v52 = vld [vmem:[#allocation6 + $0x2e0] sm:$0xff] }
  0xcd   :  { %444 = vmatpush.msra.mxu1 %v397_v50  ;;  %v581_v50 = vld [vmem:[#allocation6 + $0x218] sm:$0xff] }
  0xce   :  { %v2533_v63 = vpop.eup %2532 }
  0xcf   :  { %467 = vmatmul.f32.vlgmr.msra.gmra.mxu2 %v2533_v63  ;;  %v2535_v61 = vpop.eup %2534  ;;  %v272_v63 = vld [vmem:[#allocation6 + $0x80] sm:$0xff]  ;;  %445 = vmatpush.msra.mxu1 %v396_v51  ;;  %v605_v51 = vld [vmem:[#allocation6 + $0x2d8] sm:$0xff] }
  0xd0   :  { %688 = vmatpush.msra.mxu2 %v2983_v8  ;;  %486 = vmatpush.msra.mxu0 %v272_v63  ;;  %v607_v63 = vld [vmem:[#allocation6 + $0x2e8] sm:$0xff] }
  0xd1   :  { %487 = vmatmul.f32.vlgmr.msra.gmra.mxu0 %v2535_v61  ;;  %446 = vmatpush.msra.mxu1 %v395_v53  ;;  %v584_v61 = vld [vmem:[#allocation6 + $0x230] sm:$0xff] }
  0xd2   :  { %689 = vmatpush.msra.mxu2 %v2993_v11  ;;  %564 = vmatpush.msrb.mxu0 %v3011_v17  ;;  %v580_v53 = vld [vmem:[#allocation6 + $0x210] sm:$0xff] }
  0xd3   :  { %524 = vmatpush.msrb.mxu1 %v2983_v8 }
  0xd4   :  { %690 = vmatpush.msra.mxu2 %v2999_v13  ;;  %565 = vmatpush.msrb.mxu0 %v3017_v19 }
  0xd5   :  { %525 = vmatpush.msrb.mxu1 %v2993_v11 }
  0xd6   :  { %691 = vmatpush.msra.mxu2 %v3009_v16  ;;  %566 = vmatpush.msrb.mxu0 %v3029_v23 }
  0xd7   :  { %552 = vmatmul.f32.vlgmr.msrb.gmra.mxu2 %v2960_v0  ;;  %526 = vmatpush.msrb.mxu1 %v2999_v13 }
  0xd8   :  { %692 = vmatpush.msra.mxu2 %v3023_v21  ;;  %567 = vmatpush.msrb.mxu0 %v3041_v27 }
  0xd9   :  { %527 = vmatpush.msrb.mxu1 %v3009_v16 }
  0xda   :  { %693 = vmatpush.msra.mxu2 %v3035_v25  ;;  %568 = vmatpush.msrb.mxu0 %v3053_v31 }
  0xdb   :  { %528 = vmatpush.msrb.mxu1 %v3023_v21 }
  0xdc   :  { %694 = vmatpush.msra.mxu2 %v3047_v29  ;;  %569 = vmatpush.msrb.mxu0 %v3069_v36 }
  0xdd   :  { %529 = vmatpush.msrb.mxu1 %v3035_v25 }
  0xde   :  { %695 = vmatpush.msra.mxu2 %v3059_v33  ;;  %570 = vmatpush.msrb.mxu0 %v3079_v39 }
  0xdf   :  { %530 = vmatpush.msrb.mxu1 %v3047_v29 }
  0xe0   :  { %728 = vmatpush.msrb.mxu2 %v3011_v17  ;;  %571 = vmatpush.msrb.mxu0 %v4188_v54  ;;  %v3242_v17 = vld [vmem:[%s4155_s0 + $0x10] sm:$0xff] }
  0xe1   :  { %2496 = vmatmul.msk.f32.vlgmr.msrb.gmra.mxu0 %vm170_vm0, %v3242_v17  ;;  %654 = vrot.lane.b32.xlu1 %v3242_v17, %s2898_s6 }
  0xe2   :  { %729 = vmatpush.msrb.mxu2 %v3017_v19  ;;  %660 = vmatpush.msra.mxu0 %v2962_v1 }
  0xe3   :  { %531 = vmatpush.msrb.mxu1 %v3059_v33 }
  0xe4   :  { %730 = vmatpush.msrb.mxu2 %v3029_v23  ;;  %661 = vmatpush.msra.mxu0 %v2967_v2 }
  0xe6   :  { %731 = vmatpush.msrb.mxu2 %v3041_v27  ;;  %662 = vmatpush.msra.mxu0 %v2969_v3  ;;  %v609_v27 = vld [vmem:[#allocation6 + $0x2f8] sm:$0xff] }
  0xe8   :  { %732 = vmatpush.msrb.mxu2 %v3053_v31  ;;  %663 = vmatpush.msra.mxu0 %v2977_v6  ;;  %v593_v31 = vld [vmem:[#allocation6 + $0x278] sm:$0xff] }
  0xe9   :  { %652 = vrot.lane.b32.xlu1 %v2960_v0, %s2898_s6 }
  0xea   :  { %733 = vmatpush.msrb.mxu2 %v3069_v36  ;;  %664 = vmatpush.msra.mxu0 %v2990_v10  ;;  %v608_v36 = vld [vmem:[#allocation6 + $0x2f0] sm:$0xff] }
  0xec   :  { %734 = vmatpush.msrb.mxu2 %v3079_v39  ;;  %665 = vmatpush.msra.mxu0 %v3001_v14  ;;  %v592_v39 = vld [vmem:[#allocation6 + $0x270] sm:$0xff] }
  0xee   :  { %735 = vmatpush.msrb.mxu2 %v4188_v54  ;;  %666 = vmatpush.msra.mxu0 %v3013_v18  ;;  %v591_v54 = vld [vmem:[#allocation6 + $0x268] sm:$0xff] }
  0xf0   :  { %667 = vmatpush.msra.mxu0 %v3025_v22 }
  0xf2   :  { %668 = vmatpush.msra.mxu0 %v3037_v26 }
  0xf4   :  { %669 = vmatpush.msra.mxu0 %v3049_v30 }
  0xf6   :  { %670 = vmatpush.msra.mxu0 %v3061_v34 }
  0xf8   :  { %671 = vmatpush.msra.mxu0 %v3071_v37 }
  0xfa   :  { %672 = vmatpush.msra.mxu0 %v3081_v40 }
  0xfc   :  { %673 = vmatpush.msra.mxu0 %v3091_v43 }
  0xfe   :  { %674 = vmatpush.msra.mxu0 %v3099_v45 }
 0x100   :  { %675 = vmatpush.msra.mxu0 %v3107_v47 }
 0x112   :  { %v334_v19 = vpop.f32.mrf.mxu3  ;;  %v374_v21 = vpop.f32.mrf.mxu2 }
 0x115   :  { %v314_v8 = vpop.f32.mrf.mxu1  ;;  %v354_v11 = vpop.f32.mrf.mxu0 }
 0x116   :  { %v315_v13 = vadd.f32 %v314_v8, %v3204_v57  ;;  %v355_v16 = vadd.f32 %v354_v11, %v3218_v9  ;;  %v604_v8 = vld [vmem:[#allocation6 + $0x2d0] sm:$0xff]  ;;  %v579_v11 = vld [vmem:[#allocation6 + $0x208] sm:$0xff] }
 0x118   :  { %v335_v23 = vadd.f32 %v334_v19, %v315_v13  ;;  %v375_v25 = vadd.f32 %v374_v21, %v355_v16  ;;  %v603_v16 = vld [vmem:[#allocation6 + $0x2c8] sm:$0xff]  ;;  %v578_v19 = vld [vmem:[#allocation6 + $0x200] sm:$0xff] }
 0x119   :  { %v602_v21 = vld [vmem:[#allocation6 + $0x2c0] sm:$0xff] }
 0x11a   :  { %2536 = vtanh.f32 %v335_v23 }
 0x11b   :  { %2538 = vtanh.f32 %v375_v25  ;;  %v601_v25 = vld [vmem:[#allocation6 + $0x2b8] sm:$0xff] }
 0x120   :  { %v2537_v29 = vpop.eup %2536 }
 0x121   :  { %v2539_v33 = vpop.eup %2538  ;;  %427 = vmatmul.f32.vlgmr.msra.gmra.mxu3 %v2537_v29 }
 0x122   :  { %447 = vmatmul.f32.vlgmr.msra.gmra.mxu1 %v2539_v33  ;;  %630 = vmatpush.msra.mxu3 %v609_v27  ;;  %v600_v27 = vld [vmem:[#allocation6 + $0x2b0] sm:$0xff]  ;;  %v599_v33 = vld [vmem:[#allocation6 + $0x2a8] sm:$0xff] }
 0x123   :  { %610 = vmatpush.msra.mxu1 %v593_v31 }
 0x124   :  { %631 = vmatpush.msra.mxu3 %v608_v36  ;;  %v598_v36 = vld [vmem:[#allocation6 + $0x2a0] sm:$0xff] }
 0x125   :  { %611 = vmatpush.msra.mxu1 %v592_v39 }
 0x126   :  { %632 = vmatpush.msra.mxu3 %v607_v63  ;;  %v744_v63 = vld [vmem:[#allocation6 + $0x310] sm:$0xff] }
 0x127   :  { %612 = vmatpush.msra.mxu1 %v591_v54 }
 0x128   :  { %633 = vmatpush.msra.mxu3 %v606_v52  ;;  %v743_v52 = vld [vmem:[#allocation6 + $0x308] sm:$0xff] }
 0x129   :  { %512 = vmatmul.f32.vlgmr.msrb.gmra.mxu3 %v2960_v0  ;;  %613 = vmatpush.msra.mxu1 %v590_v55  ;;  %v582_v0 = vld [vmem:[#allocation6 + $0x220] sm:$0xff]  ;;  %v595_v55 = vld [vmem:[#allocation6 + $0x288] sm:$0xff] }
 0x12a   :  { %2495 = vmatmul.msk.f32.vlgmr.msrb.gmra.mxu1 %vm170_vm0, %v3242_v17  ;;  %634 = vmatpush.msra.mxu3 %v605_v51  ;;  %v742_v51 = vld [vmem:[#allocation6 + $0x300] sm:$0xff] }
 0x12b   :  { %614 = vmatpush.msra.mxu1 %v589_v42 }
 0x12c   :  { %635 = vmatpush.msra.mxu3 %v604_v8  ;;  %v3333_v8 = vld [vmem:[#allocation2 + $0x140] sm:$0xff] }
 0x12d   :  { %615 = vmatpush.msra.mxu1 %v588_v56  ;;  %v749_v56 = vld [vmem:[#allocation6 + $0x338] sm:$0xff] }
 0x12e   :  { %636 = vmatpush.msra.mxu3 %v603_v16  ;;  %v3343_v16 = vld [vmem:[#allocation2 + $0xe8] sm:$0xff] }
 0x12f   :  { %616 = vmatpush.msra.mxu1 %v587_v59 }
 0x130   :  { %637 = vmatpush.msra.mxu3 %v602_v21  ;;  %v3349_v21 = vld [vmem:[#allocation2 + $0xd8] sm:$0xff] }
 0x131   :  { %617 = vmatpush.msra.mxu1 %v586_v58  ;;  %v747_v58 = vld [vmem:[#allocation6 + $0x328] sm:$0xff] }
 0x132   :  { %638 = vmatpush.msra.mxu3 %v601_v25  ;;  %v3355_v25 = vld [vmem:[#allocation2 + $0xc8] sm:$0xff] }
 0x133   :  { %618 = vmatpush.msra.mxu1 %v585_v60  ;;  %v746_v60 = vld [vmem:[#allocation6 + $0x320] sm:$0xff] }
 0x134   :  { %639 = vmatpush.msra.mxu3 %v600_v27  ;;  %v3358_v27 = vld [vmem:[#allocation2 + $0x100] sm:$0xff] }
 0x135   :  { %619 = vmatpush.msra.mxu1 %v584_v61  ;;  %v745_v61 = vld [vmem:[#allocation6 + $0x318] sm:$0xff]  ;;  %4190 = vst [vmem:[#allocation17_spill] sm:$0xff] %v3358_v27 }
 0x136   :  { %640 = vmatpush.msra.mxu3 %v599_v33  ;;  %v3367_v33 = vld [vmem:[#allocation2 + $0x98] sm:$0xff] }
 0x137   :  { %620 = vmatpush.msra.mxu1 %v583_v62 }
 0x138   :  { %641 = vmatpush.msra.mxu3 %v598_v36  ;;  %v3370_v36 = vld [vmem:[#allocation2 + $0x88] sm:$0xff] }
 0x139   :  { %621 = vmatpush.msra.mxu1 %v582_v0  ;;  %v3324_v0 = vld [vmem:[#allocation2 + $0x170] sm:$0xff] }
 0x13b   :  { %622 = vmatpush.msra.mxu1 %v581_v50  ;;  %v3327_v50 = vld [vmem:[#allocation2 + $0x160] sm:$0xff] }
 0x13d   :  { %623 = vmatpush.msra.mxu1 %v580_v53  ;;  %v3330_v53 = vld [vmem:[#allocation2 + $0x150] sm:$0xff] }
 0x13f   :  { %624 = vmatpush.msra.mxu1 %v579_v11  ;;  %v3337_v11 = vld [vmem:[#allocation2 + $0xf8] sm:$0xff] }
 0x141   :  { %625 = vmatpush.msra.mxu1 %v578_v19  ;;  %v3346_v19 = vld [vmem:[#allocation2 + $0x120] sm:$0xff] }
 0x143   :  { %700 = vmatpush.msrb.mxu1 %v2971_v4  ;;  %v597_v4 = vld [vmem:[#allocation6 + $0x298] sm:$0xff] }
 0x144   :  { %642 = vmatpush.msra.mxu3 %v597_v4  ;;  %v3379_v4 = vld [vmem:[#allocation2 + $0x58] sm:$0xff] }
 0x145   :  { %701 = vmatpush.msrb.mxu1 %v2973_v5 }
 0x147   :  { %702 = vmatpush.msrb.mxu1 %v2979_v7  ;;  %v596_v7 = vld [vmem:[#allocation6 + $0x290] sm:$0xff] }
 0x148   :  { %643 = vmatpush.msra.mxu3 %v596_v7  ;;  %v768_v7 = vld [vmem:[#allocation6 + $0x3d0] sm:$0xff] }
 0x149   :  { %703 = vmatpush.msrb.mxu1 %v2997_v12 }
 0x14a   :  { %644 = vmatpush.msra.mxu3 %v595_v55  ;;  %v766_v55 = vld [vmem:[#allocation6 + $0x3c0] sm:$0xff] }
 0x14b   :  { %704 = vmatpush.msrb.mxu1 %v3007_v15 }
 0x14d   :  { %705 = vmatpush.msrb.mxu1 %v3020_v20  ;;  %v754_v20 = vld [vmem:[#allocation6 + $0x360] sm:$0xff] }
 0x14e   :  { %v3277_v23 = vpop.f32.mrf.mxu0 }
 0x14f   :  { %706 = vmatpush.msrb.mxu1 %v3032_v24 }
 0x151   :  { %707 = vmatpush.msrb.mxu1 %v3044_v28  ;;  %v753_v28 = vld [vmem:[#allocation6 + $0x358] sm:$0xff] }
 0x152   :  { %v3275_v13 = vpop.f32.mrf.mxu2 }
 0x153   :  { %v655_v29 = vpop.permute.xlu1 %654  ;;  %708 = vmatpush.msrb.mxu1 %v3056_v32 }
 0x154   :  { %2497 = vmatmul.msk.f32.vlgmr.msra.gmra.mxu2 %vm170_vm0, %v655_v29 }
 0x155   :  { %820 = vmatpush.msra.mxu2 %v2962_v1  ;;  %709 = vmatpush.msrb.mxu1 %v3066_v35  ;;  %v770_v35 = vld [vmem:[#allocation6 + $0x3e0] sm:$0xff] }
 0x157   :  { %821 = vmatpush.msra.mxu2 %v2967_v2  ;;  %v594_v2 = vld [vmem:[#allocation6 + $0x280] sm:$0xff]  ;;  %710 = vmatpush.msrb.mxu1 %v3076_v38  ;;  %v751_v38 = vld [vmem:[#allocation6 + $0x348] sm:$0xff] }
 0x158   :  { %645 = vmatpush.msra.mxu3 %v594_v2 }
 0x159   :  { %822 = vmatpush.msra.mxu2 %v2969_v3  ;;  %711 = vmatpush.msrb.mxu1 %v3086_v41  ;;  %v757_v3 = vld [vmem:[#allocation6 + $0x378] sm:$0xff] }
 0x15a   :  { %v553_v31 = vpop.f32.mrf.mxu2  ;;  %774 = vmatpush.msrb.mxu3 %v757_v3 }
 0x15b   :  { %v554_v39 = vadd.f32 %v553_v31, %v3218_v9  ;;  %v653_v12 = vpop.permute.xlu1 %652  ;;  %823 = vmatpush.msra.mxu2 %v2977_v6  ;;  %712 = vmatpush.msrb.mxu1 %v3096_v44  ;;  %v756_v6 = vld [vmem:[#allocation6 + $0x370] sm:$0xff]  ;;  %v3364_v31 = vld [vmem:[#allocation2 + $0xa8] sm:$0xff] }
 0x15c   :  { %v3293_v1 = vsel %vm170_vm0, %v653_v12, %v655_v29  ;;  %2498 = vmatmul.msk.f32.vlgmr.msrb.gmra.mxu2 %vm170_vm0, %v655_v29  ;;  %775 = vmatpush.msrb.mxu3 %v756_v6  ;;  %v3361_v29 = vld [vmem:[#allocation2 + $0xb8] sm:$0xff]  ;;  %v767_v12 = vld [vmem:[#allocation6 + $0x3c8] sm:$0xff] }
 0x15d   :  { %676 = vmatmul.f32.vlgmr.msra.gmra.mxu0 %v3293_v1  ;;  %824 = vmatpush.msra.mxu2 %v2990_v10  ;;  %v755_v10 = vld [vmem:[#allocation6 + $0x368] sm:$0xff]  ;;  %v761_v6 = vld [vmem:[#allocation6 + $0x398] sm:$0xff] }
 0x15e   :  { %v573_v54 = vpop.f32.mrf.mxu0  ;;  %713 = vmatpush.msrb.mxu1 %v3104_v46  ;;  %776 = vmatpush.msrb.mxu3 %v755_v10  ;;  %v760_v10 = vld [vmem:[#allocation6 + $0x390] sm:$0xff] }
 0x15f   :  { %v574_v5 = vadd.f32 %v573_v54, %v554_v39  ;;  %825 = vmatpush.msra.mxu2 %v3001_v14  ;;  %v3373_v39 = vld [vmem:[#allocation2 + $0x78] sm:$0xff]  ;;  %v3376_v54 = vld [vmem:[#allocation2 + $0x68] sm:$0xff] }
 0x160   :  { %714 = vmatpush.msrb.mxu1 %v3112_v48  ;;  %777 = vmatpush.msrb.mxu3 %v754_v20  ;;  %v3395_v20 = vld [vmem:[%s4155_s0 + $0x18] sm:$0xff] }
 0x161   :  { %2540 = vtanh.f32 %v574_v5  ;;  %826 = vmatpush.msra.mxu2 %v3013_v18  ;;  %v769_v5 = vld [vmem:[#allocation6 + $0x3d8] sm:$0xff]  ;;  %978 = vrot.lane.b32.xlu2 %v3395_v20, %s2898_s6 }
 0x162   :  { %715 = vmatpush.msrb.mxu1 %v3118_v49  ;;  %778 = vmatpush.msrb.mxu3 %v753_v28  ;;  %v3416_v28 = vld [vmem:[#allocation2 + $0x148] sm:$0xff] }
 0x163   :  { %827 = vmatpush.msra.mxu2 %v3025_v22  ;;  %v773_v22 = vld [vmem:[#allocation6 + $0x3f8] sm:$0xff]  ;;  %1300 = vrot.lane.b32.xlu1 %v3395_v20, %s2898_s6 }
 0x164   :  { %794 = vmatpush.msrb.mxu0 %v773_v22  ;;  %v3398_v22 = vld [vmem:[#allocation2 + $0x178] sm:$0xff] }
 0x165   :  { %828 = vmatpush.msra.mxu2 %v3037_v26  ;;  %v772_v26 = vld [vmem:[#allocation6 + $0x3f0] sm:$0xff] }
 0x166   :  { %795 = vmatpush.msrb.mxu0 %v772_v26  ;;  %v3412_v26 = vld [vmem:[#allocation2 + $0x158] sm:$0xff] }
 0x167   :  { %v2541_v15 = vpop.eup %2540  ;;  %829 = vmatpush.msra.mxu2 %v3049_v30  ;;  %v771_v30 = vld [vmem:[#allocation6 + $0x3e8] sm:$0xff] }
 0x168   :  { %646 = vmatmul.f32.vlgmr.msra.gmra.mxu3 %v2541_v15  ;;  %796 = vmatpush.msrb.mxu0 %v771_v30  ;;  %v3420_v30 = vld [vmem:[#allocation2 + $0x138] sm:$0xff] }
 0x169   :  { %830 = vmatpush.msra.mxu2 %v3061_v34  ;;  %v752_v34 = vld [vmem:[#allocation6 + $0x350] sm:$0xff]  ;;  %976 = vrot.lane.b32.xlu2 %v3242_v17, %s2898_s6 }
 0x16a   :  { %779 = vmatpush.msrb.mxu3 %v752_v34  ;;  %797 = vmatpush.msrb.mxu0 %v770_v35  ;;  %v3428_v34 = vld [vmem:[#allocation2 + $0x118] sm:$0xff]  ;;  %v3431_v35 = vld [vmem:[#allocation2 + $0x108] sm:$0xff] }
 0x16b   :  { %831 = vmatpush.msra.mxu2 %v3071_v37  ;;  %4192 = vst [vmem:[#allocation19_spill] sm:$0xff] %v3428_v34 }
 0x16c   :  { %780 = vmatpush.msrb.mxu3 %v751_v38  ;;  %798 = vmatpush.msrb.mxu0 %v769_v5  ;;  %4193 = vst [vmem:[#allocation20_spill] sm:$0xff] %v3431_v35  ;;  %v917_v38 = vld [vmem:[#allocation6 + $0x478] sm:$0xff] }
 0x16d   :  { %832 = vmatpush.msra.mxu2 %v3081_v40 }
 0x16e   :  { %799 = vmatpush.msrb.mxu0 %v768_v7  ;;  %v910_v7 = vld [vmem:[#allocation6 + $0x440] sm:$0xff] }
 0x16f   :  { %833 = vmatpush.msra.mxu2 %v3091_v43 }
 0x170   :  { %800 = vmatpush.msrb.mxu0 %v767_v12 }
 0x171   :  { %834 = vmatpush.msra.mxu2 %v3099_v45  ;;  %v750_v45 = vld [vmem:[#allocation6 + $0x340] sm:$0xff] }
 0x172   :  { %781 = vmatpush.msrb.mxu3 %v750_v45  ;;  %801 = vmatpush.msrb.mxu0 %v766_v55  ;;  %v915_v45 = vld [vmem:[#allocation6 + $0x468] sm:$0xff] }
 0x173   :  { %835 = vmatpush.msra.mxu2 %v3107_v47  ;;  %v748_v47 = vld [vmem:[#allocation6 + $0x330] sm:$0xff] }
 0x174   :  { %836 = vmatmul.f32.vlgmr.msra.gmra.mxu2 %v3242_v17  ;;  %782 = vmatpush.msrb.mxu3 %v749_v56 }
 0x176   :  { %783 = vmatpush.msrb.mxu3 %v748_v47  ;;  %v932_v47 = vld [vmem:[#allocation6 + $0x4f0] sm:$0xff] }
 0x178   :  { %784 = vmatpush.msrb.mxu3 %v747_v58  ;;  %v913_v58 = vld [vmem:[#allocation6 + $0x458] sm:$0xff] }
 0x17a   :  { %785 = vmatpush.msrb.mxu3 %v746_v60 }
 0x17c   :  { %786 = vmatpush.msrb.mxu3 %v745_v61  ;;  %v931_v61 = vld [vmem:[#allocation6 + $0x4e8] sm:$0xff] }
 0x17e   :  { %787 = vmatpush.msrb.mxu3 %v744_v63  ;;  %v930_v63 = vld [vmem:[#allocation6 + $0x4e0] sm:$0xff] }
 0x180   :  { %788 = vmatpush.msrb.mxu3 %v743_v52  ;;  %v911_v52 = vld [vmem:[#allocation6 + $0x448] sm:$0xff] }
 0x182   :  { %789 = vmatpush.msrb.mxu3 %v742_v51  ;;  %v929_v51 = vld [vmem:[#allocation6 + $0x4d8] sm:$0xff] }
 0x184   :  { %860 = vmatpush.msra.mxu3 %v3337_v11 }
 0x186   :  { %861 = vmatpush.msra.mxu3 %v3343_v16 }
 0x188   :  { %862 = vmatpush.msra.mxu3 %v3349_v21 }
 0x18a   :  { %863 = vmatpush.msra.mxu3 %v3355_v25 }
 0x18c   :  { %864 = vmatpush.msra.mxu3 %v3361_v29 }
 0x18e   :  { %865 = vmatpush.msra.mxu3 %v3364_v31 }
 0x190   :  { %866 = vmatpush.msra.mxu3 %v3367_v33 }
 0x192   :  { %867 = vmatpush.msra.mxu3 %v3370_v36 }
 0x194   :  { %868 = vmatpush.msra.mxu3 %v3373_v39 }
 0x196   :  { %869 = vmatpush.msra.mxu3 %v3376_v54 }
 0x198   :  { %870 = vmatpush.msra.mxu3 %v3379_v4 }
 0x19a   :  { %871 = vmatpush.msra.mxu3 %v3086_v41 }
 0x19c   :  { %872 = vmatpush.msra.mxu3 %v3096_v44 }
 0x19e   :  { %873 = vmatpush.msra.mxu3 %v3104_v46  ;;  %v764_v46 = vld [vmem:[#allocation6 + $0x3b0] sm:$0xff] }
 0x19f   :  { %v448_v14 = vpop.f32.mrf.mxu1 }
 0x1a0   :  { %874 = vmatpush.msra.mxu3 %v3112_v48  ;;  %v763_v48 = vld [vmem:[#allocation6 + $0x3a8] sm:$0xff] }
 0x1a2   :  { %875 = vmatpush.msra.mxu3 %v3118_v49  ;;  %v762_v49 = vld [vmem:[#allocation6 + $0x3a0] sm:$0xff] }
 0x1a4   :  { %v428_v18 = vpop.f32.mrf.mxu3 }
 0x1a5   :  { %v449_v24 = vadd.f32 %v448_v14, %v428_v18  ;;  %v759_v14 = vld [vmem:[#allocation6 + $0x388] sm:$0xff]  ;;  %v758_v18 = vld [vmem:[#allocation6 + $0x380] sm:$0xff] }
 0x1a7   :  { %v469_v32 = vadd.f32 %v3275_v13, %v449_v24  ;;  %v533_v43 = vpop.f32.mrf.mxu1  ;;  %v3340_v13 = vld [vmem:[#allocation2 + $0x130] sm:$0xff]  ;;  %v3406_v24 = vld [vmem:[#allocation2 + $0x168] sm:$0xff] }
 0x1a9   :  { %v3320_v37 = vadd.f32 %v3277_v23, %v469_v32  ;;  %v3352_v23 = vld [vmem:[#allocation2 + $0x110] sm:$0xff]  ;;  %v3425_v32 = vld [vmem:[#allocation2 + $0x128] sm:$0xff] }
 0x1aa   :  { %4189 = vst [vmem:[#allocation16_spill] sm:$0xff] %v3352_v23 }
 0x1ab   :  { %4191 = vst [vmem:[#allocation18_spill] sm:$0xff] %v3425_v32 }
 0x1ac   :  { %v513_v40 = vpop.f32.mrf.mxu3 }
 0x1ad   :  { %v514_v42 = vadd.f32 %v513_v40, %v3204_v57  ;;  %v916_v40 = vld [vmem:[#allocation6 + $0x470] sm:$0xff] }
 0x1af   :  { %v534_v59 = vadd.f32 %v533_v43, %v514_v42 }
 0x1b1   :  { %2542 = vtanh.f32 %v534_v59  ;;  %v933_v59 = vld [vmem:[#allocation6 + $0x4f8] sm:$0xff] }
 0x1b2   :  { %954 = vmatpush.msrb.mxu2 %v933_v59  ;;  %v3481_v59 = vld [vmem:[#allocation2 + $0x40] sm:$0xff] }
 0x1b4   :  { %955 = vmatpush.msrb.mxu2 %v932_v47  ;;  %v3485_v47 = vld [vmem:[#allocation2 + $0x30] sm:$0xff] }
 0x1b6   :  { %956 = vmatpush.msrb.mxu2 %v931_v61  ;;  %v3493_v61 = vld [vmem:[#allocation2 + $0x10] sm:$0xff] }
 0x1b7   :  { %v2543_v62 = vpop.eup %2542 }
 0x1b8   :  { %626 = vmatmul.f32.vlgmr.msra.gmra.mxu1 %v2543_v62  ;;  %v912_v62 = vld [vmem:[#allocation6 + $0x450] sm:$0xff]  ;;  %957 = vmatpush.msrb.mxu2 %v930_v63  ;;  %v3499_v63 = vld [vmem:[#allocation2] sm:$0xff] }
 0x1b9   :  { %848 = vmatpush.msra.mxu1 %v3324_v0 }
 0x1ba   :  { %958 = vmatpush.msrb.mxu2 %v929_v51  ;;  %v3505_v51 = vld [vmem:[#allocation2 + $0x28] sm:$0xff] }
 0x1bb   :  { %849 = vmatpush.msra.mxu1 %v3327_v50 }
 0x1bd   :  { %850 = vmatpush.msra.mxu1 %v3330_v53 }
 0x1bf   :  { %851 = vmatpush.msra.mxu1 %v3333_v8 }
 0x1c0   :  { %716 = vmatmul.f32.vlgmr.msrb.gmra.mxu1 %v3293_v1  ;;  %v765_v1 = vld [vmem:[#allocation6 + $0x3b8] sm:$0xff] }
 0x1c1   :  { %852 = vmatpush.msra.mxu1 %v3340_v13  ;;  %802 = vmatpush.msrb.mxu0 %v765_v1  ;;  %v909_v1 = vld [vmem:[#allocation6 + $0x438] sm:$0xff] }
 0x1c3   :  { %853 = vmatpush.msra.mxu1 %v3346_v19  ;;  %803 = vmatpush.msrb.mxu0 %v764_v46 }
 0x1c5   :  { %854 = vmatpush.msra.mxu1 %v3352_v23  ;;  %804 = vmatpush.msrb.mxu0 %v763_v48  ;;  %v904_v48 = vld [vmem:[#allocation6 + $0x410] sm:$0xff] }
 0x1c7   :  { %855 = vmatpush.msra.mxu1 %v3358_v27  ;;  %805 = vmatpush.msrb.mxu0 %v762_v49  ;;  %v3438_v49 = vld [vmem:[#allocation2 + $0xf0] sm:$0xff] }
 0x1c8   :  { %2499 = vmatmul.msk.f32.vlgmr.msra.gmra.mxu1 %vm170_vm0, %v3395_v20 }
 0x1c9   :  { %806 = vmatpush.msrb.mxu0 %v761_v6  ;;  %934 = vmatpush.msrb.mxu1 %v917_v38  ;;  %v3441_v6 = vld [vmem:[#allocation2 + $0xe0] sm:$0xff]  ;;  %v3453_v38 = vld [vmem:[#allocation2 + $0xb0] sm:$0xff] }
 0x1cb   :  { %807 = vmatpush.msrb.mxu0 %v760_v10  ;;  %935 = vmatpush.msrb.mxu1 %v916_v40  ;;  %v902_v10 = vld [vmem:[#allocation6 + $0x400] sm:$0xff] }
 0x1cc   :  { %v3457_v40 = vld [vmem:[#allocation2 + $0xa0] sm:$0xff] }
 0x1cd   :  { %808 = vmatpush.msrb.mxu0 %v759_v14  ;;  %936 = vmatpush.msrb.mxu1 %v915_v45  ;;  %v3444_v14 = vld [vmem:[#allocation2 + $0xd0] sm:$0xff]  ;;  %v3465_v45 = vld [vmem:[#allocation2 + $0x80] sm:$0xff] }
 0x1cf   :  { %809 = vmatpush.msrb.mxu0 %v758_v18  ;;  %v3447_v18 = vld [vmem:[#allocation2 + $0xc0] sm:$0xff] }
 0x1d1   :  { %888 = vmatpush.msra.mxu0 %v3398_v22 }
 0x1d3   :  { %889 = vmatpush.msra.mxu0 %v3406_v24 }
 0x1d5   :  { %890 = vmatpush.msra.mxu0 %v3412_v26 }
 0x1d7   :  { %v697_v44 = vpop.f32.mrf.mxu2  ;;  %891 = vmatpush.msra.mxu0 %v3416_v28 }
 0x1d9   :  { %892 = vmatpush.msra.mxu0 %v3420_v30 }
 0x1da   :  { %v677_v2 = vpop.f32.mrf.mxu0 }
 0x1db   :  { %v678_v41 = vadd.f32 %v677_v2, %v3204_v57  ;;  %893 = vmatpush.msra.mxu0 %v3425_v32  ;;  %v908_v2 = vld [vmem:[#allocation6 + $0x430] sm:$0xff] }
 0x1dd   :  { %v698_v15 = vadd.f32 %v697_v44, %v678_v41  ;;  %894 = vmatpush.msra.mxu0 %v3428_v34  ;;  %v907_v41 = vld [vmem:[#allocation6 + $0x428] sm:$0xff]  ;;  %v906_v44 = vld [vmem:[#allocation6 + $0x420] sm:$0xff] }
 0x1df   :  { %2544 = vtanh.f32 %v698_v15  ;;  %895 = vmatpush.msra.mxu0 %v3431_v35  ;;  %v737_v55 = vpop.f32.mrf.mxu2  ;;  %v905_v15 = vld [vmem:[#allocation6 + $0x418] sm:$0xff] }
 0x1e5   :  { %v2545_v3 = vpop.eup %2544 }
 0x1e6   :  { %790 = vmatmul.f32.vlgmr.msrb.gmra.mxu3 %v2545_v3  ;;  %v903_v3 = vld [vmem:[#allocation6 + $0x408] sm:$0xff] }
 0x1e7   :  { %1012 = vmatpush.msrb.mxu3 %v3324_v0 }
 0x1e9   :  { %1013 = vmatpush.msrb.mxu3 %v3327_v50 }
 0x1eb   :  { %1014 = vmatpush.msrb.mxu3 %v3330_v53  ;;  %v647_v43 = vpop.f32.mrf.mxu3 }
 0x1ed   :  { %1015 = vmatpush.msrb.mxu3 %v3333_v8 }
 0x1ee   :  { %876 = vmatmul.f32.vlgmr.msra.gmra.mxu3 %v3242_v17  ;;  %v914_v17 = vld [vmem:[#allocation6 + $0x460] sm:$0xff] }
 0x1ef   :  { %1016 = vmatpush.msrb.mxu3 %v3340_v13  ;;  %937 = vmatpush.msrb.mxu1 %v914_v17  ;;  %v3473_v17 = vld [vmem:[#allocation2 + $0x60] sm:$0xff] }
 0x1f1   :  { %1017 = vmatpush.msrb.mxu3 %v3346_v19  ;;  %938 = vmatpush.msrb.mxu1 %v913_v58  ;;  %v3489_v58 = vld [vmem:[#allocation2 + $0x20] sm:$0xff] }
 0x1f3   :  { %1018 = vmatpush.msrb.mxu3 %v3352_v23  ;;  %939 = vmatpush.msrb.mxu1 %v912_v62  ;;  %v3496_v62 = vld [vmem:[#allocation2 + $0x48] sm:$0xff] }
 0x1f5   :  { %1019 = vmatpush.msrb.mxu3 %v3358_v27  ;;  %940 = vmatpush.msrb.mxu1 %v911_v52  ;;  %v3502_v52 = vld [vmem:[#allocation2 + $0x38] sm:$0xff] }
 0x1f7   :  { %941 = vmatpush.msrb.mxu1 %v910_v7  ;;  %v3511_v7 = vld [vmem:[#allocation2 + $0x8] sm:$0xff] }
 0x1f8   :  { %4194 = vst [vmem:[#allocation21_spill] sm:$0xff] %v3511_v7 }
 0x1f9   :  { %942 = vmatpush.msrb.mxu1 %v909_v1  ;;  %v926_v1 = vld [vmem:[#allocation6 + $0x4c0] sm:$0xff] }
 0x1fb   :  { %943 = vmatpush.msrb.mxu1 %v908_v2  ;;  %v924_v2 = vld [vmem:[#allocation6 + $0x4b0] sm:$0xff] }
 0x1fd   :  { %944 = vmatpush.msrb.mxu1 %v907_v41  ;;  %v837_v41 = vpop.f32.mrf.mxu2 }
 0x1ff   :  { %945 = vmatpush.msrb.mxu1 %v906_v44  ;;  %v838_v44 = vadd.f32 %v837_v41, %v3204_v57 }
 0x201   :  { %946 = vmatpush.msrb.mxu1 %v905_v15 }
 0x203   :  { %947 = vmatpush.msrb.mxu1 %v904_v48  ;;  %v923_v48 = vld [vmem:[#allocation6 + $0x4a8] sm:$0xff] }
 0x205   :  { %948 = vmatpush.msrb.mxu1 %v903_v3  ;;  %v922_v3 = vld [vmem:[#allocation6 + $0x4a0] sm:$0xff] }
 0x207   :  { %949 = vmatpush.msrb.mxu1 %v902_v10 }
 0x209   :  { %1024 = vmatpush.msra.mxu1 %v3337_v11 }
 0x20b   :  { %1025 = vmatpush.msra.mxu1 %v3343_v16 }
 0x20d   :  { %1026 = vmatpush.msra.mxu1 %v3349_v21 }
 0x20f   :  { %1027 = vmatpush.msra.mxu1 %v3355_v25 }
 0x211   :  { %1028 = vmatpush.msra.mxu1 %v3361_v29 }
 0x213   :  { %1029 = vmatpush.msra.mxu1 %v3364_v31 }
 0x215   :  { %1030 = vmatpush.msra.mxu1 %v3367_v33 }
 0x217   :  { %1031 = vmatpush.msra.mxu1 %v3370_v36 }
 0x219   :  { %1032 = vmatpush.msra.mxu1 %v3373_v39 }
 0x21b   :  { %1033 = vmatpush.msra.mxu1 %v3376_v54 }
 0x21d   :  { %1034 = vmatpush.msra.mxu1 %v3379_v4 }
 0x21f   :  { %1035 = vmatpush.msra.mxu1 %v3496_v62 }
 0x221   :  { %1036 = vmatpush.msra.mxu1 %v3502_v52 }
 0x223   :  { %1037 = vmatpush.msra.mxu1 %v3505_v51 }
 0x235   :  { %v627_v42 = vpop.f32.mrf.mxu1 }
 0x236   :  { %v648_v56 = vadd.f32 %v647_v43, %v627_v42  ;;  %v3461_v43 = vld [vmem:[#allocation2 + $0x90] sm:$0xff] }
 0x237   :  { %v3469_v42 = vld [vmem:[#allocation2 + $0x70] sm:$0xff] }
 0x238   :  { %v3435_v60 = vadd.f32 %v648_v56, %v3320_v37  ;;  %v3477_v56 = vld [vmem:[#allocation2 + $0x50] sm:$0xff] }
 0x23d   :  { %v717_v5 = vpop.f32.mrf.mxu1 }
 0x23e   :  { %v718_v12 = vadd.f32 %v717_v5, %v3218_v9  ;;  %v3508_v5 = vld [vmem:[#allocation2 + $0x18] sm:$0xff] }
 0x23f   :  { %1038 = vmatpush.msra.mxu1 %v3508_v5 }
 0x240   :  { %v738_v37 = vadd.f32 %v737_v55, %v718_v12  ;;  %v928_v12 = vld [vmem:[#allocation6 + $0x4d0] sm:$0xff]  ;;  %v927_v55 = vld [vmem:[#allocation6 + $0x4c8] sm:$0xff] }
 0x241   :  { %1039 = vmatpush.msra.mxu1 %v3511_v7  ;;  %959 = vmatpush.msrb.mxu2 %v928_v12  ;;  %v3515_v7 = vpop.permute.xlu2 %978  ;;  %v921_v12 = vld [vmem:[#allocation6 + $0x498] sm:$0xff] }
 0x242   :  { %2546 = vtanh.f32 %v738_v37  ;;  %v925_v37 = vld [vmem:[#allocation6 + $0x4b8] sm:$0xff]  ;;  %2501 = vmatmul.msk.f32.vlgmr.msrb.gmra.mxu3 %vm170_vm0, %v3515_v7 }
 0x243   :  { %960 = vmatpush.msrb.mxu2 %v927_v55  ;;  %v920_v55 = vld [vmem:[#allocation6 + $0x490] sm:$0xff] }
 0x245   :  { %961 = vmatpush.msrb.mxu2 %v926_v1  ;;  %v857_v15 = vpop.f32.mrf.mxu1  ;;  %v919_v1 = vld [vmem:[#allocation6 + $0x488] sm:$0xff] }
 0x247   :  { %962 = vmatpush.msrb.mxu2 %v925_v37  ;;  %v918_v37 = vld [vmem:[#allocation6 + $0x480] sm:$0xff] }
 0x248   :  { %v2547_v46 = vpop.eup %2546 }
 0x249   :  { %810 = vmatmul.f32.vlgmr.msrb.gmra.mxu0 %v2547_v46  ;;  %963 = vmatpush.msrb.mxu2 %v924_v2  ;;  %v858_v46 = vadd.f32 %v857_v15, %v838_v44  ;;  %v977_v2 = vpop.permute.xlu2 %976  ;;  %v1081_v15 = vld [vmem:[#allocation6 + $0x578] sm:$0xff] }
 0x24a   :  { %984 = vmatpush.msrb.mxu0 %v3438_v49  ;;  %v980_v41 = vsel %vm170_vm0, %v977_v2, %v3515_v7  ;;  %1098 = vmatpush.msra.mxu3 %v1081_v15  ;;  %v1076_v2 = vld [vmem:[#allocation6 + $0x550] sm:$0xff]  ;;  %v1074_v15 = vld [vmem:[#allocation6 + $0x540] sm:$0xff] }
 0x24b   :  { %2548 = vtanh.f32 %v858_v46  ;;  %964 = vmatpush.msrb.mxu2 %v923_v48  ;;  %v1080_v46 = vld [vmem:[#allocation6 + $0x570] sm:$0xff]  ;;  %v1079_v48 = vld [vmem:[#allocation6 + $0x568] sm:$0xff] }
 0x24c   :  { %985 = vmatpush.msrb.mxu0 %v3441_v6  ;;  %1099 = vmatpush.msra.mxu3 %v1080_v46 }
 0x24d   :  { %965 = vmatpush.msrb.mxu2 %v922_v3  ;;  %v1078_v3 = vld [vmem:[#allocation6 + $0x560] sm:$0xff] }
 0x24e   :  { %986 = vmatpush.msrb.mxu0 %v3444_v14  ;;  %1100 = vmatpush.msra.mxu3 %v1079_v48 }
 0x24f   :  { %966 = vmatpush.msrb.mxu2 %v921_v12 }
 0x250   :  { %987 = vmatpush.msrb.mxu0 %v3447_v18  ;;  %1101 = vmatpush.msra.mxu3 %v1078_v3  ;;  %v1070_v3 = vld [vmem:[#allocation6 + $0x520] sm:$0xff] }
 0x251   :  { %2500 = vmatmul.msk.f32.vlgmr.msra.gmra.mxu0 %vm170_vm0, %v3395_v20  ;;  %v2549_v10 = vpop.eup %2548  ;;  %967 = vmatpush.msrb.mxu2 %v920_v55  ;;  %v1077_v55 = vld [vmem:[#allocation6 + $0x558] sm:$0xff] }
 0x252   :  { %988 = vmatpush.msrb.mxu0 %v3453_v38  ;;  %950 = vmatmul.f32.vlgmr.msrb.gmra.mxu1 %v2549_v10  ;;  %v1097_v10 = vld [vmem:[#allocation6 + $0x5f8] sm:$0xff] }
 0x253   :  { %1172 = vmatpush.msrb.mxu1 %v3324_v0  ;;  %968 = vmatpush.msrb.mxu2 %v919_v1 }
 0x254   :  { %989 = vmatpush.msrb.mxu0 %v3457_v40  ;;  %1102 = vmatpush.msra.mxu3 %v1077_v55  ;;  %v1066_v55 = vld [vmem:[#allocation6 + $0x500] sm:$0xff] }
 0x255   :  { %1173 = vmatpush.msrb.mxu1 %v3327_v50  ;;  %969 = vmatpush.msrb.mxu2 %v918_v37 }
 0x256   :  { %990 = vmatpush.msrb.mxu0 %v3461_v43  ;;  %1103 = vmatpush.msra.mxu3 %v1076_v2  ;;  %v1092_v2 = vld [vmem:[#allocation6 + $0x5d0] sm:$0xff] }
 0x257   :  { %1174 = vmatpush.msrb.mxu1 %v3330_v53  ;;  %1052 = vmatpush.msra.mxu2 %v3398_v22 }
 0x258   :  { %991 = vmatpush.msrb.mxu0 %v3465_v45 }
 0x259   :  { %1175 = vmatpush.msrb.mxu1 %v3333_v8  ;;  %1053 = vmatpush.msra.mxu2 %v3406_v24 }
 0x25a   :  { %992 = vmatpush.msrb.mxu0 %v3469_v42  ;;  %1040 = vmatmul.f32.vlgmr.msra.gmra.mxu1 %v980_v41 }
 0x25b   :  { %1176 = vmatpush.msrb.mxu1 %v3340_v13  ;;  %1054 = vmatpush.msra.mxu2 %v3412_v26 }
 0x25c   :  { %993 = vmatpush.msrb.mxu0 %v3473_v17 }
 0x25d   :  { %1177 = vmatpush.msrb.mxu1 %v3346_v19  ;;  %1055 = vmatpush.msra.mxu2 %v3416_v28 }
 0x25e   :  { %994 = vmatpush.msrb.mxu0 %v3477_v56 }
 0x25f   :  { %1178 = vmatpush.msrb.mxu1 %v3352_v23  ;;  %1056 = vmatpush.msra.mxu2 %v3420_v30 }
 0x260   :  { %995 = vmatpush.msrb.mxu0 %v3481_v59 }
 0x261   :  { %1179 = vmatpush.msrb.mxu1 %v3358_v27  ;;  %1057 = vmatpush.msra.mxu2 %v3425_v32  ;;  %v1073_v32 = vld [vmem:[#allocation6 + $0x538] sm:$0xff] }
 0x262   :  { %996 = vmatpush.msrb.mxu0 %v3485_v47 }
 0x263   :  { %1058 = vmatpush.msra.mxu2 %v3428_v34 }
 0x264   :  { %997 = vmatpush.msrb.mxu0 %v3489_v58 }
 0x265   :  { %1059 = vmatpush.msra.mxu2 %v3431_v35  ;;  %v1075_v35 = vld [vmem:[#allocation6 + $0x548] sm:$0xff] }
 0x266   :  { %998 = vmatpush.msrb.mxu0 %v3493_v61  ;;  %1104 = vmatpush.msra.mxu3 %v1075_v35  ;;  %v1067_v35 = vld [vmem:[#allocation6 + $0x508] sm:$0xff] }
 0x268   :  { %999 = vmatpush.msrb.mxu0 %v3499_v63  ;;  %1105 = vmatpush.msra.mxu3 %v1074_v15  ;;  %v1091_v15 = vld [vmem:[#allocation6 + $0x5c8] sm:$0xff] }
 0x269   :  { %1000 = vmatmul.f32.vlgmr.msrb.gmra.mxu0 %v980_v41  ;;  %v791_v44 = vpop.f32.mrf.mxu3 }
 0x26a   :  { %1118 = vmatpush.msra.mxu0 %v1097_v10  ;;  %v1072_v10 = vld [vmem:[#allocation6 + $0x530] sm:$0xff]  ;;  %1106 = vmatpush.msra.mxu3 %v1073_v32 }
 0x26b   :  { %v1068_v32 = vld [vmem:[#allocation6 + $0x510] sm:$0xff] }
 0x26c   :  { %1107 = vmatpush.msra.mxu3 %v1072_v10  ;;  %v1088_v10 = vld [vmem:[#allocation6 + $0x5b0] sm:$0xff] }
 0x271   :  { %v877_v37 = vpop.f32.mrf.mxu3 }
 0x272   :  { %v878_v34 = vadd.f32 %v877_v37, %v3218_v9  ;;  %v1093_v37 = vld [vmem:[#allocation6 + $0x5d8] sm:$0xff] }
 0x2c6   :  { %v811_v12 = vpop.f32.mrf.mxu0 }
 0x2c7   :  { %v812_v1 = vadd.f32 %v811_v12, %v791_v44  ;;  %v1071_v44 = vld [vmem:[#allocation6 + $0x528] sm:$0xff] }
 0x2c8   :  { %1108 = vmatpush.msra.mxu3 %v1071_v44  ;;  %v4195_v44 = vld [vmem:[#allocation21_spill] sm:$0xff] }
 0x2c9   :  { %v3538_v41 = vadd.f32 %v812_v1, %v3435_v60  ;;  %v1069_v60 = vld [vmem:[#allocation6 + $0x518] sm:$0xff]  ;;  %v1094_v1 = vld [vmem:[#allocation6 + $0x5e0] sm:$0xff] }
 0x2ca   :  { %1109 = vmatpush.msra.mxu3 %v1070_v3 }
 0x2cc   :  { %1110 = vmatpush.msra.mxu3 %v1069_v60  ;;  %v1021_v60 = vpop.f32.mrf.mxu3 }
 0x2ce   :  { %v897_v46 = vpop.f32.mrf.mxu0  ;;  %1111 = vmatpush.msra.mxu3 %v1068_v32 }
 0x2cf   :  { %v898_v48 = vadd.f32 %v897_v46, %v878_v34  ;;  %v1096_v34 = vld [vmem:[#allocation6 + $0x5f0] sm:$0xff]  ;;  %v1090_v46 = vld [vmem:[#allocation6 + $0x5c0] sm:$0xff] }
 0x2d0   :  { %1119 = vmatpush.msra.mxu0 %v1096_v34  ;;  %1112 = vmatpush.msra.mxu3 %v1067_v35  ;;  %v1087_v35 = vld [vmem:[#allocation6 + $0x5a8] sm:$0xff] }
 0x2d1   :  { %2550 = vtanh.f32 %v898_v48  ;;  %v1089_v48 = vld [vmem:[#allocation6 + $0x5b8] sm:$0xff] }
 0x2d2   :  { %1113 = vmatpush.msra.mxu3 %v1066_v55  ;;  %v1085_v55 = vld [vmem:[#allocation6 + $0x598] sm:$0xff] }
 0x2d4   :  { %1184 = vmatpush.msrb.mxu3 %v3337_v11 }
 0x2d6   :  { %1185 = vmatpush.msrb.mxu3 %v3343_v16 }
 0x2d7   :  { %v2551_v12 = vpop.eup %2550 }
 0x2d8   :  { %970 = vmatmul.f32.vlgmr.msrb.gmra.mxu2 %v2551_v12  ;;  %1186 = vmatpush.msrb.mxu3 %v3349_v21 }
 0x2d9   :  { %1144 = vmatpush.msrb.mxu2 %v3438_v49 }
 0x2da   :  { %1187 = vmatpush.msrb.mxu3 %v3355_v25 }
 0x2db   :  { %1145 = vmatpush.msrb.mxu2 %v3441_v6 }
 0x2dc   :  { %1188 = vmatpush.msrb.mxu3 %v3361_v29 }
 0x2dd   :  { %1146 = vmatpush.msrb.mxu2 %v3444_v14 }
 0x2de   :  { %1189 = vmatpush.msrb.mxu3 %v3364_v31 }
 0x2df   :  { %1147 = vmatpush.msrb.mxu2 %v3447_v18 }
 0x2e0   :  { %2502 = vmatmul.msk.f32.vlgmr.msra.gmra.mxu2 %vm170_vm0, %v3515_v7  ;;  %v1095_v7 = vld [vmem:[#allocation6 + $0x5e8] sm:$0xff]  ;;  %1190 = vmatpush.msrb.mxu3 %v3367_v33 }
 0x2e1   :  { %1148 = vmatpush.msrb.mxu2 %v3453_v38  ;;  %1120 = vmatpush.msra.mxu0 %v1095_v7  ;;  %v1086_v7 = vld [vmem:[#allocation6 + $0x5a0] sm:$0xff] }
 0x2e2   :  { %1191 = vmatpush.msrb.mxu3 %v3370_v36 }
 0x2e3   :  { %1149 = vmatpush.msrb.mxu2 %v3457_v40  ;;  %1121 = vmatpush.msra.mxu0 %v1094_v1  ;;  %v1084_v1 = vld [vmem:[#allocation6 + $0x590] sm:$0xff] }
 0x2e4   :  { %1192 = vmatpush.msrb.mxu3 %v3373_v39 }
 0x2e5   :  { %1150 = vmatpush.msrb.mxu2 %v3461_v43  ;;  %1122 = vmatpush.msra.mxu0 %v1093_v37  ;;  %v1083_v37 = vld [vmem:[#allocation6 + $0x588] sm:$0xff] }
 0x2e6   :  { %1193 = vmatpush.msrb.mxu3 %v3376_v54  ;;  %v1001_v3 = vpop.f32.mrf.mxu0 }
 0x2e7   :  { %1151 = vmatpush.msrb.mxu2 %v3465_v45  ;;  %1123 = vmatpush.msra.mxu0 %v1092_v2  ;;  %v1002_v12 = vadd.f32 %v1001_v3, %v3204_v57  ;;  %v1082_v2 = vld [vmem:[#allocation6 + $0x580] sm:$0xff]  ;;  %v1241_v3 = vld [vmem:[#allocation6 + $0x678] sm:$0xff] }
 0x2e8   :  { %1194 = vmatpush.msrb.mxu3 %v3379_v4  ;;  %1258 = vmatpush.msra.mxu1 %v1241_v3 }
 0x2e9   :  { %1152 = vmatpush.msrb.mxu2 %v3469_v42  ;;  %1124 = vmatpush.msra.mxu0 %v1091_v15  ;;  %v1022_v32 = vadd.f32 %v1021_v60, %v1002_v12  ;;  %v4196_v15 = vld [vmem:[#allocation18_spill] sm:$0xff]  ;;  %v1239_v12 = vld [vmem:[#allocation6 + $0x668] sm:$0xff] }
 0x2ea   :  { %1195 = vmatpush.msrb.mxu3 %v3496_v62  ;;  %v1240_v60 = vld [vmem:[#allocation6 + $0x670] sm:$0xff] }
 0x2eb   :  { %1153 = vmatpush.msrb.mxu2 %v3473_v17  ;;  %1125 = vmatpush.msra.mxu0 %v1090_v46  ;;  %2552 = vtanh.f32 %v1022_v32  ;;  %v4197_v46 = vld [vmem:[#allocation19_spill] sm:$0xff] }
 0x2ec   :  { %1196 = vmatpush.msrb.mxu3 %v3502_v52  ;;  %1259 = vmatpush.msra.mxu1 %v1240_v60  ;;  %v1238_v32 = vld [vmem:[#allocation6 + $0x660] sm:$0xff]  ;;  %v1235_v60 = vld [vmem:[#allocation6 + $0x648] sm:$0xff] }
 0x2ed   :  { %1154 = vmatpush.msrb.mxu2 %v3477_v56  ;;  %1126 = vmatpush.msra.mxu0 %v1089_v48  ;;  %v951_v48 = vpop.f32.mrf.mxu1 }
 0x2ee   :  { %1197 = vmatpush.msrb.mxu3 %v3505_v51  ;;  %1260 = vmatpush.msra.mxu1 %v1239_v12  ;;  %v1234_v12 = vld [vmem:[#allocation6 + $0x640] sm:$0xff] }
 0x2ef   :  { %1155 = vmatpush.msrb.mxu2 %v3481_v59  ;;  %1127 = vmatpush.msra.mxu0 %v1088_v10  ;;  %v4198_v10 = vld [vmem:[#allocation20_spill] sm:$0xff] }
 0x2f0   :  { %1198 = vmatpush.msrb.mxu3 %v3508_v5  ;;  %1261 = vmatpush.msra.mxu1 %v1238_v32  ;;  %v1233_v32 = vld [vmem:[#allocation6 + $0x638] sm:$0xff] }
 0x2f1   :  { %1156 = vmatpush.msrb.mxu2 %v3485_v47  ;;  %v2553_v34 = vpop.eup %2552  ;;  %1128 = vmatpush.msra.mxu0 %v1087_v35  ;;  %v1256_v35 = vld [vmem:[#allocation6 + $0x6f0] sm:$0xff] }
 0x2f2   :  { %1199 = vmatpush.msrb.mxu3 %v4195_v44 }
 0x2f3   :  { %1157 = vmatpush.msrb.mxu2 %v3489_v58  ;;  %1114 = vmatmul.f32.vlgmr.msra.gmra.mxu3 %v2553_v34  ;;  %v1257_v34 = vld [vmem:[#allocation6 + $0x6f8] sm:$0xff] }
 0x2f4   :  { %1336 = vmatpush.msra.mxu3 %v3324_v0  ;;  %1129 = vmatpush.msra.mxu0 %v1086_v7 }
 0x2f5   :  { %1158 = vmatpush.msrb.mxu2 %v3493_v61 }
 0x2f6   :  { %1337 = vmatpush.msra.mxu3 %v3327_v50  ;;  %1130 = vmatpush.msra.mxu0 %v1085_v55  ;;  %v1237_v55 = vld [vmem:[#allocation6 + $0x658] sm:$0xff] }
 0x2f7   :  { %1159 = vmatpush.msrb.mxu2 %v3499_v63  ;;  %1262 = vmatpush.msra.mxu1 %v1237_v55  ;;  %v1230_v55 = vld [vmem:[#allocation6 + $0x620] sm:$0xff] }
 0x2f8   :  { %1160 = vmatmul.f32.vlgmr.msrb.gmra.mxu2 %v3395_v20  ;;  %1338 = vmatpush.msra.mxu3 %v3330_v53 }
 0x2f9   :  { %1131 = vmatpush.msra.mxu0 %v1084_v1  ;;  %1278 = vmatpush.msra.mxu2 %v1257_v34  ;;  %v1255_v1 = vld [vmem:[#allocation6 + $0x6e8] sm:$0xff] }
 0x2fa   :  { %1339 = vmatpush.msra.mxu3 %v3333_v8 }
 0x2fb   :  { %1132 = vmatpush.msra.mxu0 %v1083_v37  ;;  %1200 = vmatmul.f32.vlgmr.msrb.gmra.mxu3 %v3395_v20  ;;  %v3593_v20 = vld [vmem:[%s4155_s0 + $0x20] sm:$0xff] }
 0x2fc   :  { %1340 = vmatpush.msra.mxu3 %v3340_v13  ;;  %2503 = vmatmul.msk.f32.vlgmr.msrb.gmra.mxu1 %vm170_vm0, %v3593_v20 }
 0x2fd   :  { %1133 = vmatpush.msra.mxu0 %v1082_v2  ;;  %1302 = vrot.lane.b32.xlu0 %v3593_v20, %s2898_s6  ;;  %v1236_v2 = vld [vmem:[#allocation6 + $0x650] sm:$0xff] }
 0x2fe   :  { %1341 = vmatpush.msra.mxu3 %v3346_v19  ;;  %1279 = vmatpush.msra.mxu2 %v1256_v35 }
 0x2ff   :  { %1212 = vmatpush.msrb.mxu0 %v3398_v22  ;;  %1263 = vmatpush.msra.mxu1 %v1236_v2  ;;  %v1245_v2 = vld [vmem:[#allocation6 + $0x698] sm:$0xff] }
 0x300   :  { %1342 = vmatpush.msra.mxu3 %v3352_v23  ;;  %1280 = vmatpush.msra.mxu2 %v1255_v1  ;;  %v1041_v23 = vpop.f32.mrf.mxu1  ;;  %v1229_v1 = vld [vmem:[#allocation6 + $0x618] sm:$0xff] }
 0x301   :  { %1213 = vmatpush.msrb.mxu0 %v3406_v24  ;;  %v1042_v34 = vadd.f32 %v1041_v23, %v3218_v9  ;;  %1264 = vmatpush.msra.mxu1 %v1235_v60  ;;  %v1227_v23 = vld [vmem:[#allocation6 + $0x608] sm:$0xff]  ;;  %v1244_v60 = vld [vmem:[#allocation6 + $0x690] sm:$0xff] }
 0x302   :  { %1343 = vmatpush.msra.mxu3 %v3358_v27  ;;  %v1254_v27 = vld [vmem:[#allocation6 + $0x6e0] sm:$0xff] }
 0x303   :  { %1214 = vmatpush.msrb.mxu0 %v3412_v26  ;;  %1281 = vmatpush.msra.mxu2 %v1254_v27  ;;  %v1228_v27 = vld [vmem:[#allocation6 + $0x610] sm:$0xff] }
 0x304   :  { %1265 = vmatpush.msra.mxu1 %v1234_v12  ;;  %v1243_v12 = vld [vmem:[#allocation6 + $0x688] sm:$0xff] }
 0x305   :  { %1215 = vmatpush.msrb.mxu0 %v3416_v28  ;;  %1624 = vrot.lane.b32.xlu0 %v3593_v20, %s2898_s6 }
 0x306   :  { %1266 = vmatpush.msra.mxu1 %v1233_v32 }
 0x307   :  { %1216 = vmatpush.msrb.mxu0 %v3420_v30 }
 0x309   :  { %1217 = vmatpush.msrb.mxu0 %v4196_v15 }
 0x30b   :  { %1218 = vmatpush.msrb.mxu0 %v4197_v46 }
 0x30d   :  { %1219 = vmatpush.msrb.mxu0 %v4198_v10  ;;  %v1253_v10 = vld [vmem:[#allocation6 + $0x6d8] sm:$0xff] }
 0x30e   :  { %1282 = vmatpush.msra.mxu2 %v1253_v10  ;;  %v1226_v10 = vld [vmem:[#allocation6 + $0x600] sm:$0xff] }
 0x35b   :  { %v971_v7 = vpop.f32.mrf.mxu2 }
 0x35c   :  { %v972_v37 = vadd.f32 %v971_v7, %v951_v48  ;;  %v1232_v7 = vld [vmem:[#allocation6 + $0x630] sm:$0xff] }
 0x35d   :  { %1267 = vmatpush.msra.mxu1 %v1232_v7 }
 0x35e   :  { %v3606_v3 = vadd.f32 %v972_v37, %v3538_v41  ;;  %v1231_v41 = vld [vmem:[#allocation6 + $0x628] sm:$0xff] }
 0x35f   :  { %1268 = vmatpush.msra.mxu1 %v1231_v41 }
 0x361   :  { %1269 = vmatpush.msra.mxu1 %v1230_v55 }
 0x363   :  { %v1061_v48 = vpop.f32.mrf.mxu2  ;;  %1270 = vmatpush.msra.mxu1 %v1229_v1  ;;  %v1400_v1 = vld [vmem:[#allocation6 + $0x750] sm:$0xff] }
 0x364   :  { %v1062_v35 = vadd.f32 %v1061_v48, %v1042_v34  ;;  %v1242_v34 = vld [vmem:[#allocation6 + $0x680] sm:$0xff] }
 0x365   :  { %1271 = vmatpush.msra.mxu1 %v1228_v27 }
 0x366   :  { %2554 = vtanh.f32 %v1062_v35  ;;  %v1301_v35 = vpop.permute.xlu1 %1300 }
 0x367   :  { %1272 = vmatpush.msra.mxu1 %v1227_v23  ;;  %v1399_v23 = vld [vmem:[#allocation6 + $0x748] sm:$0xff] }
 0x369   :  { %1273 = vmatpush.msra.mxu1 %v1226_v10 }
 0x36b   :  { %1348 = vmatpush.msrb.mxu1 %v3337_v11  ;;  %v1252_v11 = vld [vmem:[#allocation6 + $0x6d0] sm:$0xff] }
 0x36c   :  { %v2555_v37 = vpop.eup %2554  ;;  %1283 = vmatpush.msra.mxu2 %v1252_v11  ;;  %v1398_v11 = vld [vmem:[#allocation6 + $0x740] sm:$0xff] }
 0x36d   :  { %1134 = vmatmul.f32.vlgmr.msra.gmra.mxu0 %v2555_v37  ;;  %1349 = vmatpush.msrb.mxu1 %v3343_v16  ;;  %v1251_v16 = vld [vmem:[#allocation6 + $0x6c8] sm:$0xff]  ;;  %v1418_v37 = vld [vmem:[#allocation6 + $0x7e0] sm:$0xff] }
 0x36e   :  { %1308 = vmatpush.msra.mxu0 %v3438_v49  ;;  %1284 = vmatpush.msra.mxu2 %v1251_v16 }
 0x36f   :  { %1350 = vmatpush.msrb.mxu1 %v3349_v21  ;;  %v1250_v21 = vld [vmem:[#allocation6 + $0x6c0] sm:$0xff]  ;;  %v3644_v32 = vpop.permute.xlu0 %1302 }
 0x370   :  { %1309 = vmatpush.msra.mxu0 %v3441_v6  ;;  %1285 = vmatpush.msra.mxu2 %v1250_v21  ;;  %v1304_v7 = vsel %vm170_vm0, %v1301_v35, %v3644_v32  ;;  %v1397_v21 = vld [vmem:[#allocation6 + $0x738] sm:$0xff]  ;;  %v1407_v35 = vld [vmem:[#allocation6 + $0x788] sm:$0xff] }
 0x371   :  { %1351 = vmatpush.msrb.mxu1 %v3355_v25  ;;  %v1249_v25 = vld [vmem:[#allocation6 + $0x6b8] sm:$0xff]  ;;  %2505 = vmatmul.msk.f32.vlgmr.msra.gmra.mxu3 %vm170_vm0, %v3644_v32 }
 0x372   :  { %1310 = vmatpush.msra.mxu0 %v3444_v14  ;;  %1286 = vmatpush.msra.mxu2 %v1249_v25 }
 0x373   :  { %1352 = vmatpush.msrb.mxu1 %v3361_v29  ;;  %v1248_v29 = vld [vmem:[#allocation6 + $0x6b0] sm:$0xff] }
 0x374   :  { %1311 = vmatpush.msra.mxu0 %v3447_v18  ;;  %1287 = vmatpush.msra.mxu2 %v1248_v29  ;;  %v1396_v29 = vld [vmem:[#allocation6 + $0x730] sm:$0xff] }
 0x375   :  { %2504 = vmatmul.msk.f32.vlgmr.msrb.gmra.mxu0 %vm170_vm0, %v3593_v20  ;;  %1353 = vmatpush.msrb.mxu1 %v3364_v31 }
 0x376   :  { %1312 = vmatpush.msra.mxu0 %v3453_v38 }
 0x377   :  { %1354 = vmatpush.msrb.mxu1 %v3367_v33 }
 0x378   :  { %1313 = vmatpush.msra.mxu0 %v3457_v40 }
 0x379   :  { %1355 = vmatpush.msrb.mxu1 %v3370_v36  ;;  %v1247_v36 = vld [vmem:[#allocation6 + $0x6a8] sm:$0xff] }
 0x37a   :  { %1314 = vmatpush.msra.mxu0 %v3461_v43  ;;  %1288 = vmatpush.msra.mxu2 %v1247_v36 }
 0x37b   :  { %1356 = vmatpush.msrb.mxu1 %v3373_v39  ;;  %v1161_v31 = vpop.f32.mrf.mxu2  ;;  %v1181_v39 = vpop.f32.mrf.mxu1 }
 0x37c   :  { %1315 = vmatpush.msra.mxu0 %v3465_v45  ;;  %v1162_v33 = vadd.f32 %v1161_v31, %v3204_v57  ;;  %v1395_v31 = vld [vmem:[#allocation6 + $0x728] sm:$0xff] }
 0x37d   :  { %1357 = vmatpush.msrb.mxu1 %v3376_v54  ;;  %v1246_v54 = vld [vmem:[#allocation6 + $0x6a0] sm:$0xff] }
 0x37e   :  { %1316 = vmatpush.msra.mxu0 %v3469_v42  ;;  %1289 = vmatpush.msra.mxu2 %v1246_v54  ;;  %v1391_v54 = vld [vmem:[#allocation6 + $0x708] sm:$0xff] }
 0x37f   :  { %1358 = vmatpush.msrb.mxu1 %v3379_v4  ;;  %v1182_v4 = vadd.f32 %v1181_v39, %v1162_v33  ;;  %v1393_v33 = vld [vmem:[#allocation6 + $0x718] sm:$0xff]  ;;  %v1392_v39 = vld [vmem:[#allocation6 + $0x710] sm:$0xff] }
 0x380   :  { %1317 = vmatpush.msra.mxu0 %v3473_v17  ;;  %1290 = vmatpush.msra.mxu2 %v1245_v2  ;;  %v3676_v2 = vld [vmem:[#allocation2 + $0xf8] sm:$0xff] }
 0x381   :  { %1359 = vmatpush.msrb.mxu1 %v3496_v62  ;;  %2556 = vtanh.f32 %v1182_v4  ;;  %v1390_v4 = vld [vmem:[#allocation6 + $0x700] sm:$0xff] }
 0x382   :  { %1318 = vmatpush.msra.mxu0 %v3477_v56  ;;  %1291 = vmatpush.msra.mxu2 %v1244_v60 }
 0x383   :  { %1360 = vmatpush.msrb.mxu1 %v3502_v52 }
 0x384   :  { %1319 = vmatpush.msra.mxu0 %v3481_v59  ;;  %1292 = vmatpush.msra.mxu2 %v1243_v12  ;;  %v1409_v12 = vld [vmem:[#allocation6 + $0x798] sm:$0xff] }
 0x385   :  { %1361 = vmatpush.msrb.mxu1 %v3505_v51 }
 0x386   :  { %1320 = vmatpush.msra.mxu0 %v3485_v47  ;;  %1293 = vmatpush.msra.mxu2 %v1242_v34 }
 0x387   :  { %1362 = vmatpush.msrb.mxu1 %v3508_v5  ;;  %v2557_v48 = vpop.eup %2556 }
 0x388   :  { %1321 = vmatpush.msra.mxu0 %v3489_v58  ;;  %1274 = vmatmul.f32.vlgmr.msra.gmra.mxu1 %v2557_v48  ;;  %v1408_v48 = vld [vmem:[#allocation6 + $0x790] sm:$0xff] }
 0x389   :  { %1363 = vmatpush.msrb.mxu1 %v4195_v44  ;;  %1376 = vmatpush.msrb.mxu2 %v3398_v22  ;;  %v4199_v22 = vld [vmem:[#allocation20_spill] sm:$0xff] }
 0x38a   :  { %1322 = vmatpush.msra.mxu0 %v3493_v61 }
 0x38b   :  { %1377 = vmatpush.msrb.mxu2 %v3406_v24  ;;  %1496 = vmatpush.msra.mxu1 %v3324_v0  ;;  %v1115_v0 = vpop.f32.mrf.mxu3  ;;  %v1404_v24 = vld [vmem:[#allocation6 + $0x770] sm:$0xff] }
 0x38c   :  { %1323 = vmatpush.msra.mxu0 %v3499_v63 }
 0x38d   :  { %1324 = vmatmul.f32.vlgmr.msra.gmra.mxu0 %v1304_v7  ;;  %1378 = vmatpush.msrb.mxu2 %v3412_v26  ;;  %v1403_v26 = vld [vmem:[#allocation6 + $0x768] sm:$0xff] }
 0x38e   :  { %1497 = vmatpush.msra.mxu1 %v3327_v50  ;;  %v1405_v50 = vld [vmem:[#allocation6 + $0x778] sm:$0xff] }
 0x38f   :  { %1379 = vmatpush.msrb.mxu2 %v3416_v28  ;;  %1422 = vmatpush.msrb.mxu3 %v1405_v50  ;;  %v4201_v28 = vld [vmem:[#allocation17_spill] sm:$0xff]  ;;  %v3737_v50 = vld [vmem:[#allocation2 + $0x178] sm:$0xff] }
 0x390   :  { %1498 = vmatpush.msra.mxu1 %v3330_v53  ;;  %v4200_v53 = vld [vmem:[#allocation16_spill] sm:$0xff] }
 0x391   :  { %1364 = vmatmul.f32.vlgmr.msrb.gmra.mxu1 %v1304_v7  ;;  %1380 = vmatpush.msrb.mxu2 %v3420_v30  ;;  %v1421_v30 = vld [vmem:[#allocation6 + $0x7f8] sm:$0xff] }
 0x392   :  { %1499 = vmatpush.msra.mxu1 %v3333_v8  ;;  %1423 = vmatpush.msrb.mxu3 %v1404_v24  ;;  %v1402_v8 = vld [vmem:[#allocation6 + $0x760] sm:$0xff] }
 0x393   :  { %1381 = vmatpush.msrb.mxu2 %v4196_v15  ;;  %1442 = vmatpush.msrb.mxu0 %v1421_v30  ;;  %v1201_v55 = vpop.f32.mrf.mxu3  ;;  %v3731_v7 = vld [vmem:[#allocation2 + $0x160] sm:$0xff]  ;;  %v3756_v30 = vld [vmem:[#allocation2 + $0x148] sm:$0xff] }
 0x394   :  { %1500 = vmatpush.msra.mxu1 %v3340_v13  ;;  %1424 = vmatpush.msrb.mxu3 %v1403_v26  ;;  %v1420_v13 = vld [vmem:[#allocation6 + $0x7f0] sm:$0xff]  ;;  %v1202_v10 = vadd.f32 %v1201_v55, %v3218_v9  ;;  %v3740_v24 = vld [vmem:[#allocation2 + $0x140] sm:$0xff] }
 0x395   :  { %1382 = vmatpush.msrb.mxu2 %v4197_v46  ;;  %v1401_v46 = vld [vmem:[#allocation6 + $0x758] sm:$0xff]  ;;  %1443 = vmatpush.msrb.mxu0 %v1420_v13  ;;  %v3747_v26 = vld [vmem:[#allocation2 + $0x130] sm:$0xff] }
 0x396   :  { %1501 = vmatpush.msra.mxu1 %v3346_v19  ;;  %v1419_v19 = vld [vmem:[#allocation6 + $0x7e8] sm:$0xff]  ;;  %1425 = vmatpush.msrb.mxu3 %v1402_v8  ;;  %v3753_v8 = vld [vmem:[#allocation2 + $0x120] sm:$0xff] }
 0x397   :  { %1383 = vmatpush.msrb.mxu2 %v4199_v22  ;;  %1444 = vmatpush.msrb.mxu0 %v1419_v19  ;;  %v3734_v22 = vld [vmem:[#allocation2 + $0x150] sm:$0xff]  ;;  %4202 = vst [vmem:[#allocation21_spill] sm:$0xff] %v3753_v8  ;;  %v3777_v19 = vld [vmem:[#allocation2 + $0x128] sm:$0xff] }
 0x398   :  { %1502 = vmatpush.msra.mxu1 %v4200_v53  ;;  %1426 = vmatpush.msrb.mxu3 %v1401_v46  ;;  %v3744_v53 = vld [vmem:[#allocation2 + $0x168] sm:$0xff]  ;;  %v3764_v13 = vld [vmem:[#allocation2 + $0x110] sm:$0xff]  ;;  %v3774_v46 = vld [vmem:[#allocation2 + $0x100] sm:$0xff]  ;;  %4205 = vst [vmem:[#allocation20_spill] sm:$0xff] %v3777_v19 }
 0x399   :  { %1445 = vmatpush.msrb.mxu0 %v1418_v37  ;;  %4203 = vst [vmem:[#allocation18_spill] sm:$0xff] %v3764_v13  ;;  %v1565_v37 = vld [vmem:[#allocation6 + $0x878] sm:$0xff] }
 0x39a   :  { %1503 = vmatpush.msra.mxu1 %v4201_v28  ;;  %1427 = vmatpush.msrb.mxu3 %v1400_v1  ;;  %v3750_v28 = vld [vmem:[#allocation2 + $0x158] sm:$0xff]  ;;  %4204 = vst [vmem:[#allocation19_spill] sm:$0xff] %v3774_v46  ;;  %v3783_v1 = vld [vmem:[#allocation2 + $0x108] sm:$0xff] }
 0x39b   :  { %4207 = vst [vmem:[#allocation17_spill] sm:$0xff] %v3783_v1 }
 0x39c   :  { %1428 = vmatpush.msrb.mxu3 %v1399_v23  ;;  %v1564_v23 = vld [vmem:[#allocation6 + $0x870] sm:$0xff]  ;;  %1582 = vmatpush.msrb.mxu1 %v1565_v37 }
 0x39d   :  { %v3798_v37 = vld [vmem:[#allocation2 + $0xd0] sm:$0xff] }
 0x39e   :  { %1429 = vmatpush.msrb.mxu3 %v1398_v11  ;;  %1583 = vmatpush.msrb.mxu1 %v1564_v23  ;;  %v1562_v11 = vld [vmem:[#allocation6 + $0x860] sm:$0xff] }
 0x39f   :  { %v3801_v23 = vld [vmem:[#allocation2 + $0xc0] sm:$0xff] }
 0x3a0   :  { %1430 = vmatpush.msrb.mxu3 %v1397_v21  ;;  %v1580_v21 = vld [vmem:[#allocation6 + $0x8f0] sm:$0xff] }
 0x3a2   :  { %1431 = vmatpush.msrb.mxu3 %v1396_v29  ;;  %v1561_v29 = vld [vmem:[#allocation6 + $0x858] sm:$0xff] }
 0x3a4   :  { %1432 = vmatpush.msrb.mxu3 %v1395_v31  ;;  %v1579_v31 = vld [vmem:[#allocation6 + $0x8e8] sm:$0xff] }
 0x3ea   :  { %v1135_v15 = vpop.f32.mrf.mxu0 }
 0x3eb   :  { %v1136_v41 = vadd.f32 %v1135_v15, %v1115_v0  ;;  %v1406_v0 = vld [vmem:[#allocation6 + $0x780] sm:$0xff]  ;;  %v3771_v15 = vld [vmem:[#allocation2 + $0x138] sm:$0xff] }
 0x3ed   :  { %v3667_v27 = vadd.f32 %v1136_v41, %v3606_v3  ;;  %v1394_v3 = vld [vmem:[#allocation6 + $0x720] sm:$0xff]  ;;  %v3780_v41 = vld [vmem:[#allocation2 + $0x118] sm:$0xff] }
 0x3ee   :  { %1433 = vmatpush.msrb.mxu3 %v1394_v3  ;;  %4206 = vst [vmem:[#allocation16_spill] sm:$0xff] %v3780_v41 }
 0x3f0   :  { %1434 = vmatpush.msrb.mxu3 %v1393_v33  ;;  %v1560_v33 = vld [vmem:[#allocation6 + $0x850] sm:$0xff] }
 0x3f2   :  { %v1221_v16 = vpop.f32.mrf.mxu0  ;;  %1435 = vmatpush.msrb.mxu3 %v1392_v39 }
 0x3f3   :  { %v1222_v25 = vadd.f32 %v1221_v16, %v1202_v10  ;;  %v1563_v10 = vld [vmem:[#allocation6 + $0x868] sm:$0xff]  ;;  %v1581_v16 = vld [vmem:[#allocation6 + $0x8f8] sm:$0xff] }
 0x3f4   :  { %1436 = vmatpush.msrb.mxu3 %v1391_v54  ;;  %1584 = vmatpush.msrb.mxu1 %v1563_v10  ;;  %v3807_v10 = vld [vmem:[#allocation2 + $0xb0] sm:$0xff] }
 0x3f5   :  { %2558 = vtanh.f32 %v1222_v25 }
 0x3f6   :  { %1437 = vmatpush.msrb.mxu3 %v1390_v4  ;;  %1585 = vmatpush.msrb.mxu1 %v1562_v11  ;;  %v1559_v4 = vld [vmem:[#allocation6 + $0x848] sm:$0xff]  ;;  %v3811_v11 = vld [vmem:[#allocation2 + $0xa0] sm:$0xff] }
 0x3f8   :  { %1508 = vmatpush.msra.mxu3 %v3676_v2  ;;  %1586 = vmatpush.msrb.mxu1 %v1561_v29  ;;  %v3827_v29 = vld [vmem:[#allocation2 + $0x60] sm:$0xff] }
 0x3fa   :  { %1587 = vmatpush.msrb.mxu1 %v1560_v33  ;;  %v3839_v33 = vld [vmem:[#allocation2 + $0x30] sm:$0xff] }
 0x3fb   :  { %v2559_v36 = vpop.eup %2558 }
 0x3fc   :  { %1294 = vmatmul.f32.vlgmr.msra.gmra.mxu2 %v2559_v36  ;;  %v1578_v36 = vld [vmem:[#allocation6 + $0x8e0] sm:$0xff]  ;;  %1588 = vmatpush.msrb.mxu1 %v1559_v4 }
 0x3fd   :  { %1468 = vmatpush.msra.mxu2 %v3438_v49  ;;  %v3680_v49 = vld [vmem:[#allocation2 + $0xe8] sm:$0xff] }
 0x3fe   :  { %1509 = vmatpush.msra.mxu3 %v3680_v49  ;;  %v3850_v4 = vld [vmem:[#allocation2 + $0x48] sm:$0xff] }
 0x3ff   :  { %1469 = vmatpush.msra.mxu2 %v3441_v6  ;;  %v3684_v6 = vld [vmem:[#allocation2 + $0xd8] sm:$0xff] }
 0x400   :  { %1510 = vmatpush.msra.mxu3 %v3684_v6 }
 0x401   :  { %1470 = vmatpush.msra.mxu2 %v3444_v14  ;;  %v3688_v14 = vld [vmem:[#allocation2 + $0xc8] sm:$0xff] }
 0x402   :  { %1511 = vmatpush.msra.mxu3 %v3688_v14 }
 0x403   :  { %1471 = vmatpush.msra.mxu2 %v3447_v18  ;;  %v3692_v18 = vld [vmem:[#allocation2 + $0xb8] sm:$0xff] }
 0x404   :  { %2506 = vmatmul.msk.f32.vlgmr.msrb.gmra.mxu2 %vm170_vm0, %v3644_v32  ;;  %1512 = vmatpush.msra.mxu3 %v3692_v18  ;;  %v3728_v32 = vld [vmem:[#allocation2 + $0x170] sm:$0xff] }
 0x405   :  { %1472 = vmatpush.msra.mxu2 %v3453_v38  ;;  %v3696_v38 = vld [vmem:[#allocation2 + $0xa8] sm:$0xff]  ;;  %v1275_v55 = vpop.f32.mrf.mxu1 }
 0x406   :  { %1513 = vmatpush.msra.mxu3 %v3696_v38 }
 0x407   :  { %1473 = vmatpush.msra.mxu2 %v3457_v40  ;;  %v3700_v40 = vld [vmem:[#allocation2 + $0x98] sm:$0xff] }
 0x408   :  { %1514 = vmatpush.msra.mxu3 %v3700_v40 }
 0x409   :  { %1474 = vmatpush.msra.mxu2 %v3461_v43  ;;  %v3704_v43 = vld [vmem:[#allocation2 + $0x88] sm:$0xff] }
 0x40a   :  { %1515 = vmatpush.msra.mxu3 %v3704_v43 }
 0x40b   :  { %1475 = vmatpush.msra.mxu2 %v3465_v45  ;;  %v3708_v45 = vld [vmem:[#allocation2 + $0x78] sm:$0xff] }
 0x40c   :  { %1516 = vmatpush.msra.mxu3 %v3708_v45 }
 0x40d   :  { %1476 = vmatpush.msra.mxu2 %v3469_v42  ;;  %v3712_v42 = vld [vmem:[#allocation2 + $0x68] sm:$0xff] }
 0x40e   :  { %1517 = vmatpush.msra.mxu3 %v3712_v42  ;;  %v1365_v54 = vpop.f32.mrf.mxu1 }
 0x40f   :  { %1477 = vmatpush.msra.mxu2 %v3473_v17  ;;  %v3716_v17 = vld [vmem:[#allocation2 + $0x58] sm:$0xff] }
 0x410   :  { %1518 = vmatpush.msra.mxu3 %v3716_v17 }
 0x411   :  { %1478 = vmatpush.msra.mxu2 %v3477_v56  ;;  %v1417_v56 = vld [vmem:[#allocation6 + $0x7d8] sm:$0xff] }
 0x412   :  { %1519 = vmatpush.msra.mxu3 %v3496_v62  ;;  %1446 = vmatpush.msrb.mxu0 %v1417_v56  ;;  %v1412_v62 = vld [vmem:[#allocation6 + $0x7b0] sm:$0xff]  ;;  %v1577_v56 = vld [vmem:[#allocation6 + $0x8d8] sm:$0xff] }
 0x413   :  { %1479 = vmatpush.msra.mxu2 %v3481_v59  ;;  %v1416_v59 = vld [vmem:[#allocation6 + $0x7d0] sm:$0xff] }
 0x414   :  { %1520 = vmatpush.msra.mxu3 %v3502_v52  ;;  %1447 = vmatpush.msrb.mxu0 %v1416_v59  ;;  %v1558_v59 = vld [vmem:[#allocation6 + $0x840] sm:$0xff] }
 0x415   :  { %1480 = vmatpush.msra.mxu2 %v3485_v47  ;;  %v1415_v47 = vld [vmem:[#allocation6 + $0x7c8] sm:$0xff]  ;;  %1589 = vmatpush.msrb.mxu1 %v1558_v59  ;;  %v3856_v59 = vld [vmem:[#allocation2 + $0x38] sm:$0xff] }
 0x416   :  { %1521 = vmatpush.msra.mxu3 %v3505_v51  ;;  %1448 = vmatpush.msrb.mxu0 %v1415_v47  ;;  %v1345_v51 = vpop.f32.mrf.mxu3  ;;  %v1576_v47 = vld [vmem:[#allocation6 + $0x8d0] sm:$0xff] }
 0x417   :  { %1481 = vmatpush.msra.mxu2 %v3489_v58  ;;  %v1414_v58 = vld [vmem:[#allocation6 + $0x7c0] sm:$0xff] }
 0x418   :  { %1522 = vmatpush.msra.mxu3 %v3508_v5  ;;  %1449 = vmatpush.msrb.mxu0 %v1414_v58  ;;  %v1411_v5 = vld [vmem:[#allocation6 + $0x7a8] sm:$0xff]  ;;  %v1366_v58 = vadd.f32 %v1365_v54, %v3218_v9 }
 0x419   :  { %1482 = vmatpush.msra.mxu2 %v3493_v61  ;;  %v1413_v61 = vld [vmem:[#allocation6 + $0x7b8] sm:$0xff]  ;;  %v3847_v54 = vld [vmem:[#allocation2 + $0x10] sm:$0xff] }
 0x41a   :  { %1523 = vmatpush.msra.mxu3 %v4195_v44  ;;  %1450 = vmatpush.msrb.mxu0 %v1413_v61  ;;  %v1410_v44 = vld [vmem:[#allocation6 + $0x7a0] sm:$0xff] }
 0x41b   :  { %1483 = vmatpush.msra.mxu2 %v3499_v63  ;;  %v1325_v63 = vpop.f32.mrf.mxu0 }
 0x41c   :  { %1484 = vmatmul.f32.vlgmr.msra.gmra.mxu2 %v3593_v20  ;;  %1451 = vmatpush.msrb.mxu0 %v1412_v62  ;;  %v1326_v52 = vadd.f32 %v1325_v63, %v3204_v57  ;;  %v1557_v62 = vld [vmem:[#allocation6 + $0x838] sm:$0xff]  ;;  %v1575_v63 = vld [vmem:[#allocation6 + $0x8c8] sm:$0xff] }
 0x41d   :  { %1602 = vmatpush.msrb.mxu2 %v1581_v16  ;;  %1590 = vmatpush.msrb.mxu1 %v1557_v62  ;;  %v3815_v16 = vld [vmem:[#allocation2 + $0x90] sm:$0xff]  ;;  %v1573_v62 = vld [vmem:[#allocation6 + $0x8b8] sm:$0xff] }
 0x41e   :  { %v1346_v60 = vadd.f32 %v1345_v51, %v1326_v52  ;;  %1452 = vmatpush.msrb.mxu0 %v1411_v5  ;;  %v1574_v51 = vld [vmem:[#allocation6 + $0x8c0] sm:$0xff] }
 0x41f   :  { %1603 = vmatpush.msrb.mxu2 %v1580_v21  ;;  %v1554_v5 = vld [vmem:[#allocation6 + $0x820] sm:$0xff] }
 0x420   :  { %2560 = vtanh.f32 %v1346_v60  ;;  %1453 = vmatpush.msrb.mxu0 %v1410_v44  ;;  %v1555_v60 = vld [vmem:[#allocation6 + $0x828] sm:$0xff]  ;;  %v1553_v44 = vld [vmem:[#allocation6 + $0x818] sm:$0xff] }
 0x421   :  { %1604 = vmatpush.msrb.mxu2 %v1579_v31  ;;  %v3819_v21 = vld [vmem:[#allocation2 + $0x80] sm:$0xff]  ;;  %v3831_v31 = vld [vmem:[#allocation2 + $0x50] sm:$0xff] }
 0x422   :  { %1454 = vmatpush.msrb.mxu0 %v1409_v12 }
 0x423   :  { %1605 = vmatpush.msrb.mxu2 %v1578_v36  ;;  %v3843_v36 = vld [vmem:[#allocation2 + $0x20] sm:$0xff] }
 0x424   :  { %1455 = vmatpush.msrb.mxu0 %v1408_v48  ;;  %v3792_v48 = vld [vmem:[#allocation2 + $0xf0] sm:$0xff] }
 0x425   :  { %1606 = vmatpush.msrb.mxu2 %v1577_v56  ;;  %v3853_v56 = vld [vmem:[#allocation2] sm:$0xff] }
 0x426   :  { %v2561_v34 = vpop.eup %2560  ;;  %1456 = vmatpush.msrb.mxu0 %v1407_v35  ;;  %v1551_v35 = vld [vmem:[#allocation6 + $0x808] sm:$0xff] }
 0x427   :  { %1438 = vmatmul.f32.vlgmr.msrb.gmra.mxu3 %v2561_v34  ;;  %1607 = vmatpush.msrb.mxu2 %v1576_v47  ;;  %v1552_v34 = vld [vmem:[#allocation6 + $0x810] sm:$0xff]  ;;  %v3859_v47 = vld [vmem:[#allocation2 + $0x28] sm:$0xff] }
 0x428   :  { %1660 = vmatpush.msrb.mxu3 %v3728_v32  ;;  %1457 = vmatpush.msrb.mxu0 %v1406_v0  ;;  %v3795_v0 = vld [vmem:[#allocation2 + $0xe0] sm:$0xff] }
 0x429   :  { %1608 = vmatpush.msrb.mxu2 %v1575_v63  ;;  %v1572_v63 = vld [vmem:[#allocation6 + $0x8b0] sm:$0xff] }
 0x42a   :  { %1661 = vmatpush.msrb.mxu3 %v3731_v7  ;;  %1536 = vmatpush.msra.mxu0 %v3737_v50 }
 0x42b   :  { %1609 = vmatpush.msrb.mxu2 %v1574_v51  ;;  %v1571_v51 = vld [vmem:[#allocation6 + $0x8a8] sm:$0xff] }
 0x42c   :  { %1662 = vmatpush.msrb.mxu3 %v3734_v22  ;;  %1537 = vmatpush.msra.mxu0 %v3744_v53 }
 0x42d   :  { %1610 = vmatpush.msrb.mxu2 %v1573_v62 }
 0x42e   :  { %1663 = vmatpush.msrb.mxu3 %v3740_v24  ;;  %1538 = vmatpush.msra.mxu0 %v3750_v28 }
 0x42f   :  { %1524 = vmatmul.f32.vlgmr.msra.gmra.mxu3 %v3593_v20  ;;  %v3762_v20 = vld [vmem:[%s4155_s0 + $0x28] sm:$0xff]  ;;  %1611 = vmatpush.msrb.mxu2 %v1572_v63  ;;  %v1625_v63 = vpop.permute.xlu0 %1624 }
 0x430   :  { %1664 = vmatpush.msrb.mxu3 %v3747_v26  ;;  %1539 = vmatpush.msra.mxu0 %v3756_v30 }
 0x431   :  { %2507 = vmatmul.msk.f32.vlgmr.msra.gmra.mxu1 %vm170_vm0, %v3762_v20  ;;  %1626 = vrot.lane.b32.xlu2 %v3762_v20, %s2898_s6 }
 0x432   :  { %1665 = vmatpush.msrb.mxu3 %v3753_v8  ;;  %1540 = vmatpush.msra.mxu0 %v3771_v15 }
 0x433   :  { %1612 = vmatpush.msrb.mxu2 %v1571_v51  ;;  %v1728_v51 = vld [vmem:[#allocation6 + $0x970] sm:$0xff] }
 0x434   :  { %1666 = vmatpush.msrb.mxu3 %v3764_v13  ;;  %1541 = vmatpush.msra.mxu0 %v3777_v19 }
 0x436   :  { %1667 = vmatpush.msrb.mxu3 %v3774_v46  ;;  %1542 = vmatpush.msra.mxu0 %v3780_v41 }
 0x438   :  { %1543 = vmatpush.msra.mxu0 %v3783_v1 }
 0x439   :  { %1948 = vrot.lane.b32.xlu2 %v3762_v20, %s2898_s6 }
 0x47f   :  { %v1295_v25 = vpop.f32.mrf.mxu2 }
 0x480   :  { %v1296_v3 = vadd.f32 %v1295_v25, %v1275_v55  ;;  %v1550_v55 = vld [vmem:[#allocation6 + $0x800] sm:$0xff]  ;;  %v3823_v25 = vld [vmem:[#allocation2 + $0x70] sm:$0xff] }
 0x482   :  { %v3789_v39 = vadd.f32 %v1296_v3, %v3667_v27  ;;  %v1556_v27 = vld [vmem:[#allocation6 + $0x830] sm:$0xff]  ;;  %v3835_v3 = vld [vmem:[#allocation2 + $0x40] sm:$0xff] }
 0x483   :  { %1591 = vmatpush.msrb.mxu1 %v1556_v27 }
 0x485   :  { %1592 = vmatpush.msrb.mxu1 %v1555_v60 }
 0x487   :  { %v1385_v61 = vpop.f32.mrf.mxu2  ;;  %1593 = vmatpush.msrb.mxu1 %v1554_v5  ;;  %v1570_v5 = vld [vmem:[#allocation6 + $0x8a0] sm:$0xff] }
 0x488   :  { %v1386_v52 = vadd.f32 %v1385_v61, %v1366_v58  ;;  %v3862_v58 = vld [vmem:[#allocation2 + $0x18] sm:$0xff]  ;;  %v3865_v61 = vld [vmem:[#allocation2 + $0x8] sm:$0xff]  ;;  %1613 = vmatpush.msrb.mxu2 %v1570_v5 }
 0x489   :  { %1594 = vmatpush.msrb.mxu1 %v1553_v44  ;;  %4208 = vst [vmem:[#allocation22_spill] sm:$0xff] %v3865_v61  ;;  %v1726_v5 = vld [vmem:[#allocation6 + $0x960] sm:$0xff] }
 0x48a   :  { %2562 = vtanh.f32 %v1386_v52 }
 0x48b   :  { %1595 = vmatpush.msrb.mxu1 %v1552_v34  ;;  %v1568_v34 = vld [vmem:[#allocation6 + $0x890] sm:$0xff]  ;;  %v3869_v62 = vpop.permute.xlu2 %1626 }
 0x48c   :  { %2509 = vmatmul.msk.f32.vlgmr.msrb.gmra.mxu3 %vm170_vm0, %v3869_v62 }
 0x48d   :  { %1596 = vmatpush.msrb.mxu1 %v1551_v35  ;;  %v1567_v35 = vld [vmem:[#allocation6 + $0x888] sm:$0xff] }
 0x48f   :  { %1597 = vmatpush.msrb.mxu1 %v1550_v55  ;;  %v1566_v55 = vld [vmem:[#allocation6 + $0x880] sm:$0xff] }
 0x490   :  { %v2563_v12 = vpop.eup %2562 }
 0x491   :  { %1458 = vmatmul.f32.vlgmr.msrb.gmra.mxu0 %v2563_v12  ;;  %1672 = vmatpush.msra.mxu1 %v3676_v2  ;;  %v1569_v12 = vld [vmem:[#allocation6 + $0x898] sm:$0xff] }
 0x492   :  { %1632 = vmatpush.msrb.mxu0 %v3792_v48  ;;  %1614 = vmatpush.msrb.mxu2 %v1569_v12  ;;  %v1744_v12 = vld [vmem:[#allocation6 + $0x9f0] sm:$0xff] }
 0x493   :  { %1673 = vmatpush.msra.mxu1 %v3680_v49 }
 0x494   :  { %1633 = vmatpush.msrb.mxu0 %v3795_v0  ;;  %1615 = vmatpush.msrb.mxu2 %v1568_v34 }
 0x495   :  { %1674 = vmatpush.msra.mxu1 %v3684_v6 }
 0x496   :  { %1634 = vmatpush.msrb.mxu0 %v3798_v37  ;;  %1616 = vmatpush.msrb.mxu2 %v1567_v35  ;;  %v1725_v35 = vld [vmem:[#allocation6 + $0x958] sm:$0xff] }
 0x497   :  { %1675 = vmatpush.msra.mxu1 %v3688_v14 }
 0x498   :  { %1635 = vmatpush.msrb.mxu0 %v3801_v23  ;;  %1617 = vmatpush.msrb.mxu2 %v1566_v55  ;;  %v1743_v55 = vld [vmem:[#allocation6 + $0x9e8] sm:$0xff] }
 0x499   :  { %2508 = vmatmul.msk.f32.vlgmr.msra.gmra.mxu0 %vm170_vm0, %v3762_v20  ;;  %1676 = vmatpush.msra.mxu1 %v3692_v18 }
 0x49a   :  { %1636 = vmatpush.msrb.mxu0 %v3807_v10  ;;  %1700 = vmatpush.msra.mxu2 %v3737_v50 }
 0x49b   :  { %1677 = vmatpush.msra.mxu1 %v3696_v38 }
 0x49c   :  { %1637 = vmatpush.msrb.mxu0 %v3811_v11  ;;  %1701 = vmatpush.msra.mxu2 %v3744_v53 }
 0x49d   :  { %1678 = vmatpush.msra.mxu1 %v3700_v40 }
 0x49e   :  { %1638 = vmatpush.msrb.mxu0 %v3815_v16  ;;  %1702 = vmatpush.msra.mxu2 %v3750_v28 }
 0x49f   :  { %1679 = vmatpush.msra.mxu1 %v3704_v43  ;;  %v1485_v52 = vpop.f32.mrf.mxu2 }
 0x4a0   :  { %1639 = vmatpush.msrb.mxu0 %v3819_v21  ;;  %v1486_v27 = vadd.f32 %v1485_v52, %v3204_v57  ;;  %v1628_v52 = vsel %vm170_vm0, %v1625_v63, %v3869_v62  ;;  %1703 = vmatpush.msra.mxu2 %v3756_v30 }
 0x4a1   :  { %1680 = vmatpush.msra.mxu1 %v3708_v45 }
 0x4a2   :  { %1640 = vmatpush.msrb.mxu0 %v3823_v25  ;;  %1704 = vmatpush.msra.mxu2 %v3771_v15 }
 0x4a3   :  { %1681 = vmatpush.msra.mxu1 %v3712_v42 }
 0x4a4   :  { %1641 = vmatpush.msrb.mxu0 %v3827_v29  ;;  %1705 = vmatpush.msra.mxu2 %v3777_v19 }
 0x4a5   :  { %1682 = vmatpush.msra.mxu1 %v3716_v17 }
 0x4a6   :  { %1642 = vmatpush.msrb.mxu0 %v3831_v31  ;;  %1706 = vmatpush.msra.mxu2 %v3780_v41 }
 0x4a7   :  { %1683 = vmatpush.msra.mxu1 %v3850_v4 }
 0x4a8   :  { %1643 = vmatpush.msrb.mxu0 %v3835_v3  ;;  %1707 = vmatpush.msra.mxu2 %v3783_v1  ;;  %v1724_v1 = vld [vmem:[#allocation6 + $0x950] sm:$0xff] }
 0x4a9   :  { %1684 = vmatpush.msra.mxu1 %v3856_v59 }
 0x4aa   :  { %1644 = vmatpush.msrb.mxu0 %v3839_v33 }
 0x4ab   :  { %1685 = vmatpush.msra.mxu1 %v3859_v47 }
 0x4ac   :  { %1645 = vmatpush.msrb.mxu0 %v3843_v36 }
 0x4ad   :  { %1686 = vmatpush.msra.mxu1 %v3862_v58 }
 0x4ae   :  { %1646 = vmatpush.msrb.mxu0 %v3847_v54  ;;  %v1505_v60 = vpop.f32.mrf.mxu1 }
 0x4af   :  { %1687 = vmatpush.msra.mxu1 %v3865_v61  ;;  %v1506_v44 = vadd.f32 %v1505_v60, %v1486_v27  ;;  %v1729_v27 = vld [vmem:[#allocation6 + $0x978] sm:$0xff]  ;;  %v1727_v60 = vld [vmem:[#allocation6 + $0x968] sm:$0xff] }
 0x4b0   :  { %1647 = vmatpush.msrb.mxu0 %v3853_v56  ;;  %1746 = vmatpush.msra.mxu3 %v1729_v27  ;;  %v1742_v27 = vld [vmem:[#allocation6 + $0x9e0] sm:$0xff] }
 0x4b1   :  { %2564 = vtanh.f32 %v1506_v44  ;;  %1648 = vmatmul.f32.vlgmr.msrb.gmra.mxu0 %v1628_v52  ;;  %v1745_v44 = vld [vmem:[#allocation6 + $0x9f8] sm:$0xff] }
 0x4b2   :  { %1747 = vmatpush.msra.mxu3 %v1728_v51  ;;  %1766 = vmatpush.msra.mxu0 %v1745_v44  ;;  %v1723_v51 = vld [vmem:[#allocation6 + $0x948] sm:$0xff] }
 0x4b4   :  { %1748 = vmatpush.msra.mxu3 %v1727_v60  ;;  %1767 = vmatpush.msra.mxu0 %v1744_v12  ;;  %v1722_v60 = vld [vmem:[#allocation6 + $0x940] sm:$0xff]  ;;  %v1719_v12 = vld [vmem:[#allocation6 + $0x928] sm:$0xff] }
 0x4b6   :  { %1749 = vmatpush.msra.mxu3 %v1726_v5  ;;  %1768 = vmatpush.msra.mxu0 %v1743_v55  ;;  %v1720_v5 = vld [vmem:[#allocation6 + $0x930] sm:$0xff] }
 0x4b7   :  { %v2565_v61 = vpop.eup %2564  ;;  %v1716_v55 = vld [vmem:[#allocation6 + $0x910] sm:$0xff] }
 0x4b8   :  { %1598 = vmatmul.f32.vlgmr.msrb.gmra.mxu1 %v2565_v61  ;;  %v1439_v61 = vpop.f32.mrf.mxu3  ;;  %1750 = vmatpush.msra.mxu3 %v1725_v35 }
 0x4b9   :  { %1820 = vmatpush.msrb.mxu1 %v3728_v32  ;;  %1769 = vmatpush.msra.mxu0 %v1742_v27  ;;  %v1738_v27 = vld [vmem:[#allocation6 + $0x9c0] sm:$0xff] }
 0x4ba   :  { %1751 = vmatpush.msra.mxu3 %v1724_v1  ;;  %v1715_v1 = vld [vmem:[#allocation6 + $0x908] sm:$0xff] }
 0x4bb   :  { %1821 = vmatpush.msrb.mxu1 %v3731_v7 }
 0x4bc   :  { %1752 = vmatpush.msra.mxu3 %v1723_v51  ;;  %v1737_v51 = vld [vmem:[#allocation6 + $0x9b8] sm:$0xff] }
 0x4bd   :  { %1822 = vmatpush.msrb.mxu1 %v3734_v22 }
 0x4be   :  { %1753 = vmatpush.msra.mxu3 %v1722_v60  ;;  %v1736_v60 = vld [vmem:[#allocation6 + $0x9b0] sm:$0xff] }
 0x4bf   :  { %1823 = vmatpush.msrb.mxu1 %v3740_v24 }
 0x4c0   :  { %1688 = vmatmul.f32.vlgmr.msra.gmra.mxu1 %v1628_v52  ;;  %v1525_v52 = vpop.f32.mrf.mxu3 }
 0x4c1   :  { %1824 = vmatpush.msrb.mxu1 %v3747_v26  ;;  %v1526_v19 = vadd.f32 %v1525_v52, %v3218_v9  ;;  %v1739_v52 = vld [vmem:[#allocation6 + $0x9c8] sm:$0xff] }
 0x4c3   :  { %1825 = vmatpush.msrb.mxu1 %v3753_v8 }
 0x4c5   :  { %1826 = vmatpush.msrb.mxu1 %v3764_v13 }
 0x4c7   :  { %1827 = vmatpush.msrb.mxu1 %v3774_v46  ;;  %v1721_v46 = vld [vmem:[#allocation6 + $0x938] sm:$0xff] }
 0x4c8   :  { %1754 = vmatpush.msra.mxu3 %v1721_v46  ;;  %v4209_v46 = vld [vmem:[#allocation22_spill] sm:$0xff] }
 0x4ca   :  { %1755 = vmatpush.msra.mxu3 %v1720_v5 }
 0x4cc   :  { %1756 = vmatpush.msra.mxu3 %v1719_v12 }
 0x50e   :  { %v1459_v34 = vpop.f32.mrf.mxu0 }
 0x50f   :  { %v1460_v63 = vadd.f32 %v1459_v34, %v1439_v61  ;;  %v1717_v34 = vld [vmem:[#allocation6 + $0x918] sm:$0xff]  ;;  %v1669_v5 = vpop.f32.mrf.mxu3 }
 0x511   :  { %v3892_v41 = vadd.f32 %v1460_v63, %v3789_v39  ;;  %v1718_v39 = vld [vmem:[#allocation6 + $0x920] sm:$0xff]  ;;  %v1740_v63 = vld [vmem:[#allocation6 + $0x9d0] sm:$0xff] }
 0x512   :  { %1757 = vmatpush.msra.mxu3 %v1718_v39  ;;  %v1735_v39 = vld [vmem:[#allocation6 + $0x9a8] sm:$0xff] }
 0x514   :  { %1758 = vmatpush.msra.mxu3 %v1717_v34  ;;  %v1734_v34 = vld [vmem:[#allocation6 + $0x9a0] sm:$0xff] }
 0x516   :  { %v1545_v44 = vpop.f32.mrf.mxu0  ;;  %1759 = vmatpush.msra.mxu3 %v1716_v55 }
 0x517   :  { %v1546_v61 = vadd.f32 %v1545_v44, %v1526_v19  ;;  %v1714_v19 = vld [vmem:[#allocation6 + $0x900] sm:$0xff] }
 0x518   :  { %1760 = vmatpush.msra.mxu3 %v1715_v1  ;;  %v1732_v1 = vld [vmem:[#allocation6 + $0x990] sm:$0xff] }
 0x519   :  { %2566 = vtanh.f32 %v1546_v61 }
 0x51a   :  { %1761 = vmatpush.msra.mxu3 %v1714_v19  ;;  %v1731_v19 = vld [vmem:[#allocation6 + $0x988] sm:$0xff] }
 0x51c   :  { %1832 = vmatpush.msrb.mxu3 %v3676_v2 }
 0x51e   :  { %1833 = vmatpush.msrb.mxu3 %v3680_v49 }
 0x51f   :  { %v2567_v35 = vpop.eup %2566 }
 0x520   :  { %1618 = vmatmul.f32.vlgmr.msrb.gmra.mxu2 %v2567_v35  ;;  %1834 = vmatpush.msrb.mxu3 %v3684_v6  ;;  %v1733_v35 = vld [vmem:[#allocation6 + $0x998] sm:$0xff] }
 0x521   :  { %1792 = vmatpush.msrb.mxu2 %v3792_v48 }
 0x522   :  { %1835 = vmatpush.msrb.mxu3 %v3688_v14 }
 0x523   :  { %1793 = vmatpush.msrb.mxu2 %v3795_v0 }
 0x524   :  { %1836 = vmatpush.msrb.mxu3 %v3692_v18 }
 0x525   :  { %1794 = vmatpush.msrb.mxu2 %v3798_v37 }
 0x526   :  { %1837 = vmatpush.msrb.mxu3 %v3696_v38 }
 0x527   :  { %1795 = vmatpush.msrb.mxu2 %v3801_v23 }
 0x528   :  { %2510 = vmatmul.msk.f32.vlgmr.msra.gmra.mxu2 %vm170_vm0, %v3869_v62  ;;  %1838 = vmatpush.msrb.mxu3 %v3700_v40  ;;  %v1741_v62 = vld [vmem:[#allocation6 + $0x9d8] sm:$0xff] }
 0x529   :  { %1796 = vmatpush.msrb.mxu2 %v3807_v10  ;;  %1770 = vmatpush.msra.mxu0 %v1741_v62  ;;  %v1730_v62 = vld [vmem:[#allocation6 + $0x980] sm:$0xff] }
 0x52a   :  { %1839 = vmatpush.msrb.mxu3 %v3704_v43 }
 0x52b   :  { %1797 = vmatpush.msrb.mxu2 %v3811_v11  ;;  %1771 = vmatpush.msra.mxu0 %v1740_v63  ;;  %v3945_v63 = vld [vmem:[%s4155_s0 + $0x30] sm:$0xff] }
 0x52c   :  { %1840 = vmatpush.msrb.mxu3 %v3708_v45  ;;  %2511 = vmatmul.msk.f32.vlgmr.msrb.gmra.mxu1 %vm170_vm0, %v3945_v63 }
 0x52d   :  { %1798 = vmatpush.msrb.mxu2 %v3815_v16  ;;  %1772 = vmatpush.msra.mxu0 %v1739_v52  ;;  %v4211_v52 = vld [vmem:[#allocation20_spill] sm:$0xff] }
 0x52e   :  { %1841 = vmatpush.msrb.mxu3 %v3712_v42  ;;  %v1649_v44 = vpop.f32.mrf.mxu0  ;;  %1950 = vrot.lane.b32.xlu1 %v3945_v63, %s2898_s6 }
 0x52f   :  { %1799 = vmatpush.msrb.mxu2 %v3819_v21  ;;  %1773 = vmatpush.msra.mxu0 %v1738_v27  ;;  %v1650_v61 = vadd.f32 %v1649_v44, %v3204_v57  ;;  %v4212_v27 = vld [vmem:[#allocation16_spill] sm:$0xff]  ;;  %v1889_v44 = vld [vmem:[#allocation6 + $0xa78] sm:$0xff] }
 0x530   :  { %1842 = vmatpush.msrb.mxu3 %v3716_v17  ;;  %1906 = vmatpush.msra.mxu1 %v1889_v44 }
 0x531   :  { %1800 = vmatpush.msrb.mxu2 %v3823_v25  ;;  %1774 = vmatpush.msra.mxu0 %v1737_v51  ;;  %v1670_v12 = vadd.f32 %v1669_v5, %v1650_v61  ;;  %v1888_v61 = vld [vmem:[#allocation6 + $0xa70] sm:$0xff]  ;;  %v1887_v5 = vld [vmem:[#allocation6 + $0xa68] sm:$0xff] }
 0x532   :  { %1843 = vmatpush.msrb.mxu3 %v3850_v4  ;;  %1907 = vmatpush.msra.mxu1 %v1888_v61  ;;  %v1883_v61 = vld [vmem:[#allocation6 + $0xa48] sm:$0xff] }
 0x533   :  { %1801 = vmatpush.msrb.mxu2 %v3827_v29  ;;  %1775 = vmatpush.msra.mxu0 %v1736_v60  ;;  %2568 = vtanh.f32 %v1670_v12  ;;  %v4213_v60 = vld [vmem:[#allocation17_spill] sm:$0xff]  ;;  %v1886_v12 = vld [vmem:[#allocation6 + $0xa60] sm:$0xff] }
 0x534   :  { %1844 = vmatpush.msrb.mxu3 %v3856_v59  ;;  %1908 = vmatpush.msra.mxu1 %v1887_v5  ;;  %v1882_v5 = vld [vmem:[#allocation6 + $0xa40] sm:$0xff] }
 0x535   :  { %1802 = vmatpush.msrb.mxu2 %v3831_v31  ;;  %1776 = vmatpush.msra.mxu0 %v1735_v39  ;;  %v1599_v51 = vpop.f32.mrf.mxu1  ;;  %v1905_v39 = vld [vmem:[#allocation6 + $0xaf8] sm:$0xff] }
 0x536   :  { %1845 = vmatpush.msrb.mxu3 %v3859_v47  ;;  %2272 = vrot.lane.b32.xlu1 %v3945_v63, %s2898_s6 }
 0x537   :  { %1803 = vmatpush.msrb.mxu2 %v3835_v3  ;;  %1777 = vmatpush.msra.mxu0 %v1734_v34  ;;  %v1904_v34 = vld [vmem:[#allocation6 + $0xaf0] sm:$0xff] }
 0x538   :  { %1846 = vmatpush.msrb.mxu3 %v3862_v58  ;;  %1909 = vmatpush.msra.mxu1 %v1886_v12  ;;  %v1881_v12 = vld [vmem:[#allocation6 + $0xa38] sm:$0xff] }
 0x539   :  { %1804 = vmatpush.msrb.mxu2 %v3839_v33  ;;  %v2569_v55 = vpop.eup %2568  ;;  %1778 = vmatpush.msra.mxu0 %v1733_v35 }
 0x53a   :  { %1847 = vmatpush.msrb.mxu3 %v4209_v46 }
 0x53b   :  { %1805 = vmatpush.msrb.mxu2 %v3843_v36  ;;  %1762 = vmatmul.f32.vlgmr.msra.gmra.mxu3 %v2569_v55  ;;  %v1885_v55 = vld [vmem:[#allocation6 + $0xa58] sm:$0xff] }
 0x53c   :  { %1984 = vmatpush.msra.mxu3 %v3728_v32  ;;  %1779 = vmatpush.msra.mxu0 %v1732_v1  ;;  %v1903_v1 = vld [vmem:[#allocation6 + $0xae8] sm:$0xff] }
 0x53d   :  { %1806 = vmatpush.msrb.mxu2 %v3847_v54  ;;  %1910 = vmatpush.msra.mxu1 %v1885_v55  ;;  %v1898_v55 = vld [vmem:[#allocation6 + $0xac0] sm:$0xff] }
 0x53e   :  { %1985 = vmatpush.msra.mxu3 %v3731_v7  ;;  %1780 = vmatpush.msra.mxu0 %v1731_v19 }
 0x53f   :  { %1807 = vmatpush.msrb.mxu2 %v3853_v56 }
 0x540   :  { %1808 = vmatmul.f32.vlgmr.msrb.gmra.mxu2 %v3762_v20  ;;  %1986 = vmatpush.msra.mxu3 %v3734_v22 }
 0x541   :  { %1781 = vmatpush.msra.mxu0 %v1730_v62  ;;  %1926 = vmatpush.msra.mxu2 %v1905_v39  ;;  %v1884_v62 = vld [vmem:[#allocation6 + $0xa50] sm:$0xff] }
 0x542   :  { %1987 = vmatpush.msra.mxu3 %v3740_v24  ;;  %1911 = vmatpush.msra.mxu1 %v1884_v62  ;;  %v1900_v39 = vld [vmem:[#allocation6 + $0xad0] sm:$0xff]  ;;  %v1874_v62 = vld [vmem:[#allocation6 + $0xa00] sm:$0xff] }
 0x543   :  { %1860 = vmatpush.msrb.mxu0 %v3737_v50  ;;  %1848 = vmatmul.f32.vlgmr.msrb.gmra.mxu3 %v3762_v20  ;;  %v4210_v20 = vld [vmem:[#allocation19_spill] sm:$0xff] }
 0x544   :  { %1988 = vmatpush.msra.mxu3 %v3747_v26  ;;  %1927 = vmatpush.msra.mxu2 %v1904_v34  ;;  %v1899_v34 = vld [vmem:[#allocation6 + $0xac8] sm:$0xff] }
 0x545   :  { %1861 = vmatpush.msrb.mxu0 %v3744_v53  ;;  %1912 = vmatpush.msra.mxu1 %v1883_v61  ;;  %v1890_v61 = vld [vmem:[#allocation6 + $0xa80] sm:$0xff] }
 0x546   :  { %1989 = vmatpush.msra.mxu3 %v3753_v8  ;;  %1928 = vmatpush.msra.mxu2 %v1903_v1  ;;  %v1879_v1 = vld [vmem:[#allocation6 + $0xa28] sm:$0xff] }
 0x547   :  { %1862 = vmatpush.msrb.mxu0 %v3750_v28  ;;  %1913 = vmatpush.msra.mxu1 %v1882_v5 }
 0x548   :  { %1990 = vmatpush.msra.mxu3 %v3764_v13  ;;  %v1689_v13 = vpop.f32.mrf.mxu1 }
 0x549   :  { %1863 = vmatpush.msrb.mxu0 %v3756_v30  ;;  %v1690_v8 = vadd.f32 %v1689_v13, %v3218_v9  ;;  %1914 = vmatpush.msra.mxu1 %v1881_v12 }
 0x54a   :  { %1991 = vmatpush.msra.mxu3 %v4210_v20  ;;  %v1902_v20 = vld [vmem:[#allocation6 + $0xae0] sm:$0xff] }
 0x54b   :  { %1864 = vmatpush.msrb.mxu0 %v3771_v15  ;;  %1929 = vmatpush.msra.mxu2 %v1902_v20  ;;  %v1878_v20 = vld [vmem:[#allocation6 + $0xa20] sm:$0xff] }
 0x54d   :  { %1865 = vmatpush.msrb.mxu0 %v4211_v52 }
 0x54f   :  { %1866 = vmatpush.msrb.mxu0 %v4212_v27 }
 0x551   :  { %1867 = vmatpush.msrb.mxu0 %v4213_v60  ;;  %v1901_v60 = vld [vmem:[#allocation6 + $0xad8] sm:$0xff] }
 0x552   :  { %1930 = vmatpush.msra.mxu2 %v1901_v60  ;;  %v1876_v60 = vld [vmem:[#allocation6 + $0xa10] sm:$0xff] }
 0x554   :  { %1931 = vmatpush.msra.mxu2 %v1900_v39 }
 0x556   :  { %1932 = vmatpush.msra.mxu2 %v1899_v34  ;;  %v2049_v34 = vld [vmem:[#allocation6 + $0xb58] sm:$0xff] }
 0x558   :  { %1933 = vmatpush.msra.mxu2 %v1898_v55 }
 0x5a0   :  { %v3998_v39 = vpop.permute.xlu1 %1950 }
 0x5a1   :  { %2513 = vmatmul.msk.f32.vlgmr.msra.gmra.mxu3 %vm170_vm0, %v3998_v39 }
 0x5a3   :  { %v1619_v35 = vpop.f32.mrf.mxu2 }
 0x5a4   :  { %v1620_v19 = vadd.f32 %v1619_v35, %v1599_v51 }
 0x5a6   :  { %v3960_v44 = vadd.f32 %v1620_v19, %v3892_v41  ;;  %v1880_v41 = vld [vmem:[#allocation6 + $0xa30] sm:$0xff]  ;;  %v1877_v19 = vld [vmem:[#allocation6 + $0xa18] sm:$0xff] }
 0x5a7   :  { %1915 = vmatpush.msra.mxu1 %v1880_v41 }
 0x5a9   :  { %1916 = vmatpush.msra.mxu1 %v1879_v1  ;;  %v2048_v1 = vld [vmem:[#allocation6 + $0xb50] sm:$0xff] }
 0x5ab   :  { %v1709_v51 = vpop.f32.mrf.mxu2  ;;  %1917 = vmatpush.msra.mxu1 %v1878_v20  ;;  %v2066_v20 = vld [vmem:[#allocation6 + $0xbe0] sm:$0xff] }
 0x5ac   :  { %v1710_v35 = vadd.f32 %v1709_v51, %v1690_v8  ;;  %v1875_v8 = vld [vmem:[#allocation6 + $0xa08] sm:$0xff]  ;;  %v1949_v51 = vpop.permute.xlu2 %1948 }
 0x5ad   :  { %1918 = vmatpush.msra.mxu1 %v1877_v19  ;;  %v1952_v12 = vsel %vm170_vm0, %v1949_v51, %v3998_v39  ;;  %v2699_v51 = vld [vmem:[#allocation2 + $0x170] sm:$0xff] }
 0x5ae   :  { %2570 = vtanh.f32 %v1710_v35  ;;  %v2067_v35 = vld [vmem:[#allocation6 + $0xbe8] sm:$0xff] }
 0x5af   :  { %1919 = vmatpush.msra.mxu1 %v1876_v60 }
 0x5b1   :  { %1920 = vmatpush.msra.mxu1 %v1875_v8  ;;  %v2046_v8 = vld [vmem:[#allocation6 + $0xb40] sm:$0xff] }
 0x5b3   :  { %1921 = vmatpush.msra.mxu1 %v1874_v62 }
 0x5b4   :  { %v2571_v13 = vpop.eup %2570 }
 0x5b5   :  { %1782 = vmatmul.f32.vlgmr.msra.gmra.mxu0 %v2571_v13  ;;  %1996 = vmatpush.msrb.mxu1 %v3676_v2  ;;  %v1897_v2 = vld [vmem:[#allocation6 + $0xab8] sm:$0xff]  ;;  %v2047_v13 = vld [vmem:[#allocation6 + $0xb48] sm:$0xff] }
 0x5b6   :  { %1956 = vmatpush.msra.mxu0 %v3792_v48  ;;  %1934 = vmatpush.msra.mxu2 %v1897_v2  ;;  %v2045_v2 = vld [vmem:[#allocation6 + $0xb38] sm:$0xff] }
 0x5b7   :  { %1997 = vmatpush.msrb.mxu1 %v3680_v49  ;;  %v1896_v49 = vld [vmem:[#allocation6 + $0xab0] sm:$0xff] }
 0x5b8   :  { %1957 = vmatpush.msra.mxu0 %v3795_v0  ;;  %1935 = vmatpush.msra.mxu2 %v1896_v49 }
 0x5b9   :  { %1998 = vmatpush.msrb.mxu1 %v3684_v6 }
 0x5ba   :  { %1958 = vmatpush.msra.mxu0 %v3798_v37 }
 0x5bb   :  { %1999 = vmatpush.msrb.mxu1 %v3688_v14 }
 0x5bc   :  { %1959 = vmatpush.msra.mxu0 %v3801_v23 }
 0x5bd   :  { %2512 = vmatmul.msk.f32.vlgmr.msrb.gmra.mxu0 %vm170_vm0, %v3945_v63  ;;  %2000 = vmatpush.msrb.mxu1 %v3692_v18  ;;  %v1895_v18 = vld [vmem:[#allocation6 + $0xaa8] sm:$0xff] }
 0x5be   :  { %1960 = vmatpush.msra.mxu0 %v3807_v10  ;;  %1936 = vmatpush.msra.mxu2 %v1895_v18  ;;  %v2041_v18 = vld [vmem:[#allocation6 + $0xb18] sm:$0xff] }
 0x5bf   :  { %2001 = vmatpush.msrb.mxu1 %v3696_v38  ;;  %v1829_v38 = vpop.f32.mrf.mxu1 }
 0x5c0   :  { %1961 = vmatpush.msra.mxu0 %v3811_v11 }
 0x5c1   :  { %2002 = vmatpush.msrb.mxu1 %v3700_v40  ;;  %v1894_v40 = vld [vmem:[#allocation6 + $0xaa0] sm:$0xff] }
 0x5c2   :  { %1962 = vmatpush.msra.mxu0 %v3815_v16  ;;  %1937 = vmatpush.msra.mxu2 %v1894_v40  ;;  %v2040_v40 = vld [vmem:[#allocation6 + $0xb10] sm:$0xff] }
 0x5c3   :  { %2003 = vmatpush.msrb.mxu1 %v3704_v43  ;;  %v1809_v6 = vpop.f32.mrf.mxu2 }
 0x5c4   :  { %1963 = vmatpush.msra.mxu0 %v3819_v21  ;;  %v1810_v14 = vadd.f32 %v1809_v6, %v3204_v57  ;;  %v2044_v6 = vld [vmem:[#allocation6 + $0xb30] sm:$0xff] }
 0x5c5   :  { %2004 = vmatpush.msrb.mxu1 %v3708_v45  ;;  %v1893_v45 = vld [vmem:[#allocation6 + $0xa98] sm:$0xff] }
 0x5c6   :  { %1964 = vmatpush.msra.mxu0 %v3823_v25  ;;  %v1830_v43 = vadd.f32 %v1829_v38, %v1810_v14  ;;  %1938 = vmatpush.msra.mxu2 %v1893_v45  ;;  %v2043_v14 = vld [vmem:[#allocation6 + $0xb28] sm:$0xff]  ;;  %v2038_v45 = vld [vmem:[#allocation6 + $0xb00] sm:$0xff] }
 0x5c7   :  { %2005 = vmatpush.msrb.mxu1 %v3712_v42  ;;  %v1892_v42 = vld [vmem:[#allocation6 + $0xa90] sm:$0xff] }
 0x5c8   :  { %1965 = vmatpush.msra.mxu0 %v3827_v29  ;;  %2572 = vtanh.f32 %v1830_v43  ;;  %1939 = vmatpush.msra.mxu2 %v1892_v42  ;;  %v2039_v43 = vld [vmem:[#allocation6 + $0xb08] sm:$0xff]  ;;  %v4030_v42 = vld [vmem:[#allocation2 + $0xf8] sm:$0xff] }
 0x5c9   :  { %2006 = vmatpush.msrb.mxu1 %v3716_v17  ;;  %v1891_v17 = vld [vmem:[#allocation6 + $0xa88] sm:$0xff] }
 0x5ca   :  { %1966 = vmatpush.msra.mxu0 %v3831_v31  ;;  %1940 = vmatpush.msra.mxu2 %v1891_v17 }
 0x5cb   :  { %2007 = vmatpush.msrb.mxu1 %v3850_v4 }
 0x5cc   :  { %1967 = vmatpush.msra.mxu0 %v3835_v3  ;;  %1941 = vmatpush.msra.mxu2 %v1890_v61  ;;  %v2057_v61 = vld [vmem:[#allocation6 + $0xb98] sm:$0xff] }
 0x5cd   :  { %2008 = vmatpush.msrb.mxu1 %v3856_v59 }
 0x5ce   :  { %1968 = vmatpush.msra.mxu0 %v3839_v33  ;;  %v2573_v5 = vpop.eup %2572  ;;  %2024 = vmatpush.msrb.mxu2 %v3737_v50  ;;  %v1763_v50 = vpop.f32.mrf.mxu3 }
 0x5cf   :  { %2009 = vmatpush.msrb.mxu1 %v3859_v47 }
 0x5d0   :  { %1969 = vmatpush.msra.mxu0 %v3843_v36  ;;  %1922 = vmatmul.f32.vlgmr.msra.gmra.mxu1 %v2573_v5 }
 0x5d1   :  { %2010 = vmatpush.msrb.mxu1 %v3862_v58  ;;  %2025 = vmatpush.msrb.mxu2 %v3744_v53  ;;  %v4215_v53 = vld [vmem:[#allocation17_spill] sm:$0xff] }
 0x5d2   :  { %1970 = vmatpush.msra.mxu0 %v3847_v54 }
 0x5d3   :  { %2011 = vmatpush.msrb.mxu1 %v4209_v46  ;;  %2026 = vmatpush.msrb.mxu2 %v3750_v28  ;;  %v2052_v28 = vld [vmem:[#allocation6 + $0xb70] sm:$0xff] }
 0x5d4   :  { %1971 = vmatpush.msra.mxu0 %v3853_v56 }
 0x5d5   :  { %1972 = vmatmul.f32.vlgmr.msra.gmra.mxu0 %v1952_v12  ;;  %2144 = vmatpush.msra.mxu1 %v3728_v32  ;;  %v4214_v32 = vld [vmem:[#allocation21_spill] sm:$0xff] }
 0x5d6   :  { %2027 = vmatpush.msrb.mxu2 %v3756_v30  ;;  %v2051_v30 = vld [vmem:[#allocation6 + $0xb68] sm:$0xff]  ;;  %v1849_v55 = vpop.f32.mrf.mxu3 }
 0x5d7   :  { %2145 = vmatpush.msra.mxu1 %v3731_v7  ;;  %v2053_v7 = vld [vmem:[#allocation6 + $0xb78] sm:$0xff]  ;;  %v1850_v60 = vadd.f32 %v1849_v55, %v3218_v9 }
 0x5d8   :  { %2012 = vmatmul.f32.vlgmr.msrb.gmra.mxu1 %v1952_v12  ;;  %2028 = vmatpush.msrb.mxu2 %v3771_v15  ;;  %v4217_v15 = vld [vmem:[#allocation19_spill] sm:$0xff]  ;;  %v2055_v12 = vld [vmem:[#allocation6 + $0xb88] sm:$0xff] }
 0x5d9   :  { %2146 = vmatpush.msra.mxu1 %v3734_v22  ;;  %2070 = vmatpush.msrb.mxu3 %v2053_v7  ;;  %v4216_v22 = vld [vmem:[#allocation18_spill] sm:$0xff] }
 0x5da   :  { %2029 = vmatpush.msrb.mxu2 %v4211_v52  ;;  %v2069_v52 = vld [vmem:[#allocation6 + $0xbf8] sm:$0xff] }
 0x5db   :  { %2147 = vmatpush.msra.mxu1 %v3740_v24  ;;  %2071 = vmatpush.msrb.mxu3 %v2052_v28  ;;  %v2050_v24 = vld [vmem:[#allocation6 + $0xb60] sm:$0xff]  ;;  %v4082_v7 = vld [vmem:[#allocation2 + $0x178] sm:$0xff] }
 0x5dc   :  { %2030 = vmatpush.msrb.mxu2 %v4212_v27  ;;  %2090 = vmatpush.msrb.mxu0 %v2069_v52  ;;  %v2703_v28 = vld [vmem:[#allocation2 + $0x140] sm:$0xff]  ;;  %v4092_v52 = vld [vmem:[#allocation2 + $0x148] sm:$0xff] }
 0x5dd   :  { %2148 = vmatpush.msra.mxu1 %v3747_v26  ;;  %2072 = vmatpush.msrb.mxu3 %v2051_v30  ;;  %v2068_v26 = vld [vmem:[#allocation6 + $0xbf0] sm:$0xff] }
 0x5de   :  { %2031 = vmatpush.msrb.mxu2 %v4215_v53  ;;  %2091 = vmatpush.msrb.mxu0 %v2068_v26  ;;  %v2701_v53 = vld [vmem:[#allocation2 + $0x150] sm:$0xff] }
 0x5df   :  { %2149 = vmatpush.msra.mxu1 %v4214_v32  ;;  %2073 = vmatpush.msrb.mxu3 %v2050_v24  ;;  %v2700_v32 = vld [vmem:[#allocation2 + $0x160] sm:$0xff]  ;;  %v2705_v30 = vld [vmem:[#allocation2 + $0x130] sm:$0xff] }
 0x5e0   :  { %2092 = vmatpush.msrb.mxu0 %v2067_v35  ;;  %v2707_v24 = vld [vmem:[#allocation2 + $0x120] sm:$0xff]  ;;  %v2709_v26 = vld [vmem:[#allocation2 + $0x110] sm:$0xff]  ;;  %v4107_v35 = vld [vmem:[#allocation2 + $0x128] sm:$0xff] }
 0x5e1   :  { %2150 = vmatpush.msra.mxu1 %v4216_v22  ;;  %2074 = vmatpush.msrb.mxu3 %v2049_v34  ;;  %v4086_v22 = vld [vmem:[#allocation2 + $0x168] sm:$0xff]  ;;  %v2711_v34 = vld [vmem:[#allocation2 + $0x100] sm:$0xff] }
 0x5e2   :  { %2093 = vmatpush.msrb.mxu0 %v2066_v20  ;;  %v2213_v20 = vld [vmem:[#allocation6 + $0xc78] sm:$0xff] }
 0x5e3   :  { %2151 = vmatpush.msra.mxu1 %v4217_v15  ;;  %2075 = vmatpush.msrb.mxu3 %v2048_v1  ;;  %v4089_v15 = vld [vmem:[#allocation2 + $0x158] sm:$0xff]  ;;  %v4113_v1 = vld [vmem:[#allocation2 + $0x108] sm:$0xff] }
 0x5e5   :  { %2076 = vmatpush.msrb.mxu3 %v2047_v13  ;;  %v2212_v13 = vld [vmem:[#allocation6 + $0xc70] sm:$0xff]  ;;  %2230 = vmatpush.msrb.mxu1 %v2213_v20 }
 0x5e6   :  { %v2734_v20 = vld [vmem:[#allocation2 + $0x18] sm:$0xff] }
 0x5e7   :  { %2077 = vmatpush.msrb.mxu3 %v2046_v8  ;;  %2231 = vmatpush.msrb.mxu1 %v2212_v13  ;;  %v2229_v8 = vld [vmem:[#allocation6 + $0xcf8] sm:$0xff] }
 0x5e8   :  { %v2221_v13 = vld [vmem:[#allocation6 + $0xcb8] sm:$0xff] }
 0x5e9   :  { %2078 = vmatpush.msrb.mxu3 %v2045_v2  ;;  %v2228_v2 = vld [vmem:[#allocation6 + $0xcf0] sm:$0xff] }
 0x5eb   :  { %2079 = vmatpush.msrb.mxu3 %v2044_v6 }
 0x5ed   :  { %2080 = vmatpush.msrb.mxu3 %v2043_v14  ;;  %v2209_v14 = vld [vmem:[#allocation6 + $0xc58] sm:$0xff] }
 0x632   :  { %v1783_v27 = vpop.f32.mrf.mxu0 }
 0x633   :  { %v1784_v41 = vadd.f32 %v1783_v27, %v1763_v50  ;;  %v2054_v50 = vld [vmem:[#allocation6 + $0xb80] sm:$0xff]  ;;  %v4104_v27 = vld [vmem:[#allocation2 + $0x138] sm:$0xff] }
 0x635   :  { %v4021_v19 = vadd.f32 %v1784_v41, %v3960_v44  ;;  %v2042_v44 = vld [vmem:[#allocation6 + $0xb20] sm:$0xff]  ;;  %v4110_v41 = vld [vmem:[#allocation2 + $0x118] sm:$0xff] }
 0x636   :  { %2081 = vmatpush.msrb.mxu3 %v2042_v44 }
 0x638   :  { %2082 = vmatpush.msrb.mxu3 %v2041_v18  ;;  %v2226_v18 = vld [vmem:[#allocation6 + $0xce0] sm:$0xff] }
 0x63a   :  { %v1869_v62 = vpop.f32.mrf.mxu0  ;;  %2083 = vmatpush.msrb.mxu3 %v2040_v40 }
 0x63b   :  { %v1870_v49 = vadd.f32 %v1869_v62, %v1850_v60  ;;  %v2211_v60 = vld [vmem:[#allocation6 + $0xc68] sm:$0xff]  ;;  %v2210_v62 = vld [vmem:[#allocation6 + $0xc60] sm:$0xff] }
 0x63c   :  { %2084 = vmatpush.msrb.mxu3 %v2039_v43  ;;  %2232 = vmatpush.msrb.mxu1 %v2211_v60  ;;  %v2225_v43 = vld [vmem:[#allocation6 + $0xcd8] sm:$0xff]  ;;  %v2219_v60 = vld [vmem:[#allocation6 + $0xca8] sm:$0xff] }
 0x63d   :  { %2574 = vtanh.f32 %v1870_v49  ;;  %v2227_v49 = vld [vmem:[#allocation6 + $0xce8] sm:$0xff] }
 0x63e   :  { %2085 = vmatpush.msrb.mxu3 %v2038_v45  ;;  %2233 = vmatpush.msrb.mxu1 %v2210_v62 }
 0x640   :  { %2156 = vmatpush.msra.mxu3 %v4030_v42  ;;  %2234 = vmatpush.msrb.mxu1 %v2209_v14 }
 0x643   :  { %v2575_v38 = vpop.eup %2574 }
 0x644   :  { %1942 = vmatmul.f32.vlgmr.msra.gmra.mxu2 %v2575_v38  ;;  %v2208_v38 = vld [vmem:[#allocation6 + $0xc50] sm:$0xff] }
 0x645   :  { %2116 = vmatpush.msra.mxu2 %v3792_v48  ;;  %v4034_v48 = vld [vmem:[#allocation2 + $0xe8] sm:$0xff]  ;;  %2235 = vmatpush.msrb.mxu1 %v2208_v38 }
 0x646   :  { %2157 = vmatpush.msra.mxu3 %v4034_v48 }
 0x647   :  { %2117 = vmatpush.msra.mxu2 %v3795_v0  ;;  %v4038_v0 = vld [vmem:[#allocation2 + $0xd8] sm:$0xff] }
 0x648   :  { %2158 = vmatpush.msra.mxu3 %v4038_v0 }
 0x649   :  { %2118 = vmatpush.msra.mxu2 %v3798_v37  ;;  %v4042_v37 = vld [vmem:[#allocation2 + $0xc8] sm:$0xff] }
 0x64a   :  { %2159 = vmatpush.msra.mxu3 %v4042_v37 }
 0x64b   :  { %2119 = vmatpush.msra.mxu2 %v3801_v23  ;;  %v4046_v23 = vld [vmem:[#allocation2 + $0xb8] sm:$0xff] }
 0x64c   :  { %2514 = vmatmul.msk.f32.vlgmr.msrb.gmra.mxu2 %vm170_vm0, %v3998_v39  ;;  %2160 = vmatpush.msra.mxu3 %v4046_v23  ;;  %v2056_v39 = vld [vmem:[#allocation6 + $0xb90] sm:$0xff] }
 0x64d   :  { %2120 = vmatpush.msra.mxu2 %v3807_v10  ;;  %v4050_v10 = vld [vmem:[#allocation2 + $0xa8] sm:$0xff]  ;;  %v1923_v55 = vpop.f32.mrf.mxu1 }
 0x64e   :  { %2161 = vmatpush.msra.mxu3 %v4050_v10 }
 0x64f   :  { %2121 = vmatpush.msra.mxu2 %v3811_v11  ;;  %v4054_v11 = vld [vmem:[#allocation2 + $0x98] sm:$0xff] }
 0x650   :  { %2162 = vmatpush.msra.mxu3 %v4054_v11 }
 0x651   :  { %2122 = vmatpush.msra.mxu2 %v3815_v16  ;;  %v4058_v16 = vld [vmem:[#allocation2 + $0x88] sm:$0xff] }
 0x652   :  { %2163 = vmatpush.msra.mxu3 %v4058_v16 }
 0x653   :  { %2123 = vmatpush.msra.mxu2 %v3819_v21  ;;  %v4062_v21 = vld [vmem:[#allocation2 + $0x78] sm:$0xff] }
 0x654   :  { %2164 = vmatpush.msra.mxu3 %v4062_v21 }
 0x655   :  { %2124 = vmatpush.msra.mxu2 %v3823_v25  ;;  %v4066_v25 = vld [vmem:[#allocation2 + $0x68] sm:$0xff]  ;;  %v2013_v45 = vpop.f32.mrf.mxu1 }
 0x656   :  { %2165 = vmatpush.msra.mxu3 %v4066_v25 }
 0x657   :  { %2125 = vmatpush.msra.mxu2 %v3827_v29  ;;  %v4070_v29 = vld [vmem:[#allocation2 + $0x58] sm:$0xff] }
 0x658   :  { %2166 = vmatpush.msra.mxu3 %v4070_v29 }
 0x659   :  { %2126 = vmatpush.msra.mxu2 %v3831_v31  ;;  %v2065_v31 = vld [vmem:[#allocation6 + $0xbd8] sm:$0xff] }
 0x65a   :  { %2167 = vmatpush.msra.mxu3 %v3850_v4  ;;  %2094 = vmatpush.msrb.mxu0 %v2065_v31  ;;  %v2060_v4 = vld [vmem:[#allocation6 + $0xbb0] sm:$0xff]  ;;  %v2207_v31 = vld [vmem:[#allocation6 + $0xc48] sm:$0xff] }
 0x65b   :  { %2127 = vmatpush.msra.mxu2 %v3835_v3  ;;  %v2064_v3 = vld [vmem:[#allocation6 + $0xbd0] sm:$0xff]  ;;  %2236 = vmatpush.msrb.mxu1 %v2207_v31 }
 0x65c   :  { %2168 = vmatpush.msra.mxu3 %v3856_v59  ;;  %2095 = vmatpush.msrb.mxu0 %v2064_v3  ;;  %v2224_v3 = vld [vmem:[#allocation6 + $0xcd0] sm:$0xff] }
 0x65d   :  { %2128 = vmatpush.msra.mxu2 %v3839_v33  ;;  %v2063_v33 = vld [vmem:[#allocation6 + $0xbc8] sm:$0xff] }
 0x65e   :  { %2169 = vmatpush.msra.mxu3 %v3859_v47  ;;  %2096 = vmatpush.msrb.mxu0 %v2063_v33  ;;  %v1993_v47 = vpop.f32.mrf.mxu3  ;;  %v2206_v33 = vld [vmem:[#allocation6 + $0xc40] sm:$0xff] }
 0x65f   :  { %2129 = vmatpush.msra.mxu2 %v3843_v36  ;;  %v2062_v36 = vld [vmem:[#allocation6 + $0xbc0] sm:$0xff]  ;;  %2237 = vmatpush.msrb.mxu1 %v2206_v33  ;;  %v2375_v33 = vld [vmem:[#allocation6 + $0xd68] sm:$0xff] }
 0x660   :  { %2170 = vmatpush.msra.mxu3 %v3862_v58  ;;  %2097 = vmatpush.msrb.mxu0 %v2062_v36  ;;  %v2059_v58 = vld [vmem:[#allocation6 + $0xba8] sm:$0xff]  ;;  %v2014_v36 = vadd.f32 %v2013_v45, %v3218_v9  ;;  %v2273_v45 = vpop.permute.xlu1 %2272 }
 0x661   :  { %2130 = vmatpush.msra.mxu2 %v3847_v54  ;;  %v2061_v54 = vld [vmem:[#allocation6 + $0xbb8] sm:$0xff] }
 0x662   :  { %2171 = vmatpush.msra.mxu3 %v4209_v46  ;;  %2098 = vmatpush.msrb.mxu0 %v2061_v54  ;;  %v2058_v46 = vld [vmem:[#allocation6 + $0xba0] sm:$0xff]  ;;  %v2223_v54 = vld [vmem:[#allocation6 + $0xcc8] sm:$0xff] }
 0x663   :  { %2131 = vmatpush.msra.mxu2 %v3853_v56  ;;  %v1973_v56 = vpop.f32.mrf.mxu0 }
 0x664   :  { %2132 = vmatmul.f32.vlgmr.msra.gmra.mxu2 %v3945_v63  ;;  %2099 = vmatpush.msrb.mxu0 %v2060_v4  ;;  %v1974_v59 = vadd.f32 %v1973_v56, %v3204_v57  ;;  %v2205_v56 = vld [vmem:[#allocation6 + $0xc38] sm:$0xff] }
 0x665   :  { %2250 = vmatpush.msrb.mxu2 %v2229_v8  ;;  %2238 = vmatpush.msrb.mxu1 %v2205_v56  ;;  %v2218_v8 = vld [vmem:[#allocation6 + $0xca0] sm:$0xff] }
 0x666   :  { %v1994_v17 = vadd.f32 %v1993_v47, %v1974_v59  ;;  %2100 = vmatpush.msrb.mxu0 %v2059_v58  ;;  %v2204_v47 = vld [vmem:[#allocation6 + $0xc30] sm:$0xff]  ;;  %v2202_v58 = vld [vmem:[#allocation6 + $0xc20] sm:$0xff] }
 0x667   :  { %2251 = vmatpush.msrb.mxu2 %v2228_v2  ;;  %2239 = vmatpush.msrb.mxu1 %v2204_v47  ;;  %v2392_v47 = vld [vmem:[#allocation6 + $0xdf0] sm:$0xff] }
 0x668   :  { %2576 = vtanh.f32 %v1994_v17  ;;  %2101 = vmatpush.msrb.mxu0 %v2058_v46  ;;  %v2203_v17 = vld [vmem:[#allocation6 + $0xc28] sm:$0xff]  ;;  %v2201_v46 = vld [vmem:[#allocation6 + $0xc18] sm:$0xff] }
 0x669   :  { %2252 = vmatpush.msrb.mxu2 %v2227_v49  ;;  %2240 = vmatpush.msrb.mxu1 %v2203_v17  ;;  %v2217_v49 = vld [vmem:[#allocation6 + $0xc98] sm:$0xff]  ;;  %v2371_v17 = vld [vmem:[#allocation6 + $0xd48] sm:$0xff] }
 0x66a   :  { %2102 = vmatpush.msrb.mxu0 %v2057_v61 }
 0x66b   :  { %2253 = vmatpush.msrb.mxu2 %v2226_v18  ;;  %2241 = vmatpush.msrb.mxu1 %v2202_v58  ;;  %v2214_v18 = vld [vmem:[#allocation6 + $0xc80] sm:$0xff]  ;;  %v2391_v58 = vld [vmem:[#allocation6 + $0xde8] sm:$0xff] }
 0x66c   :  { %2103 = vmatpush.msrb.mxu0 %v2056_v39  ;;  %v2715_v39 = vld [vmem:[#allocation2 + $0xf0] sm:$0xff] }
 0x66d   :  { %2254 = vmatpush.msrb.mxu2 %v2225_v43  ;;  %2242 = vmatpush.msrb.mxu1 %v2201_v46  ;;  %v2370_v46 = vld [vmem:[#allocation6 + $0xd40] sm:$0xff] }
 0x66e   :  { %v2577_v5 = vpop.eup %2576  ;;  %2104 = vmatpush.msrb.mxu0 %v2055_v12  ;;  %v2716_v12 = vld [vmem:[#allocation2 + $0xe0] sm:$0xff] }
 0x66f   :  { %2086 = vmatmul.f32.vlgmr.msrb.gmra.mxu3 %v2577_v5  ;;  %2255 = vmatpush.msrb.mxu2 %v2224_v3  ;;  %v2200_v5 = vld [vmem:[#allocation6 + $0xc10] sm:$0xff]  ;;  %v2377_v3 = vld [vmem:[#allocation6 + $0xd78] sm:$0xff] }
 0x670   :  { %2308 = vmatpush.msrb.mxu3 %v2699_v51  ;;  %2105 = vmatpush.msrb.mxu0 %v2054_v50  ;;  %v2199_v51 = vld [vmem:[#allocation6 + $0xc08] sm:$0xff] }
 0x671   :  { %2256 = vmatpush.msrb.mxu2 %v2223_v54  ;;  %2243 = vmatpush.msrb.mxu1 %v2200_v5  ;;  %v2717_v50 = vld [vmem:[#allocation2 + $0xd0] sm:$0xff]  ;;  %v2389_v5 = vld [vmem:[#allocation6 + $0xdd8] sm:$0xff] }
 0x672   :  { %2309 = vmatpush.msrb.mxu3 %v2700_v32  ;;  %2184 = vmatpush.msra.mxu0 %v4082_v7  ;;  %v2198_v32 = vld [vmem:[#allocation6 + $0xc00] sm:$0xff] }
 0x673   :  { %2244 = vmatpush.msrb.mxu1 %v2199_v51  ;;  %v2388_v51 = vld [vmem:[#allocation6 + $0xdd0] sm:$0xff] }
 0x674   :  { %2310 = vmatpush.msrb.mxu3 %v2701_v53  ;;  %2185 = vmatpush.msra.mxu0 %v4086_v22  ;;  %v2718_v53 = vld [vmem:[#allocation2 + $0xc0] sm:$0xff] }
 0x675   :  { %2245 = vmatpush.msrb.mxu1 %v2198_v32  ;;  %v2387_v32 = vld [vmem:[#allocation6 + $0xdc8] sm:$0xff] }
 0x676   :  { %2311 = vmatpush.msrb.mxu3 %v2703_v28  ;;  %2186 = vmatpush.msra.mxu0 %v4089_v15  ;;  %v2719_v28 = vld [vmem:[#allocation2 + $0xb0] sm:$0xff] }
 0x677   :  { %2172 = vmatmul.f32.vlgmr.msra.gmra.mxu3 %v3945_v63  ;;  %v4098_v63 = vld [vmem:[%s4155_s0 + $0x38] sm:$0xff] }
 0x678   :  { %2312 = vmatpush.msrb.mxu3 %v2705_v30  ;;  %2187 = vmatpush.msra.mxu0 %v4092_v52  ;;  %v2720_v30 = vld [vmem:[#allocation2 + $0xa0] sm:$0xff] }
 0x679   :  { %2515 = vmatmul.msk.f32.vlgmr.msra.gmra.mxu1 %vm170_vm0, %v4098_v63  ;;  %2274 = vrot.lane.b32.xlu0 %v4098_v63, %s2898_s6 }
 0x67a   :  { %2313 = vmatpush.msrb.mxu3 %v2707_v24  ;;  %2188 = vmatpush.msra.mxu0 %v4104_v27  ;;  %v2721_v24 = vld [vmem:[#allocation2 + $0x90] sm:$0xff] }
 0x67b   :  { %2320 = vmatpush.msra.mxu1 %v4030_v42  ;;  %v2724_v42 = vld [vmem:[#allocation2 + $0x60] sm:$0xff] }
 0x67c   :  { %2314 = vmatpush.msrb.mxu3 %v2709_v26  ;;  %2189 = vmatpush.msra.mxu0 %v4107_v35  ;;  %v2722_v26 = vld [vmem:[#allocation2 + $0x80] sm:$0xff] }
 0x67d   :  { %2321 = vmatpush.msra.mxu1 %v4034_v48  ;;  %v2725_v48 = vld [vmem:[#allocation2 + $0x50] sm:$0xff] }
 0x67e   :  { %2315 = vmatpush.msrb.mxu3 %v2711_v34  ;;  %2190 = vmatpush.msra.mxu0 %v4110_v41  ;;  %v2723_v34 = vld [vmem:[#allocation2 + $0x70] sm:$0xff] }
 0x67f   :  { %2322 = vmatpush.msra.mxu1 %v4038_v0  ;;  %v2726_v0 = vld [vmem:[#allocation2 + $0x40] sm:$0xff] }
 0x680   :  { %2191 = vmatpush.msra.mxu0 %v4113_v1  ;;  %2394 = vmatpush.msra.mxu3 %v2377_v3  ;;  %v2447_v3 = vld [vmem:[#allocation9 + $0x30] sm:$0xff] }
 0x681   :  { %2323 = vmatpush.msra.mxu1 %v4042_v37  ;;  %v2727_v37 = vld [vmem:[#allocation2 + $0x30] sm:$0xff] }
 0x683   :  { %2324 = vmatpush.msra.mxu1 %v4046_v23  ;;  %v2728_v23 = vld [vmem:[#allocation2 + $0x20] sm:$0xff] }
 0x685   :  { %2325 = vmatpush.msra.mxu1 %v4050_v10  ;;  %v2729_v10 = vld [vmem:[#allocation2 + $0x10] sm:$0xff] }
 0x687   :  { %2326 = vmatpush.msra.mxu1 %v4054_v11  ;;  %v2731_v11 = vld [vmem:[#allocation2] sm:$0xff] }
 0x689   :  { %2327 = vmatpush.msra.mxu1 %v4058_v16  ;;  %v2733_v16 = vld [vmem:[#allocation2 + $0x28] sm:$0xff] }
 0x68b   :  { %2328 = vmatpush.msra.mxu1 %v4062_v21  ;;  %v2735_v21 = vld [vmem:[#allocation2 + $0x8] sm:$0xff] }
 0x68d   :  { %2329 = vmatpush.msra.mxu1 %v4066_v25  ;;  %v2220_v25 = vld [vmem:[#allocation6 + $0xcb0] sm:$0xff] }
 0x68f   :  { %2330 = vmatpush.msra.mxu1 %v4070_v29 }
 0x6c7   :  { %v1943_v6 = vpop.f32.mrf.mxu2 }
 0x6c8   :  { %v1944_v44 = vadd.f32 %v1943_v6, %v1923_v55  ;;  %v2732_v55 = vld [vmem:[#allocation2 + $0x38] sm:$0xff] }
 0x6c9   :  { %v2216_v6 = vld [vmem:[#allocation6 + $0xc90] sm:$0xff] }
 0x6ca   :  { %v4117_v40 = vadd.f32 %v1944_v44, %v4021_v19  ;;  %v2222_v19 = vld [vmem:[#allocation6 + $0xcc0] sm:$0xff]  ;;  %v2215_v44 = vld [vmem:[#allocation6 + $0xc88] sm:$0xff] }
 0x6cb   :  { %2257 = vmatpush.msrb.mxu2 %v2222_v19 }
 0x6cd   :  { %2258 = vmatpush.msrb.mxu2 %v2221_v13  ;;  %v2455_v13 = vld [vmem:[#allocation9 + $0x70] sm:$0xff] }
 0x6cf   :  { %v2033_v4 = vpop.f32.mrf.mxu2  ;;  %2259 = vmatpush.msrb.mxu2 %v2220_v25  ;;  %v2454_v25 = vld [vmem:[#allocation9 + $0x68] sm:$0xff] }
 0x6d0   :  { %v2034_v59 = vadd.f32 %v2033_v4, %v2014_v36 }
 0x6d1   :  { %2260 = vmatpush.msrb.mxu2 %v2219_v60  ;;  %v2453_v60 = vld [vmem:[#allocation9 + $0x60] sm:$0xff] }
 0x6d2   :  { %2578 = vtanh.f32 %v2034_v59 }
 0x6d3   :  { %2261 = vmatpush.msrb.mxu2 %v2218_v8 }
 0x6d5   :  { %2262 = vmatpush.msrb.mxu2 %v2217_v49 }
 0x6d7   :  { %2263 = vmatpush.msrb.mxu2 %v2216_v6 }
 0x6d8   :  { %v2579_v61 = vpop.eup %2578 }
 0x6d9   :  { %2106 = vmatmul.f32.vlgmr.msrb.gmra.mxu0 %v2579_v61  ;;  %2264 = vmatpush.msrb.mxu2 %v2215_v44  ;;  %v2390_v61 = vld [vmem:[#allocation6 + $0xde0] sm:$0xff] }
 0x6da   :  { %2280 = vmatpush.msrb.mxu0 %v2715_v39  ;;  %v2368_v39 = vld [vmem:[#allocation6 + $0xd30] sm:$0xff] }
 0x6db   :  { %2265 = vmatpush.msrb.mxu2 %v2214_v18 }
 0x6dc   :  { %2281 = vmatpush.msrb.mxu0 %v2716_v12  ;;  %v2367_v12 = vld [vmem:[#allocation6 + $0xd28] sm:$0xff] }
 0x6dd   :  { %2348 = vmatpush.msra.mxu2 %v4082_v7 }
 0x6de   :  { %2282 = vmatpush.msrb.mxu0 %v2717_v50 }
 0x6df   :  { %2349 = vmatpush.msra.mxu2 %v4086_v22  ;;  %v2376_v22 = vld [vmem:[#allocation6 + $0xd70] sm:$0xff] }
 0x6e0   :  { %2283 = vmatpush.msrb.mxu0 %v2718_v53  ;;  %2395 = vmatpush.msra.mxu3 %v2376_v22  ;;  %v2446_v22 = vld [vmem:[#allocation9 + $0x28] sm:$0xff] }
 0x6e1   :  { %2516 = vmatmul.msk.f32.vlgmr.msra.gmra.mxu0 %vm170_vm0, %v4098_v63  ;;  %v2730_v63 = vld [vmem:[#allocation2 + $0x48] sm:$0xff]  ;;  %2350 = vmatpush.msra.mxu2 %v4089_v15  ;;  %v2393_v15 = vld [vmem:[#allocation6 + $0xdf8] sm:$0xff] }
 0x6e2   :  { %2284 = vmatpush.msrb.mxu0 %v2719_v28  ;;  %2331 = vmatpush.msra.mxu1 %v2730_v63  ;;  %v2382_v63 = vld [vmem:[#allocation6 + $0xda0] sm:$0xff] }
 0x6e3   :  { %2351 = vmatpush.msra.mxu2 %v4092_v52  ;;  %v2374_v52 = vld [vmem:[#allocation6 + $0xd60] sm:$0xff]  ;;  %2396 = vmatpush.msra.mxu3 %v2375_v33 }
 0x6e4   :  { %2285 = vmatpush.msrb.mxu0 %v2720_v30  ;;  %2332 = vmatpush.msra.mxu1 %v2732_v55  ;;  %v2380_v55 = vld [vmem:[#allocation6 + $0xd90] sm:$0xff]  ;;  %v2444_v33 = vld [vmem:[#allocation9 + $0x18] sm:$0xff] }
 0x6e5   :  { %2352 = vmatpush.msra.mxu2 %v4104_v27  ;;  %v2373_v27 = vld [vmem:[#allocation6 + $0xd58] sm:$0xff]  ;;  %2397 = vmatpush.msra.mxu3 %v2374_v52 }
 0x6e6   :  { %2286 = vmatpush.msrb.mxu0 %v2721_v24  ;;  %2333 = vmatpush.msra.mxu1 %v2733_v16  ;;  %v2366_v24 = vld [vmem:[#allocation6 + $0xd20] sm:$0xff]  ;;  %v2379_v16 = vld [vmem:[#allocation6 + $0xd88] sm:$0xff]  ;;  %v2443_v52 = vld [vmem:[#allocation9 + $0x10] sm:$0xff] }
 0x6e7   :  { %v2133_v29 = vpop.f32.mrf.mxu2  ;;  %2353 = vmatpush.msra.mxu2 %v4107_v35  ;;  %v2372_v35 = vld [vmem:[#allocation6 + $0xd50] sm:$0xff]  ;;  %2398 = vmatpush.msra.mxu3 %v2373_v27 }
 0x6e8   :  { %2287 = vmatpush.msrb.mxu0 %v2722_v26  ;;  %2334 = vmatpush.msra.mxu1 %v2734_v20  ;;  %v2134_v62 = vadd.f32 %v2133_v29, %v3204_v57  ;;  %v2386_v26 = vld [vmem:[#allocation6 + $0xdc0] sm:$0xff] }
 0x6e9   :  { %2354 = vmatpush.msra.mxu2 %v4110_v41  ;;  %2399 = vmatpush.msra.mxu3 %v2372_v35  ;;  %v2378_v20 = vld [vmem:[#allocation6 + $0xd80] sm:$0xff] }
 0x6ea   :  { %2288 = vmatpush.msrb.mxu0 %v2723_v34  ;;  %2335 = vmatpush.msra.mxu1 %v2735_v21  ;;  %v2365_v34 = vld [vmem:[#allocation6 + $0xd18] sm:$0xff]  ;;  %v2530_v35 = vld [vmem:[#allocation7] ss:$0 sm:$0xff] }
 0x6eb   :  { %v2275_v38 = vpop.permute.xlu0 %2274  ;;  %2355 = vmatpush.msra.mxu2 %v4113_v1  ;;  %2400 = vmatpush.msra.mxu3 %v2371_v17  ;;  %v2456_v21 = vld [vmem:[#allocation9 + $0x78] sm:$0xff] }
 0x6ec   :  { %2289 = vmatpush.msrb.mxu0 %v2724_v42  ;;  %2517 = vmatmul.msk.f32.vlgmr.msrb.gmra.mxu3 %vm170_vm0, %v2275_v38  ;;  %v2276_v31 = vsel %vm170_vm0, %v2273_v45, %v2275_v38  ;;  %v2385_v42 = vld [vmem:[#allocation6 + $0xdb8] sm:$0xff] }
 0x6ed   :  { %2401 = vmatpush.msra.mxu3 %v2370_v46  ;;  %v2452_v29 = vld [vmem:[#allocation9 + $0x58] sm:$0xff] }
 0x6ee   :  { %2290 = vmatpush.msrb.mxu0 %v2725_v48  ;;  %v2364_v48 = vld [vmem:[#allocation6 + $0xd10] sm:$0xff] }
 0x6f0   :  { %2291 = vmatpush.msrb.mxu0 %v2726_v0  ;;  %v2384_v0 = vld [vmem:[#allocation6 + $0xdb0] sm:$0xff] }
 0x6f2   :  { %2292 = vmatpush.msrb.mxu0 %v2727_v37  ;;  %v2087_v7 = vpop.f32.mrf.mxu3  ;;  %v2363_v37 = vld [vmem:[#allocation6 + $0xd08] sm:$0xff] }
 0x6f4   :  { %2293 = vmatpush.msrb.mxu0 %v2728_v23  ;;  %v2383_v23 = vld [vmem:[#allocation6 + $0xda8] sm:$0xff] }
 0x6f6   :  { %2294 = vmatpush.msrb.mxu0 %v2729_v10  ;;  %v2153_v2 = vpop.f32.mrf.mxu1 }
 0x6f7   :  { %v2154_v14 = vadd.f32 %v2153_v2, %v2134_v62  ;;  %v2451_v62 = vld [vmem:[#allocation9 + $0x50] sm:$0xff]  ;;  %v2450_v2 = vld [vmem:[#allocation9 + $0x48] sm:$0xff] }
 0x6f8   :  { %2295 = vmatpush.msrb.mxu0 %v2731_v11  ;;  %v2381_v11 = vld [vmem:[#allocation6 + $0xd98] sm:$0xff] }
 0x6f9   :  { %2580 = vtanh.f32 %v2154_v14  ;;  %2296 = vmatmul.f32.vlgmr.msrb.gmra.mxu0 %v2276_v31 }
 0x6fa   :  { %2414 = vmatpush.msra.mxu0 %v2393_v15  ;;  %v2173_v4 = vpop.f32.mrf.mxu3  ;;  %v2445_v15 = vld [vmem:[#allocation9 + $0x20] sm:$0xff] }
 0x6fb   :  { %v2174_v1 = vadd.f32 %v2173_v4, %v3218_v9 }
 0x6fc   :  { %2415 = vmatpush.msra.mxu0 %v2392_v47 }
 0x6fe   :  { %2416 = vmatpush.msra.mxu0 %v2391_v58 }
 0x6ff   :  { %v2581_v43 = vpop.eup %2580 }
 0x700   :  { %2246 = vmatmul.f32.vlgmr.msrb.gmra.mxu1 %v2581_v43  ;;  %2417 = vmatpush.msra.mxu0 %v2390_v61 }
 0x702   :  { %2418 = vmatpush.msra.mxu0 %v2389_v5 }
 0x704   :  { %2419 = vmatpush.msra.mxu0 %v2388_v51 }
 0x706   :  { %2420 = vmatpush.msra.mxu0 %v2387_v32 }
 0x708   :  { %2336 = vmatmul.f32.vlgmr.msra.gmra.mxu1 %v2276_v31  ;;  %2421 = vmatpush.msra.mxu0 %v2386_v26  ;;  %v2449_v31 = vld [vmem:[#allocation9 + $0x40] sm:$0xff] }
 0x70a   :  { %2422 = vmatpush.msra.mxu0 %v2385_v42 }
 0x70c   :  { %2423 = vmatpush.msra.mxu0 %v2384_v0 }
 0x70e   :  { %2424 = vmatpush.msra.mxu0 %v2383_v23 }
 0x710   :  { %2425 = vmatpush.msra.mxu0 %v2382_v63 }
 0x712   :  { %2426 = vmatpush.msra.mxu0 %v2381_v11 }
 0x714   :  { %2427 = vmatpush.msra.mxu0 %v2380_v55 }
 0x716   :  { %2428 = vmatpush.msra.mxu0 %v2379_v16 }
 0x718   :  { %2429 = vmatpush.msra.mxu0 %v2378_v20 }
 0x756   :  { %v2107_v36 = vpop.f32.mrf.mxu0 }
 0x757   :  { %v2108_v54 = vadd.f32 %v2107_v36, %v2087_v7  ;;  %v2448_v7 = vld [vmem:[#allocation9 + $0x38] sm:$0xff]  ;;  %v2442_v36 = vld [vmem:[#allocation9 + $0x8] sm:$0xff] }
 0x759   :  { %v4145_v41 = vadd.f32 %v2108_v54, %v4117_v40  ;;  %v2369_v40 = vld [vmem:[#allocation6 + $0xd38] sm:$0xff] }
 0x75a   :  { %2402 = vmatpush.msra.mxu3 %v2369_v40 }
 0x75c   :  { %2403 = vmatpush.msra.mxu3 %v2368_v39 }
 0x75e   :  { %v2193_v56 = vpop.f32.mrf.mxu0  ;;  %2404 = vmatpush.msra.mxu3 %v2367_v12 }
 0x75f   :  { %v2194_v59 = vadd.f32 %v2193_v56, %v2174_v1 }
 0x760   :  { %2405 = vmatpush.msra.mxu3 %v2366_v24 }
 0x761   :  { %2582 = vtanh.f32 %v2194_v59  ;;  %v2531_v59 = vld [vmem:[#allocation10] ss:$0 sm:$0xff] }
 0x762   :  { %2406 = vmatpush.msra.mxu3 %v2365_v34 }
 0x764   :  { %2407 = vmatpush.msra.mxu3 %v2364_v48 }
 0x766   :  { %2408 = vmatpush.msra.mxu3 %v2363_v37 }
 0x767   :  { %v2583_v19 = vpop.eup %2582 }
 0x768   :  { %2266 = vmatmul.f32.vlgmr.msrb.gmra.mxu2 %v2583_v19 }
 0x769   :  { %2461 = vmatpush.msrb.mxu2 %v2456_v21 }
 0x76b   :  { %2462 = vmatpush.msrb.mxu2 %v2455_v13 }
 0x76d   :  { %2463 = vmatpush.msrb.mxu2 %v2454_v25 }
 0x76f   :  { %v2317_v53 = vpop.f32.mrf.mxu3  ;;  %2464 = vmatpush.msrb.mxu2 %v2453_v60 }
 0x770   :  { %2518 = vmatmul.msk.f32.vlgmr.msra.gmra.mxu2 %vm170_vm0, %v2275_v38 }
 0x771   :  { %2465 = vmatpush.msrb.mxu2 %v2452_v29 }
 0x773   :  { %2466 = vmatpush.msrb.mxu2 %v2451_v62 }
 0x775   :  { %2467 = vmatpush.msrb.mxu2 %v2450_v2 }
 0x776   :  { %v2297_v50 = vpop.f32.mrf.mxu0 }
 0x777   :  { %v2298_v28 = vadd.f32 %v2297_v50, %v3204_v57  ;;  %v2362_v57 = vld [vmem:[#allocation6 + $0xd00] sm:$0xff]  ;;  %2468 = vmatpush.msrb.mxu2 %v2449_v31 }
 0x778   :  { %2409 = vmatpush.msra.mxu3 %v2362_v57 }
 0x779   :  { %v2318_v30 = vadd.f32 %v2317_v53, %v2298_v28  ;;  %2469 = vmatpush.msrb.mxu2 %v2448_v7 }
 0x77b   :  { %2584 = vtanh.f32 %v2318_v30  ;;  %2470 = vmatpush.msrb.mxu2 %v2447_v3 }
 0x77d   :  { %v2247_v8 = vpop.f32.mrf.mxu1  ;;  %2471 = vmatpush.msrb.mxu2 %v2446_v22 }
 0x77f   :  { %2472 = vmatpush.msrb.mxu2 %v2445_v15 }
 0x781   :  { %v2585_v10 = vpop.eup %2584  ;;  %2473 = vmatpush.msrb.mxu2 %v2444_v33 }
 0x782   :  { %2410 = vmatmul.f32.vlgmr.msra.gmra.mxu3 %v2585_v10 }
 0x783   :  { %2474 = vmatpush.msrb.mxu2 %v2443_v52 }
 0x785   :  { %v2337_v44 = vpop.f32.mrf.mxu1  ;;  %2475 = vmatpush.msrb.mxu2 %v2442_v36 }
 0x786   :  { %v2338_v18 = vadd.f32 %v2337_v44, %v3218_v9  ;;  %v2441_v9 = vld [vmem:[#allocation9] sm:$0xff] }
 0x787   :  { %2476 = vmatpush.msrb.mxu2 %v2441_v9 }
 0x7eb   :  { %v2267_v49 = vpop.f32.mrf.mxu2 }
 0x7ec   :  { %v2268_v6 = vadd.f32 %v2267_v49, %v2247_v8 }
 0x7ee   :  { %v2270_v14 = vadd.f32 %v2268_v6, %v4145_v41 }
 0x7f3   :  { %v2357_v38 = vpop.f32.mrf.mxu2 }
 0x7f4   :  { %v2358_v43 = vadd.f32 %v2357_v38, %v2338_v18 }
 0x7f6   :  { %2586 = vtanh.f32 %v2358_v43 }
 0x7fc   :  { %v2587_v45 = vpop.eup %2586 }
 0x7fd   :  { %2430 = vmatmul.f32.vlgmr.msra.gmra.mxu0 %v2587_v45 }
 0x805   :  { %v2411_v27 = vpop.f32.mrf.mxu3 }
 0x87a   :  { %v2431_v54 = vpop.f32.mrf.mxu0 }
 0x87b   :  { %v2432_v4 = vadd.f32 %v2431_v54, %v2411_v27 }
 0x87d   :  { %v2434_v41 = vadd.f32 %v2432_v4, %v2270_v14 }
 0x87f   :  { %v2439_v1 = vadd.f32 %v2530_v35, %v2434_v41 }
 0x881   :  { %2588 = vtanh.f32 %v2439_v1 }
 0x887   :  { %v2589_v56 = vpop.eup %2588 }
 0x888   :  { %2477 = vmatmul.f32.vlgmr.msrb.gmra.mxu2 %v2589_v56 }
 0x90b   :  { %v2478_v19 = vpop.f32.mrf.mxu2 }
 0x90c   :  { %v2479_v47 = vadd.f32 %v2531_v59, %v2478_v19 }
 0x90e   :  { %2590 = vtanh.f32 %v2479_v47 }
 0x914   :  { %v2591_v17 = vpop.eup %2590 }
 0x915   :  { %2482 = vst [vmem:[%s4162_s7] sm:$0xff] %v2591_v17 }
 0x916   :  { %2487 = vsyncpa [#allocation3], 1 }
 0x917   :  { %2488 = vsyncpa [#allocation5], 1 }
 0x918   :  { %2489 = vsyncpa [#allocation8], 1 }
 0x919   :  { %2490 = vsyncpa [#allocation11], 1 }

</bundles_post_ra>
